<compile_context>
chip_gen: v5e
topology: v5e:2x2
jax: 0.10.0
libtpu: 0.0.40
codegen_flags: <defaults>
</compile_context>

<pallas_src>
import functools

import jax
import jax.numpy as jnp
from jax.experimental import pallas as pl
from jax.experimental.pallas import tpu as pltpu


def _round_up(n, m):
    return ((n + m - 1) // m) * m


def _lstm_kernel(x_ref, wih_ref, whh_ref, b_ref, wfc_ref, bfc_ref,
                 out_ref, h_ref, c_ref, gx_ref, *, seq_len):
    """One grid step == one chunk of timesteps. h/c persist in VMEM scratch."""
    chunk = pl.program_id(0)
    n_chunks = pl.num_programs(0)

    tc, bp, dp = x_ref.shape       # time-chunk, padded batch, padded input dim
    hp = whh_ref.shape[0]          # padded hidden dim

    @pl.when(chunk == 0)
    def _():
        h_ref[...] = jnp.zeros_like(h_ref)
        c_ref[...] = jnp.zeros_like(c_ref)

    # Input projection for the whole chunk as one big MXU matmul (off the
    # serial recurrence path); bias folded in here once.
    x_flat = x_ref[...].reshape(tc * bp, dp)
    gx = (jnp.dot(x_flat, wih_ref[...], preferred_element_type=jnp.float32)
          + b_ref[...])
    gx_ref[...] = gx.reshape(tc, bp, 4 * hp)

    def step(s, carry):
        h_prev, c_prev = carry
        # One matmul per step on the serial path: h_prev @ W_hh^T.
        gates = gx_ref[s] + jnp.dot(h_prev, whh_ref[...],
                                    preferred_element_type=jnp.float32)
        # Lane-aligned gate slabs (each hp is a multiple of 128).
        i_g = jax.nn.sigmoid(gates[:, 0 * hp:1 * hp])
        f_g = jax.nn.sigmoid(gates[:, 1 * hp:2 * hp])
        g_g = jnp.tanh(gates[:, 2 * hp:3 * hp])
        o_g = jax.nn.sigmoid(gates[:, 3 * hp:4 * hp])

        c_new = f_g * c_prev + i_g * g_g
        h_new = o_g * jnp.tanh(c_new)

        # Mask out padded timesteps beyond the true sequence length.
        valid = (chunk * tc + s) < seq_len
        h_new = jnp.where(valid, h_new, h_prev)
        c_new = jnp.where(valid, c_new, c_prev)
        return h_new, c_new

    h, c = jax.lax.fori_loop(0, tc, step, (h_ref[...], c_ref[...]),
                             unroll=True)
    h_ref[...] = h
    c_ref[...] = c

    # FC applied only once, after the final chunk (== fc(h_T)).
    @pl.when(chunk == n_chunks - 1)
    def _():
        out_ref[...] = (
            jnp.dot(h, wfc_ref[...], preferred_element_type=jnp.float32)
            + bfc_ref[...]
        ).astype(out_ref.dtype)


@jax.jit
def lstm_model_forward(x, w_ih, w_hh, b_ih, b_hh, w_fc, b_fc):
    """x: (B, T, D) float32 (batch_first, like the PyTorch module).
    w_ih: (4H, D), w_hh: (4H, H), b_ih/b_hh: (4H,), w_fc: (O, H), b_fc: (O,).
    Returns (B, O)."""
    B, T, D = x.shape
    H = w_hh.shape[1]
    O = w_fc.shape[0]

    # Hardware-tile padding.
    Bp = _round_up(B, 8)      # sublane tile
    Dp = _round_up(D, 128)    # lane tile
    Hp = _round_up(H, 128)
    Op = _round_up(O, 128)

    # Time chunking: one grid step per chunk of timesteps.
    TC = T if T <= 32 else 32
    n_chunks = -(-T // TC)
    Tp = n_chunks * TC

    # Time-major, zero-padded x: (Tp, Bp, Dp).
    x_tm = jnp.transpose(x, (1, 0, 2)).astype(jnp.float32)
    x_p = jnp.zeros((Tp, Bp, Dp), jnp.float32).at[:T, :B, :D].set(x_tm)

    # Gate-blocked, zero-padded, pre-transposed weights.  Zero padding keeps
    # the padded hidden units' state at exactly 0 for all timesteps
    # (gates=0 -> i=f=o=0.5, g=0 -> c=h=0), so numerics are unchanged.
    def pad_gate_weight(w, in_dim, in_pad):
        # w: (4H, in_dim) -> (in_pad, 4*Hp), per-gate slab of width Hp.
        out = jnp.zeros((in_pad, 4 * Hp), jnp.float32)
        for g in range(4):
            blk = w[g * H:(g + 1) * H, :]                       # (H, in_dim)
            out = out.at[:in_dim, g * Hp:g * Hp + H].set(blk.T)
        return out

    wih_p = pad_gate_weight(w_ih.astype(jnp.float32), D, Dp)    # (Dp, 4Hp)
    whh_p = pad_gate_weight(w_hh.astype(jnp.float32), H, Hp)    # (Hp, 4Hp)

    b = (b_ih + b_hh).astype(jnp.float32)
    b_p = jnp.zeros((1, 4 * Hp), jnp.float32)
    for g in range(4):
        b_p = b_p.at[0, g * Hp:g * Hp + H].set(b[g * H:(g + 1) * H])

    wfc_p = jnp.zeros((Hp, Op), jnp.float32).at[:H, :O].set(
        w_fc.astype(jnp.float32).T)
    bfc_p = jnp.zeros((1, Op), jnp.float32).at[0, :O].set(
        b_fc.astype(jnp.float32))

    kernel = functools.partial(_lstm_kernel, seq_len=T)

    grid_spec = pltpu.PrefetchScalarGridSpec(
        num_scalar_prefetch=0,
        grid=(n_chunks,),
        in_specs=[
            pl.BlockSpec((TC, Bp, Dp), lambda c: (c, 0, 0)),   # x chunk
            pl.BlockSpec((Dp, 4 * Hp), lambda c: (0, 0)),      # W_ih^T (resident)
            pl.BlockSpec((Hp, 4 * Hp), lambda c: (0, 0)),      # W_hh^T (resident)
            pl.BlockSpec((1, 4 * Hp), lambda c: (0, 0)),       # fused bias
            pl.BlockSpec((Hp, Op), lambda c: (0, 0)),          # W_fc^T
            pl.BlockSpec((1, Op), lambda c: (0, 0)),           # b_fc
        ],
        out_specs=pl.BlockSpec((Bp, Op), lambda c: (0, 0)),    # resident output
        scratch_shapes=[
            pltpu.VMEM((Bp, Hp), jnp.float32),                 # h state
            pltpu.VMEM((Bp, Hp), jnp.float32),                 # c state
            pltpu.VMEM((TC, Bp, 4 * Hp), jnp.float32),         # chunk x-gates
        ],
    )

    out_p = pl.pallas_call(
        kernel,
        out_shape=jax.ShapeDtypeStruct((Bp, Op), jnp.float32),
        grid_spec=grid_spec,
        compiler_params=pltpu.CompilerParams(
            dimension_semantics=("arbitrary",),   # sequential recurrence
            vmem_limit_bytes=32 * 1024 * 1024,
        ),
    )(x_p, wih_p, whh_p, b_p, wfc_p, bfc_p)

    return out_p[:B, :O]


def _reference_forward(x, w_ih, w_hh, b_ih, b_hh, w_fc, b_fc):
    """Pure-JAX reference (mirrors torch.nn.LSTM + Linear)."""
    B, T, D = x.shape
    H = w_hh.shape[1]

    def step(carry, x_t):
        h, c = carry
        gates = x_t @ w_ih.T + h @ w_hh.T + b_ih + b_hh
        i = jax.nn.sigmoid(gates[:, 0 * H:1 * H])
        f = jax.nn.sigmoid(gates[:, 1 * H:2 * H])
        g = jnp.tanh(gates[:, 2 * H:3 * H])
        o = jax.nn.sigmoid(gates[:, 3 * H:4 * H])
        c_new = f * c + i * g
        h_new = o * jnp.tanh(c_new)
        return (h_new, c_new), None

    h0 = jnp.zeros((B, H), jnp.float32)
    c0 = jnp.zeros((B, H), jnp.float32)
    (h_T, _), _ = jax.lax.scan(step, (h0, c0), jnp.transpose(x, (1, 0, 2)))
    return h_T @ w_fc.T + b_fc


if __name__ == "__main__":
    # Small shapes consistent with the module: input_dim=16, hidden_dim=32,
    # output_dim=8, num_layers=1, batch=4, seq_len=8.
    B, T, D, H, O = 4, 8, 16, 32, 8

    key = jax.random.PRNGKey(0)
    ks = jax.random.split(key, 7)
    scale = 1.0 / jnp.sqrt(H)

    x = jax.random.normal(ks[0], (B, T, D), jnp.float32)
    w_ih = jax.random.uniform(ks[1], (4 * H, D), jnp.float32, -scale, scale)
    w_hh = jax.random.uniform(ks[2], (4 * H, H), jnp.float32, -scale, scale)
    b_ih = jax.random.uniform(ks[3], (4 * H,), jnp.float32, -scale, scale)
    b_hh = jax.random.uniform(ks[4], (4 * H,), jnp.float32, -scale, scale)
    w_fc = jax.random.uniform(ks[5], (O, H), jnp.float32, -scale, scale)
    b_fc = jax.random.uniform(ks[6], (O,), jnp.float32, -scale, scale)

    out = lstm_model_forward(x, w_ih, w_hh, b_ih, b_hh, w_fc, b_fc)
    out = jax.block_until_ready(out)

    ref = _reference_forward(x, w_ih, w_hh, b_ih, b_hh, w_fc, b_fc)
    assert out.shape == (B, O)
    assert jnp.allclose(out, ref, atol=1e-4, rtol=1e-4), "mismatch vs reference"

    print("KERNEL_OK")
</pallas_src>

<mosaic_0001>
module attributes {stable_mosaic.version = 11 : i64} {
  func.func @_lstm_kernel(%arg0: i32, %arg1: memref<8x8x128xf32, #tpu.memory_space<vmem>>, %arg2: memref<128x512xf32, #tpu.memory_space<vmem>>, %arg3: memref<128x512xf32, #tpu.memory_space<vmem>>, %arg4: memref<1x512xf32, #tpu.memory_space<vmem>>, %arg5: memref<128x128xf32, #tpu.memory_space<vmem>>, %arg6: memref<1x128xf32, #tpu.memory_space<vmem>>, %arg7: memref<8x128xf32, #tpu.memory_space<vmem>>, %arg8: memref<8x128xf32, #tpu.memory_space<vmem>>, %arg9: memref<8x128xf32, #tpu.memory_space<vmem>>, %arg10: memref<8x8x512xf32, #tpu.memory_space<vmem>>) attributes {dimension_semantics = [#tpu.dimension_semantics<arbitrary>], iteration_bounds = array<i64: 1>, scalar_prefetch = 0 : i64, scratch_operands = 3 : i64, tpu.core_type = #tpu.core_type<tc>, window_params = [{transform_indices = @transform_0, window_bounds = array<i64: 8, 8, 128>}, {pipeline_mode = #tpu.pipeline_mode<synchronous>, transform_indices = @transform_1, window_bounds = array<i64: 128, 512>}, {pipeline_mode = #tpu.pipeline_mode<synchronous>, transform_indices = @transform_2, window_bounds = array<i64: 128, 512>}, {pipeline_mode = #tpu.pipeline_mode<synchronous>, transform_indices = @transform_3, window_bounds = array<i64: 1, 512>}, {pipeline_mode = #tpu.pipeline_mode<synchronous>, transform_indices = @transform_4, window_bounds = array<i64: 128, 128>}, {pipeline_mode = #tpu.pipeline_mode<synchronous>, transform_indices = @transform_5, window_bounds = array<i64: 1, 128>}, {pipeline_mode = #tpu.pipeline_mode<synchronous>, transform_indices = @transform_6, window_bounds = array<i64: 8, 128>}]} {
    %c0_i32 = arith.constant 0 : i32
    %0 = arith.cmpi eq, %arg0, %c0_i32 : i32
    %1 = arith.extui %0 : i1 to i32
    %c0_i32_0 = arith.constant 0 : i32
    %2 = arith.cmpi ne, %1, %c0_i32_0 : i32
    scf.if %2 {
      %cst_101 = arith.constant 0.000000e+00 : f32
      %307 = vector.broadcast %cst_101 : f32 to vector<8x128xf32>
      %c0_102 = arith.constant 0 : index
      %c0_103 = arith.constant 0 : index
      %308 = vector.load %arg8[%c0_102, %c0_103] : memref<8x128xf32, #tpu.memory_space<vmem>>, vector<8x128xf32>
      tpu.vector_store %arg8[%c0_102, %c0_103], %307 {strides = array<i32>} : memref<8x128xf32, #tpu.memory_space<vmem>>, vector<8x128xf32>,
      %cst_104 = arith.constant 0.000000e+00 : f32
      %309 = vector.broadcast %cst_104 : f32 to vector<8x128xf32>
      %c0_105 = arith.constant 0 : index
      %c0_106 = arith.constant 0 : index
      %310 = vector.load %arg9[%c0_105, %c0_106] : memref<8x128xf32, #tpu.memory_space<vmem>>, vector<8x128xf32>
      tpu.vector_store %arg9[%c0_105, %c0_106], %309 {strides = array<i32>} : memref<8x128xf32, #tpu.memory_space<vmem>>, vector<8x128xf32>,
    } else {
    }
    %c0 = arith.constant 0 : index
    %c0_1 = arith.constant 0 : index
    %c0_2 = arith.constant 0 : index
    %3 = vector.load %arg1[%c0, %c0_1, %c0_2] : memref<8x8x128xf32, #tpu.memory_space<vmem>>, vector<8x8x128xf32>
    %4 = vector.shape_cast %3 : vector<8x8x128xf32> to vector<64x128xf32>
    %c0_3 = arith.constant 0 : index
    %c0_4 = arith.constant 0 : index
    %5 = vector.load %arg2[%c0_3, %c0_4] : memref<128x512xf32, #tpu.memory_space<vmem>>, vector<128x512xf32>
    %cst = arith.constant dense<0.000000e+00> : vector<64x512xf32>
    %6 = tpu.matmul %4, %5, %cst {dimension_numbers = #tpu.dot_dimension_numbers<[1], [0], [0], [1], [0, 0, 1, 1], [], []>} : vector<64x128xf32>, vector<128x512xf32>, vector<64x512xf32> -> vector<64x512xf32>
    %c0_5 = arith.constant 0 : index
    %c0_6 = arith.constant 0 : index
    %7 = vector.load %arg4[%c0_5, %c0_6] : memref<1x512xf32, #tpu.memory_space<vmem>>, vector<1x512xf32>
    %8 = vector.broadcast %7 : vector<1x512xf32> to vector<64x512xf32>
    %9 = arith.addf %6, %8 : vector<64x512xf32>
    %10 = vector.shape_cast %9 : vector<64x512xf32> to vector<8x8x512xf32>
    %c0_7 = arith.constant 0 : index
    %c0_8 = arith.constant 0 : index
    %c0_9 = arith.constant 0 : index
    %11 = vector.load %arg10[%c0_7, %c0_8, %c0_9] : memref<8x8x512xf32, #tpu.memory_space<vmem>>, vector<8x8x512xf32>
    tpu.vector_store %arg10[%c0_7, %c0_8, %c0_9], %10 {strides = array<i32>} : memref<8x8x512xf32, #tpu.memory_space<vmem>>, vector<8x8x512xf32>,
    %c0_10 = arith.constant 0 : index
    %c0_11 = arith.constant 0 : index
    %12 = vector.load %arg8[%c0_10, %c0_11] : memref<8x128xf32, #tpu.memory_space<vmem>>, vector<8x128xf32>
    %c0_12 = arith.constant 0 : index
    %c0_13 = arith.constant 0 : index
    %13 = vector.load %arg9[%c0_12, %c0_13] : memref<8x128xf32, #tpu.memory_space<vmem>>, vector<8x128xf32>
    %c0_i32_14 = arith.constant 0 : i32
    %14 = arith.index_cast %c0_i32_14 : i32 to index
    %c0_15 = arith.constant 0 : index
    %c0_16 = arith.constant 0 : index
    %15 = vector.load %arg10[%14, %c0_15, %c0_16] : memref<8x8x512xf32, #tpu.memory_space<vmem>>, vector<1x8x512xf32>
    %16 = vector.shape_cast %15 : vector<1x8x512xf32> to vector<8x512xf32>
    %c0_17 = arith.constant 0 : index
    %c0_18 = arith.constant 0 : index
    %17 = vector.load %arg3[%c0_17, %c0_18] : memref<128x512xf32, #tpu.memory_space<vmem>>, vector<128x512xf32>
    %cst_19 = arith.constant dense<0.000000e+00> : vector<8x512xf32>
    %18 = tpu.matmul %12, %17, %cst_19 {dimension_numbers = #tpu.dot_dimension_numbers<[1], [0], [0], [1], [0, 0, 1, 1], [], []>} : vector<8x128xf32>, vector<128x512xf32>, vector<8x512xf32> -> vector<8x512xf32>
    %19 = arith.addf %16, %18 : vector<8x512xf32>
    %20 = vector.extract_strided_slice %19 {offsets = [0, 0], sizes = [8, 128], strides = [1, 1]} : vector<8x512xf32> to vector<8x128xf32>
    %21 = arith.negf %20 : vector<8x128xf32>
    %22 = math.exp %21 : vector<8x128xf32>
    %cst_20 = arith.constant 1.000000e+00 : f32
    %23 = vector.broadcast %cst_20 : f32 to vector<8x128xf32>
    %24 = arith.addf %23, %22 : vector<8x128xf32>
    %25 = arith.divf %23, %24 : vector<8x128xf32>
    %26 = vector.extract_strided_slice %19 {offsets = [0, 128], sizes = [8, 128], strides = [1, 1]} : vector<8x512xf32> to vector<8x128xf32>
    %27 = arith.negf %26 : vector<8x128xf32>
    %28 = math.exp %27 : vector<8x128xf32>
    %cst_21 = arith.constant 1.000000e+00 : f32
    %29 = vector.broadcast %cst_21 : f32 to vector<8x128xf32>
    %30 = arith.addf %29, %28 : vector<8x128xf32>
    %31 = arith.divf %29, %30 : vector<8x128xf32>
    %32 = vector.extract_strided_slice %19 {offsets = [0, 256], sizes = [8, 128], strides = [1, 1]} : vector<8x512xf32> to vector<8x128xf32>
    %33 = math.tanh %32 : vector<8x128xf32>
    %34 = vector.extract_strided_slice %19 {offsets = [0, 384], sizes = [8, 128], strides = [1, 1]} : vector<8x512xf32> to vector<8x128xf32>
    %35 = arith.negf %34 : vector<8x128xf32>
    %36 = math.exp %35 : vector<8x128xf32>
    %cst_22 = arith.constant 1.000000e+00 : f32
    %37 = vector.broadcast %cst_22 : f32 to vector<8x128xf32>
    %38 = arith.addf %37, %36 : vector<8x128xf32>
    %39 = arith.divf %37, %38 : vector<8x128xf32>
    %40 = arith.mulf %31, %13 : vector<8x128xf32>
    %41 = arith.mulf %25, %33 : vector<8x128xf32>
    %42 = arith.addf %40, %41 : vector<8x128xf32>
    %43 = math.tanh %42 : vector<8x128xf32>
    %44 = arith.mulf %39, %43 : vector<8x128xf32>
    %c8_i32 = arith.constant 8 : i32
    %45 = arith.muli %arg0, %c8_i32 : i32
    %46 = arith.addi %45, %c0_i32_14 : i32
    %c8_i32_23 = arith.constant 8 : i32
    %47 = arith.cmpi slt, %46, %c8_i32_23 : i32
    %48 = arith.select %47, %44, %12 : vector<8x128xf32>
    %49 = arith.select %47, %42, %13 : vector<8x128xf32>
    %c1_i32 = arith.constant 1 : i32
    %50 = arith.index_cast %c1_i32 : i32 to index
    %c0_24 = arith.constant 0 : index
    %c0_25 = arith.constant 0 : index
    %51 = vector.load %arg10[%50, %c0_24, %c0_25] : memref<8x8x512xf32, #tpu.memory_space<vmem>>, vector<1x8x512xf32>
    %52 = vector.shape_cast %51 : vector<1x8x512xf32> to vector<8x512xf32>
    %c0_26 = arith.constant 0 : index
    %c0_27 = arith.constant 0 : index
    %53 = vector.load %arg3[%c0_26, %c0_27] : memref<128x512xf32, #tpu.memory_space<vmem>>, vector<128x512xf32>
    %cst_28 = arith.constant dense<0.000000e+00> : vector<8x512xf32>
    %54 = tpu.matmul %48, %53, %cst_28 {dimension_numbers = #tpu.dot_dimension_numbers<[1], [0], [0], [1], [0, 0, 1, 1], [], []>} : vector<8x128xf32>, vector<128x512xf32>, vector<8x512xf32> -> vector<8x512xf32>
    %55 = arith.addf %52, %54 : vector<8x512xf32>
    %56 = vector.extract_strided_slice %55 {offsets = [0, 0], sizes = [8, 128], strides = [1, 1]} : vector<8x512xf32> to vector<8x128xf32>
    %57 = arith.negf %56 : vector<8x128xf32>
    %58 = math.exp %57 : vector<8x128xf32>
    %cst_29 = arith.constant 1.000000e+00 : f32
    %59 = vector.broadcast %cst_29 : f32 to vector<8x128xf32>
    %60 = arith.addf %59, %58 : vector<8x128xf32>
    %61 = arith.divf %59, %60 : vector<8x128xf32>
    %62 = vector.extract_strided_slice %55 {offsets = [0, 128], sizes = [8, 128], strides = [1, 1]} : vector<8x512xf32> to vector<8x128xf32>
    %63 = arith.negf %62 : vector<8x128xf32>
    %64 = math.exp %63 : vector<8x128xf32>
    %cst_30 = arith.constant 1.000000e+00 : f32
    %65 = vector.broadcast %cst_30 : f32 to vector<8x128xf32>
    %66 = arith.addf %65, %64 : vector<8x128xf32>
    %67 = arith.divf %65, %66 : vector<8x128xf32>
    %68 = vector.extract_strided_slice %55 {offsets = [0, 256], sizes = [8, 128], strides = [1, 1]} : vector<8x512xf32> to vector<8x128xf32>
    %69 = math.tanh %68 : vector<8x128xf32>
    %70 = vector.extract_strided_slice %55 {offsets = [0, 384], sizes = [8, 128], strides = [1, 1]} : vector<8x512xf32> to vector<8x128xf32>
    %71 = arith.negf %70 : vector<8x128xf32>
    %72 = math.exp %71 : vector<8x128xf32>
    %cst_31 = arith.constant 1.000000e+00 : f32
    %73 = vector.broadcast %cst_31 : f32 to vector<8x128xf32>
    %74 = arith.addf %73, %72 : vector<8x128xf32>
    %75 = arith.divf %73, %74 : vector<8x128xf32>
    %76 = arith.mulf %67, %49 : vector<8x128xf32>
    %77 = arith.mulf %61, %69 : vector<8x128xf32>
    %78 = arith.addf %76, %77 : vector<8x128xf32>
    %79 = math.tanh %78 : vector<8x128xf32>
    %80 = arith.mulf %75, %79 : vector<8x128xf32>
    %c8_i32_32 = arith.constant 8 : i32
    %81 = arith.muli %arg0, %c8_i32_32 : i32
    %82 = arith.addi %81, %c1_i32 : i32
    %c8_i32_33 = arith.constant 8 : i32
    %83 = arith.cmpi slt, %82, %c8_i32_33 : i32
    %84 = arith.select %83, %80, %48 : vector<8x128xf32>
    %85 = arith.select %83, %78, %49 : vector<8x128xf32>
    %c2_i32 = arith.constant 2 : i32
    %86 = arith.index_cast %c2_i32 : i32 to index
    %c0_34 = arith.constant 0 : index
    %c0_35 = arith.constant 0 : index
    %87 = vector.load %arg10[%86, %c0_34, %c0_35] : memref<8x8x512xf32, #tpu.memory_space<vmem>>, vector<1x8x512xf32>
    %88 = vector.shape_cast %87 : vector<1x8x512xf32> to vector<8x512xf32>
    %c0_36 = arith.constant 0 : index
    %c0_37 = arith.constant 0 : index
    %89 = vector.load %arg3[%c0_36, %c0_37] : memref<128x512xf32, #tpu.memory_space<vmem>>, vector<128x512xf32>
    %cst_38 = arith.constant dense<0.000000e+00> : vector<8x512xf32>
    %90 = tpu.matmul %84, %89, %cst_38 {dimension_numbers = #tpu.dot_dimension_numbers<[1], [0], [0], [1], [0, 0, 1, 1], [], []>} : vector<8x128xf32>, vector<128x512xf32>, vector<8x512xf32> -> vector<8x512xf32>
    %91 = arith.addf %88, %90 : vector<8x512xf32>
    %92 = vector.extract_strided_slice %91 {offsets = [0, 0], sizes = [8, 128], strides = [1, 1]} : vector<8x512xf32> to vector<8x128xf32>
    %93 = arith.negf %92 : vector<8x128xf32>
    %94 = math.exp %93 : vector<8x128xf32>
    %cst_39 = arith.constant 1.000000e+00 : f32
    %95 = vector.broadcast %cst_39 : f32 to vector<8x128xf32>
    %96 = arith.addf %95, %94 : vector<8x128xf32>
    %97 = arith.divf %95, %96 : vector<8x128xf32>
    %98 = vector.extract_strided_slice %91 {offsets = [0, 128], sizes = [8, 128], strides = [1, 1]} : vector<8x512xf32> to vector<8x128xf32>
    %99 = arith.negf %98 : vector<8x128xf32>
    %100 = math.exp %99 : vector<8x128xf32>
    %cst_40 = arith.constant 1.000000e+00 : f32
    %101 = vector.broadcast %cst_40 : f32 to vector<8x128xf32>
    %102 = arith.addf %101, %100 : vector<8x128xf32>
    %103 = arith.divf %101, %102 : vector<8x128xf32>
    %104 = vector.extract_strided_slice %91 {offsets = [0, 256], sizes = [8, 128], strides = [1, 1]} : vector<8x512xf32> to vector<8x128xf32>
    %105 = math.tanh %104 : vector<8x128xf32>
    %106 = vector.extract_strided_slice %91 {offsets = [0, 384], sizes = [8, 128], strides = [1, 1]} : vector<8x512xf32> to vector<8x128xf32>
    %107 = arith.negf %106 : vector<8x128xf32>
    %108 = math.exp %107 : vector<8x128xf32>
    %cst_41 = arith.constant 1.000000e+00 : f32
    %109 = vector.broadcast %cst_41 : f32 to vector<8x128xf32>
    %110 = arith.addf %109, %108 : vector<8x128xf32>
    %111 = arith.divf %109, %110 : vector<8x128xf32>
    %112 = arith.mulf %103, %85 : vector<8x128xf32>
    %113 = arith.mulf %97, %105 : vector<8x128xf32>
    %114 = arith.addf %112, %113 : vector<8x128xf32>
    %115 = math.tanh %114 : vector<8x128xf32>
    %116 = arith.mulf %111, %115 : vector<8x128xf32>
    %c8_i32_42 = arith.constant 8 : i32
    %117 = arith.muli %arg0, %c8_i32_42 : i32
    %118 = arith.addi %117, %c2_i32 : i32
    %c8_i32_43 = arith.constant 8 : i32
    %119 = arith.cmpi slt, %118, %c8_i32_43 : i32
    %120 = arith.select %119, %116, %84 : vector<8x128xf32>
    %121 = arith.select %119, %114, %85 : vector<8x128xf32>
    %c3_i32 = arith.constant 3 : i32
    %122 = arith.index_cast %c3_i32 : i32 to index
    %c0_44 = arith.constant 0 : index
    %c0_45 = arith.constant 0 : index
    %123 = vector.load %arg10[%122, %c0_44, %c0_45] : memref<8x8x512xf32, #tpu.memory_space<vmem>>, vector<1x8x512xf32>
    %124 = vector.shape_cast %123 : vector<1x8x512xf32> to vector<8x512xf32>
    %c0_46 = arith.constant 0 : index
    %c0_47 = arith.constant 0 : index
    %125 = vector.load %arg3[%c0_46, %c0_47] : memref<128x512xf32, #tpu.memory_space<vmem>>, vector<128x512xf32>
    %cst_48 = arith.constant dense<0.000000e+00> : vector<8x512xf32>
    %126 = tpu.matmul %120, %125, %cst_48 {dimension_numbers = #tpu.dot_dimension_numbers<[1], [0], [0], [1], [0, 0, 1, 1], [], []>} : vector<8x128xf32>, vector<128x512xf32>, vector<8x512xf32> -> vector<8x512xf32>
    %127 = arith.addf %124, %126 : vector<8x512xf32>
    %128 = vector.extract_strided_slice %127 {offsets = [0, 0], sizes = [8, 128], strides = [1, 1]} : vector<8x512xf32> to vector<8x128xf32>
    %129 = arith.negf %128 : vector<8x128xf32>
    %130 = math.exp %129 : vector<8x128xf32>
    %cst_49 = arith.constant 1.000000e+00 : f32
    %131 = vector.broadcast %cst_49 : f32 to vector<8x128xf32>
    %132 = arith.addf %131, %130 : vector<8x128xf32>
    %133 = arith.divf %131, %132 : vector<8x128xf32>
    %134 = vector.extract_strided_slice %127 {offsets = [0, 128], sizes = [8, 128], strides = [1, 1]} : vector<8x512xf32> to vector<8x128xf32>
    %135 = arith.negf %134 : vector<8x128xf32>
    %136 = math.exp %135 : vector<8x128xf32>
    %cst_50 = arith.constant 1.000000e+00 : f32
    %137 = vector.broadcast %cst_50 : f32 to vector<8x128xf32>
    %138 = arith.addf %137, %136 : vector<8x128xf32>
    %139 = arith.divf %137, %138 : vector<8x128xf32>
    %140 = vector.extract_strided_slice %127 {offsets = [0, 256], sizes = [8, 128], strides = [1, 1]} : vector<8x512xf32> to vector<8x128xf32>
    %141 = math.tanh %140 : vector<8x128xf32>
    %142 = vector.extract_strided_slice %127 {offsets = [0, 384], sizes = [8, 128], strides = [1, 1]} : vector<8x512xf32> to vector<8x128xf32>
    %143 = arith.negf %142 : vector<8x128xf32>
    %144 = math.exp %143 : vector<8x128xf32>
    %cst_51 = arith.constant 1.000000e+00 : f32
    %145 = vector.broadcast %cst_51 : f32 to vector<8x128xf32>
    %146 = arith.addf %145, %144 : vector<8x128xf32>
    %147 = arith.divf %145, %146 : vector<8x128xf32>
    %148 = arith.mulf %139, %121 : vector<8x128xf32>
    %149 = arith.mulf %133, %141 : vector<8x128xf32>
    %150 = arith.addf %148, %149 : vector<8x128xf32>
    %151 = math.tanh %150 : vector<8x128xf32>
    %152 = arith.mulf %147, %151 : vector<8x128xf32>
    %c8_i32_52 = arith.constant 8 : i32
    %153 = arith.muli %arg0, %c8_i32_52 : i32
    %154 = arith.addi %153, %c3_i32 : i32
    %c8_i32_53 = arith.constant 8 : i32
    %155 = arith.cmpi slt, %154, %c8_i32_53 : i32
    %156 = arith.select %155, %152, %120 : vector<8x128xf32>
    %157 = arith.select %155, %150, %121 : vector<8x128xf32>
    %c4_i32 = arith.constant 4 : i32
    %158 = arith.index_cast %c4_i32 : i32 to index
    %c0_54 = arith.constant 0 : index
    %c0_55 = arith.constant 0 : index
    %159 = vector.load %arg10[%158, %c0_54, %c0_55] : memref<8x8x512xf32, #tpu.memory_space<vmem>>, vector<1x8x512xf32>
    %160 = vector.shape_cast %159 : vector<1x8x512xf32> to vector<8x512xf32>
    %c0_56 = arith.constant 0 : index
    %c0_57 = arith.constant 0 : index
    %161 = vector.load %arg3[%c0_56, %c0_57] : memref<128x512xf32, #tpu.memory_space<vmem>>, vector<128x512xf32>
    %cst_58 = arith.constant dense<0.000000e+00> : vector<8x512xf32>
    %162 = tpu.matmul %156, %161, %cst_58 {dimension_numbers = #tpu.dot_dimension_numbers<[1], [0], [0], [1], [0, 0, 1, 1], [], []>} : vector<8x128xf32>, vector<128x512xf32>, vector<8x512xf32> -> vector<8x512xf32>
    %163 = arith.addf %160, %162 : vector<8x512xf32>
    %164 = vector.extract_strided_slice %163 {offsets = [0, 0], sizes = [8, 128], strides = [1, 1]} : vector<8x512xf32> to vector<8x128xf32>
    %165 = arith.negf %164 : vector<8x128xf32>
    %166 = math.exp %165 : vector<8x128xf32>
    %cst_59 = arith.constant 1.000000e+00 : f32
    %167 = vector.broadcast %cst_59 : f32 to vector<8x128xf32>
    %168 = arith.addf %167, %166 : vector<8x128xf32>
    %169 = arith.divf %167, %168 : vector<8x128xf32>
    %170 = vector.extract_strided_slice %163 {offsets = [0, 128], sizes = [8, 128], strides = [1, 1]} : vector<8x512xf32> to vector<8x128xf32>
    %171 = arith.negf %170 : vector<8x128xf32>
    %172 = math.exp %171 : vector<8x128xf32>
    %cst_60 = arith.constant 1.000000e+00 : f32
    %173 = vector.broadcast %cst_60 : f32 to vector<8x128xf32>
    %174 = arith.addf %173, %172 : vector<8x128xf32>
    %175 = arith.divf %173, %174 : vector<8x128xf32>
    %176 = vector.extract_strided_slice %163 {offsets = [0, 256], sizes = [8, 128], strides = [1, 1]} : vector<8x512xf32> to vector<8x128xf32>
    %177 = math.tanh %176 : vector<8x128xf32>
    %178 = vector.extract_strided_slice %163 {offsets = [0, 384], sizes = [8, 128], strides = [1, 1]} : vector<8x512xf32> to vector<8x128xf32>
    %179 = arith.negf %178 : vector<8x128xf32>
    %180 = math.exp %179 : vector<8x128xf32>
    %cst_61 = arith.constant 1.000000e+00 : f32
    %181 = vector.broadcast %cst_61 : f32 to vector<8x128xf32>
    %182 = arith.addf %181, %180 : vector<8x128xf32>
    %183 = arith.divf %181, %182 : vector<8x128xf32>
    %184 = arith.mulf %175, %157 : vector<8x128xf32>
    %185 = arith.mulf %169, %177 : vector<8x128xf32>
    %186 = arith.addf %184, %185 : vector<8x128xf32>
    %187 = math.tanh %186 : vector<8x128xf32>
    %188 = arith.mulf %183, %187 : vector<8x128xf32>
    %c8_i32_62 = arith.constant 8 : i32
    %189 = arith.muli %arg0, %c8_i32_62 : i32
    %190 = arith.addi %189, %c4_i32 : i32
    %c8_i32_63 = arith.constant 8 : i32
    %191 = arith.cmpi slt, %190, %c8_i32_63 : i32
    %192 = arith.select %191, %188, %156 : vector<8x128xf32>
    %193 = arith.select %191, %186, %157 : vector<8x128xf32>
    %c5_i32 = arith.constant 5 : i32
    %194 = arith.index_cast %c5_i32 : i32 to index
    %c0_64 = arith.constant 0 : index
    %c0_65 = arith.constant 0 : index
    %195 = vector.load %arg10[%194, %c0_64, %c0_65] : memref<8x8x512xf32, #tpu.memory_space<vmem>>, vector<1x8x512xf32>
    %196 = vector.shape_cast %195 : vector<1x8x512xf32> to vector<8x512xf32>
    %c0_66 = arith.constant 0 : index
    %c0_67 = arith.constant 0 : index
    %197 = vector.load %arg3[%c0_66, %c0_67] : memref<128x512xf32, #tpu.memory_space<vmem>>, vector<128x512xf32>
    %cst_68 = arith.constant dense<0.000000e+00> : vector<8x512xf32>
    %198 = tpu.matmul %192, %197, %cst_68 {dimension_numbers = #tpu.dot_dimension_numbers<[1], [0], [0], [1], [0, 0, 1, 1], [], []>} : vector<8x128xf32>, vector<128x512xf32>, vector<8x512xf32> -> vector<8x512xf32>
    %199 = arith.addf %196, %198 : vector<8x512xf32>
    %200 = vector.extract_strided_slice %199 {offsets = [0, 0], sizes = [8, 128], strides = [1, 1]} : vector<8x512xf32> to vector<8x128xf32>
    %201 = arith.negf %200 : vector<8x128xf32>
    %202 = math.exp %201 : vector<8x128xf32>
    %cst_69 = arith.constant 1.000000e+00 : f32
    %203 = vector.broadcast %cst_69 : f32 to vector<8x128xf32>
    %204 = arith.addf %203, %202 : vector<8x128xf32>
    %205 = arith.divf %203, %204 : vector<8x128xf32>
    %206 = vector.extract_strided_slice %199 {offsets = [0, 128], sizes = [8, 128], strides = [1, 1]} : vector<8x512xf32> to vector<8x128xf32>
    %207 = arith.negf %206 : vector<8x128xf32>
    %208 = math.exp %207 : vector<8x128xf32>
    %cst_70 = arith.constant 1.000000e+00 : f32
    %209 = vector.broadcast %cst_70 : f32 to vector<8x128xf32>
    %210 = arith.addf %209, %208 : vector<8x128xf32>
    %211 = arith.divf %209, %210 : vector<8x128xf32>
    %212 = vector.extract_strided_slice %199 {offsets = [0, 256], sizes = [8, 128], strides = [1, 1]} : vector<8x512xf32> to vector<8x128xf32>
    %213 = math.tanh %212 : vector<8x128xf32>
    %214 = vector.extract_strided_slice %199 {offsets = [0, 384], sizes = [8, 128], strides = [1, 1]} : vector<8x512xf32> to vector<8x128xf32>
    %215 = arith.negf %214 : vector<8x128xf32>
    %216 = math.exp %215 : vector<8x128xf32>
    %cst_71 = arith.constant 1.000000e+00 : f32
    %217 = vector.broadcast %cst_71 : f32 to vector<8x128xf32>
    %218 = arith.addf %217, %216 : vector<8x128xf32>
    %219 = arith.divf %217, %218 : vector<8x128xf32>
    %220 = arith.mulf %211, %193 : vector<8x128xf32>
    %221 = arith.mulf %205, %213 : vector<8x128xf32>
    %222 = arith.addf %220, %221 : vector<8x128xf32>
    %223 = math.tanh %222 : vector<8x128xf32>
    %224 = arith.mulf %219, %223 : vector<8x128xf32>
    %c8_i32_72 = arith.constant 8 : i32
    %225 = arith.muli %arg0, %c8_i32_72 : i32
    %226 = arith.addi %225, %c5_i32 : i32
    %c8_i32_73 = arith.constant 8 : i32
    %227 = arith.cmpi slt, %226, %c8_i32_73 : i32
    %228 = arith.select %227, %224, %192 : vector<8x128xf32>
    %229 = arith.select %227, %222, %193 : vector<8x128xf32>
    %c6_i32 = arith.constant 6 : i32
    %230 = arith.index_cast %c6_i32 : i32 to index
    %c0_74 = arith.constant 0 : index
    %c0_75 = arith.constant 0 : index
    %231 = vector.load %arg10[%230, %c0_74, %c0_75] : memref<8x8x512xf32, #tpu.memory_space<vmem>>, vector<1x8x512xf32>
    %232 = vector.shape_cast %231 : vector<1x8x512xf32> to vector<8x512xf32>
    %c0_76 = arith.constant 0 : index
    %c0_77 = arith.constant 0 : index
    %233 = vector.load %arg3[%c0_76, %c0_77] : memref<128x512xf32, #tpu.memory_space<vmem>>, vector<128x512xf32>
    %cst_78 = arith.constant dense<0.000000e+00> : vector<8x512xf32>
    %234 = tpu.matmul %228, %233, %cst_78 {dimension_numbers = #tpu.dot_dimension_numbers<[1], [0], [0], [1], [0, 0, 1, 1], [], []>} : vector<8x128xf32>, vector<128x512xf32>, vector<8x512xf32> -> vector<8x512xf32>
    %235 = arith.addf %232, %234 : vector<8x512xf32>
    %236 = vector.extract_strided_slice %235 {offsets = [0, 0], sizes = [8, 128], strides = [1, 1]} : vector<8x512xf32> to vector<8x128xf32>
    %237 = arith.negf %236 : vector<8x128xf32>
    %238 = math.exp %237 : vector<8x128xf32>
    %cst_79 = arith.constant 1.000000e+00 : f32
    %239 = vector.broadcast %cst_79 : f32 to vector<8x128xf32>
    %240 = arith.addf %239, %238 : vector<8x128xf32>
    %241 = arith.divf %239, %240 : vector<8x128xf32>
    %242 = vector.extract_strided_slice %235 {offsets = [0, 128], sizes = [8, 128], strides = [1, 1]} : vector<8x512xf32> to vector<8x128xf32>
    %243 = arith.negf %242 : vector<8x128xf32>
    %244 = math.exp %243 : vector<8x128xf32>
    %cst_80 = arith.constant 1.000000e+00 : f32
    %245 = vector.broadcast %cst_80 : f32 to vector<8x128xf32>
    %246 = arith.addf %245, %244 : vector<8x128xf32>
    %247 = arith.divf %245, %246 : vector<8x128xf32>
    %248 = vector.extract_strided_slice %235 {offsets = [0, 256], sizes = [8, 128], strides = [1, 1]} : vector<8x512xf32> to vector<8x128xf32>
    %249 = math.tanh %248 : vector<8x128xf32>
    %250 = vector.extract_strided_slice %235 {offsets = [0, 384], sizes = [8, 128], strides = [1, 1]} : vector<8x512xf32> to vector<8x128xf32>
    %251 = arith.negf %250 : vector<8x128xf32>
    %252 = math.exp %251 : vector<8x128xf32>
    %cst_81 = arith.constant 1.000000e+00 : f32
    %253 = vector.broadcast %cst_81 : f32 to vector<8x128xf32>
    %254 = arith.addf %253, %252 : vector<8x128xf32>
    %255 = arith.divf %253, %254 : vector<8x128xf32>
    %256 = arith.mulf %247, %229 : vector<8x128xf32>
    %257 = arith.mulf %241, %249 : vector<8x128xf32>
    %258 = arith.addf %256, %257 : vector<8x128xf32>
    %259 = math.tanh %258 : vector<8x128xf32>
    %260 = arith.mulf %255, %259 : vector<8x128xf32>
    %c8_i32_82 = arith.constant 8 : i32
    %261 = arith.muli %arg0, %c8_i32_82 : i32
    %262 = arith.addi %261, %c6_i32 : i32
    %c8_i32_83 = arith.constant 8 : i32
    %263 = arith.cmpi slt, %262, %c8_i32_83 : i32
    %264 = arith.select %263, %260, %228 : vector<8x128xf32>
    %265 = arith.select %263, %258, %229 : vector<8x128xf32>
    %c7_i32 = arith.constant 7 : i32
    %266 = arith.index_cast %c7_i32 : i32 to index
    %c0_84 = arith.constant 0 : index
    %c0_85 = arith.constant 0 : index
    %267 = vector.load %arg10[%266, %c0_84, %c0_85] : memref<8x8x512xf32, #tpu.memory_space<vmem>>, vector<1x8x512xf32>
    %268 = vector.shape_cast %267 : vector<1x8x512xf32> to vector<8x512xf32>
    %c0_86 = arith.constant 0 : index
    %c0_87 = arith.constant 0 : index
    %269 = vector.load %arg3[%c0_86, %c0_87] : memref<128x512xf32, #tpu.memory_space<vmem>>, vector<128x512xf32>
    %cst_88 = arith.constant dense<0.000000e+00> : vector<8x512xf32>
    %270 = tpu.matmul %264, %269, %cst_88 {dimension_numbers = #tpu.dot_dimension_numbers<[1], [0], [0], [1], [0, 0, 1, 1], [], []>} : vector<8x128xf32>, vector<128x512xf32>, vector<8x512xf32> -> vector<8x512xf32>
    %271 = arith.addf %268, %270 : vector<8x512xf32>
    %272 = vector.extract_strided_slice %271 {offsets = [0, 0], sizes = [8, 128], strides = [1, 1]} : vector<8x512xf32> to vector<8x128xf32>
    %273 = arith.negf %272 : vector<8x128xf32>
    %274 = math.exp %273 : vector<8x128xf32>
    %cst_89 = arith.constant 1.000000e+00 : f32
    %275 = vector.broadcast %cst_89 : f32 to vector<8x128xf32>
    %276 = arith.addf %275, %274 : vector<8x128xf32>
    %277 = arith.divf %275, %276 : vector<8x128xf32>
    %278 = vector.extract_strided_slice %271 {offsets = [0, 128], sizes = [8, 128], strides = [1, 1]} : vector<8x512xf32> to vector<8x128xf32>
    %279 = arith.negf %278 : vector<8x128xf32>
    %280 = math.exp %279 : vector<8x128xf32>
    %cst_90 = arith.constant 1.000000e+00 : f32
    %281 = vector.broadcast %cst_90 : f32 to vector<8x128xf32>
    %282 = arith.addf %281, %280 : vector<8x128xf32>
    %283 = arith.divf %281, %282 : vector<8x128xf32>
    %284 = vector.extract_strided_slice %271 {offsets = [0, 256], sizes = [8, 128], strides = [1, 1]} : vector<8x512xf32> to vector<8x128xf32>
    %285 = math.tanh %284 : vector<8x128xf32>
    %286 = vector.extract_strided_slice %271 {offsets = [0, 384], sizes = [8, 128], strides = [1, 1]} : vector<8x512xf32> to vector<8x128xf32>
    %287 = arith.negf %286 : vector<8x128xf32>
    %288 = math.exp %287 : vector<8x128xf32>
    %cst_91 = arith.constant 1.000000e+00 : f32
    %289 = vector.broadcast %cst_91 : f32 to vector<8x128xf32>
    %290 = arith.addf %289, %288 : vector<8x128xf32>
    %291 = arith.divf %289, %290 : vector<8x128xf32>
    %292 = arith.mulf %283, %265 : vector<8x128xf32>
    %293 = arith.mulf %277, %285 : vector<8x128xf32>
    %294 = arith.addf %292, %293 : vector<8x128xf32>
    %295 = math.tanh %294 : vector<8x128xf32>
    %296 = arith.mulf %291, %295 : vector<8x128xf32>
    %c8_i32_92 = arith.constant 8 : i32
    %297 = arith.muli %arg0, %c8_i32_92 : i32
    %298 = arith.addi %297, %c7_i32 : i32
    %c8_i32_93 = arith.constant 8 : i32
    %299 = arith.cmpi slt, %298, %c8_i32_93 : i32
    %300 = arith.select %299, %296, %264 : vector<8x128xf32>
    %301 = arith.select %299, %294, %265 : vector<8x128xf32>
    %c8_i32_94 = arith.constant 8 : i32
    %c0_95 = arith.constant 0 : index
    %c0_96 = arith.constant 0 : index
    %302 = vector.load %arg8[%c0_95, %c0_96] : memref<8x128xf32, #tpu.memory_space<vmem>>, vector<8x128xf32>
    tpu.vector_store %arg8[%c0_95, %c0_96], %300 {strides = array<i32>} : memref<8x128xf32, #tpu.memory_space<vmem>>, vector<8x128xf32>,
    %c0_97 = arith.constant 0 : index
    %c0_98 = arith.constant 0 : index
    %303 = vector.load %arg9[%c0_97, %c0_98] : memref<8x128xf32, #tpu.memory_space<vmem>>, vector<8x128xf32>
    tpu.vector_store %arg9[%c0_97, %c0_98], %301 {strides = array<i32>} : memref<8x128xf32, #tpu.memory_space<vmem>>, vector<8x128xf32>,
    %c0_i32_99 = arith.constant 0 : i32
    %304 = arith.cmpi eq, %arg0, %c0_i32_99 : i32
    %305 = arith.extui %304 : i1 to i32
    %c0_i32_100 = arith.constant 0 : i32
    %306 = arith.cmpi ne, %305, %c0_i32_100 : i32
    scf.if %306 {
      %c0_101 = arith.constant 0 : index
      %c0_102 = arith.constant 0 : index
      %307 = vector.load %arg5[%c0_101, %c0_102] : memref<128x128xf32, #tpu.memory_space<vmem>>, vector<128x128xf32>
      %cst_103 = arith.constant dense<0.000000e+00> : vector<8x128xf32>
      %308 = tpu.matmul %300, %307, %cst_103 {dimension_numbers = #tpu.dot_dimension_numbers<[1], [0], [0], [1], [0, 0, 1, 1], [], []>} : vector<8x128xf32>, vector<128x128xf32>, vector<8x128xf32> -> vector<8x128xf32>
      %c0_104 = arith.constant 0 : index
      %c0_105 = arith.constant 0 : index
      %309 = vector.load %arg6[%c0_104, %c0_105] : memref<1x128xf32, #tpu.memory_space<vmem>>, vector<1x128xf32>
      %310 = vector.broadcast %309 : vector<1x128xf32> to vector<8x128xf32>
      %311 = arith.addf %308, %310 : vector<8x128xf32>
      %c0_106 = arith.constant 0 : index
      %c0_107 = arith.constant 0 : index
      %312 = vector.load %arg7[%c0_106, %c0_107] : memref<8x128xf32, #tpu.memory_space<vmem>>, vector<8x128xf32>
      tpu.vector_store %arg7[%c0_106, %c0_107], %311 {strides = array<i32>} : memref<8x128xf32, #tpu.memory_space<vmem>>, vector<8x128xf32>,
    } else {
    }
    return
  }
  func.func @transform_0(%arg0: i32) -> (i32, i32, i32) {
    %c0_i32 = arith.constant 0 : i32
    %c0_i32_0 = arith.constant 0 : i32
    %c0_i32_1 = arith.constant 0 : i32
    return %arg0, %c0_i32, %c0_i32_0 : i32, i32, i32
  }
  func.func @transform_1(%arg0: i32) -> (i32, i32) {
    %c0_i32 = arith.constant 0 : i32
    %c0_i32_0 = arith.constant 0 : i32
    %c0_i32_1 = arith.constant 0 : i32
    return %c0_i32, %c0_i32_0 : i32, i32
  }
  func.func @transform_2(%arg0: i32) -> (i32, i32) {
    %c0_i32 = arith.constant 0 : i32
    %c0_i32_0 = arith.constant 0 : i32
    %c0_i32_1 = arith.constant 0 : i32
    return %c0_i32, %c0_i32_0 : i32, i32
  }
  func.func @transform_3(%arg0: i32) -> (i32, i32) {
    %c0_i32 = arith.constant 0 : i32
    %c0_i32_0 = arith.constant 0 : i32
    %c0_i32_1 = arith.constant 0 : i32
    return %c0_i32, %c0_i32_0 : i32, i32
  }
  func.func @transform_4(%arg0: i32) -> (i32, i32) {
    %c0_i32 = arith.constant 0 : i32
    %c0_i32_0 = arith.constant 0 : i32
    %c0_i32_1 = arith.constant 0 : i32
    return %c0_i32, %c0_i32_0 : i32, i32
  }
  func.func @transform_5(%arg0: i32) -> (i32, i32) {
    %c0_i32 = arith.constant 0 : i32
    %c0_i32_0 = arith.constant 0 : i32
    %c0_i32_1 = arith.constant 0 : i32
    return %c0_i32, %c0_i32_0 : i32, i32
  }
  func.func @transform_6(%arg0: i32) -> (i32, i32) {
    %c0_i32 = arith.constant 0 : i32
    %c0_i32_0 = arith.constant 0 : i32
    %c0_i32_1 = arith.constant 0 : i32
    return %c0_i32, %c0_i32_0 : i32, i32
  }
}

</mosaic_0001>

<bundles_post_ra>
// kernel: lstm_model_forward.1
= control target key start
LH: loop header
LB: loop body
LE: loop exit
PB: predicated region body
PF: predicated region fallthrough
CT: control target
= control target key end

     0   :  { %s3501_s1 = inlined_call_operand.vmem [shape: f32[128,512], index: 1, kind: input, shape index: {}]   ;;  %s3502_s0 = inlined_call_operand.vmem [shape: f32[8,8,128], index: 0, kind: input, shape index: {}]   ;;  %s3503_s2 = inlined_call_operand.vmem [shape: f32[128,512], index: 2, kind: input, shape index: {}]   ;;  %s3504_s3 = inlined_call_operand.vmem [shape: f32[1,512], index: 3, kind: input, shape index: {}]   ;;  %s3505_s5 = inlined_call_operand.vmem [shape: f32[1,128], index: 5, kind: input, shape index: {}]   ;;  %s3506_s4 = inlined_call_operand.vmem [shape: f32[128,128], index: 4, kind: input, shape index: {}]   ;;  %s3507_s6 = inlined_call_operand.vmem [shape: f32[8,128], index: 6, kind: output, shape index: {}]  }
   0x1   :  { %v97_v0 = vld [vmem:[%s3501_s1 + $0x1e0] sm:$0xff]  ;;  %v98_v1 = vld [vmem:[%s3501_s1 + $0x1e8] sm:$0xff]  ;;  %v99_v2 = vld [vmem:[%s3501_s1 + $0x1f0] sm:$0xff] }
   0x2   :  { %111 = vmatpush.msra.mxu0 %v97_v0  ;;  %152 = vmatpush.msra.mxu1 %v98_v1  ;;  %v100_v3 = vld [vmem:[%s3501_s1 + $0x1f8] sm:$0xff]  ;;  %v93_v4 = vld [vmem:[%s3501_s1 + $0x1c0] sm:$0xff]  ;;  %v94_v5 = vld [vmem:[%s3501_s1 + $0x1c8] sm:$0xff] }
   0x3   :  { %193 = vmatpush.msra.mxu2 %v99_v2  ;;  %234 = vmatpush.msra.mxu3 %v100_v3  ;;  %v95_v6 = vld [vmem:[%s3501_s1 + $0x1d0] sm:$0xff]  ;;  %v96_v7 = vld [vmem:[%s3501_s1 + $0x1d8] sm:$0xff]  ;;  %v89_v8 = vld [vmem:[%s3501_s1 + $0x1a0] sm:$0xff] }
   0x4   :  { %112 = vmatpush.msra.mxu0 %v93_v4  ;;  %153 = vmatpush.msra.mxu1 %v94_v5  ;;  %v90_v9 = vld [vmem:[%s3501_s1 + $0x1a8] sm:$0xff]  ;;  %v91_v10 = vld [vmem:[%s3501_s1 + $0x1b0] sm:$0xff]  ;;  %v92_v11 = vld [vmem:[%s3501_s1 + $0x1b8] sm:$0xff] }
   0x5   :  { %194 = vmatpush.msra.mxu2 %v95_v6  ;;  %235 = vmatpush.msra.mxu3 %v96_v7  ;;  %v85_v12 = vld [vmem:[%s3501_s1 + $0x180] sm:$0xff]  ;;  %v86_v13 = vld [vmem:[%s3501_s1 + $0x188] sm:$0xff]  ;;  %v87_v14 = vld [vmem:[%s3501_s1 + $0x190] sm:$0xff] }
   0x6   :  { %113 = vmatpush.msra.mxu0 %v89_v8  ;;  %154 = vmatpush.msra.mxu1 %v90_v9  ;;  %v88_v15 = vld [vmem:[%s3501_s1 + $0x198] sm:$0xff]  ;;  %v81_v16 = vld [vmem:[%s3501_s1 + $0x160] sm:$0xff]  ;;  %v82_v17 = vld [vmem:[%s3501_s1 + $0x168] sm:$0xff] }
   0x7   :  { %195 = vmatpush.msra.mxu2 %v91_v10  ;;  %236 = vmatpush.msra.mxu3 %v92_v11  ;;  %v83_v18 = vld [vmem:[%s3501_s1 + $0x170] sm:$0xff]  ;;  %v84_v19 = vld [vmem:[%s3501_s1 + $0x178] sm:$0xff]  ;;  %v77_v20 = vld [vmem:[%s3501_s1 + $0x140] sm:$0xff] }
   0x8   :  { %114 = vmatpush.msra.mxu0 %v85_v12  ;;  %155 = vmatpush.msra.mxu1 %v86_v13  ;;  %v78_v21 = vld [vmem:[%s3501_s1 + $0x148] sm:$0xff]  ;;  %v79_v22 = vld [vmem:[%s3501_s1 + $0x150] sm:$0xff]  ;;  %v80_v23 = vld [vmem:[%s3501_s1 + $0x158] sm:$0xff] }
   0x9   :  { %196 = vmatpush.msra.mxu2 %v87_v14  ;;  %237 = vmatpush.msra.mxu3 %v88_v15  ;;  %v73_v24 = vld [vmem:[%s3501_s1 + $0x120] sm:$0xff]  ;;  %v74_v25 = vld [vmem:[%s3501_s1 + $0x128] sm:$0xff]  ;;  %v75_v26 = vld [vmem:[%s3501_s1 + $0x130] sm:$0xff] }
   0xa   :  { %115 = vmatpush.msra.mxu0 %v81_v16  ;;  %156 = vmatpush.msra.mxu1 %v82_v17  ;;  %v76_v27 = vld [vmem:[%s3501_s1 + $0x138] sm:$0xff]  ;;  %v69_v28 = vld [vmem:[%s3501_s1 + $0x100] sm:$0xff]  ;;  %v70_v29 = vld [vmem:[%s3501_s1 + $0x108] sm:$0xff] }
   0xb   :  { %197 = vmatpush.msra.mxu2 %v83_v18  ;;  %238 = vmatpush.msra.mxu3 %v84_v19  ;;  %v71_v30 = vld [vmem:[%s3501_s1 + $0x110] sm:$0xff]  ;;  %v72_v31 = vld [vmem:[%s3501_s1 + $0x118] sm:$0xff]  ;;  %v65_v32 = vld [vmem:[%s3501_s1 + $0xe0] sm:$0xff] }
   0xc   :  { %116 = vmatpush.msra.mxu0 %v77_v20  ;;  %157 = vmatpush.msra.mxu1 %v78_v21  ;;  %v66_v33 = vld [vmem:[%s3501_s1 + $0xe8] sm:$0xff]  ;;  %v67_v34 = vld [vmem:[%s3501_s1 + $0xf0] sm:$0xff]  ;;  %v68_v35 = vld [vmem:[%s3501_s1 + $0xf8] sm:$0xff] }
   0xd   :  { %198 = vmatpush.msra.mxu2 %v79_v22  ;;  %239 = vmatpush.msra.mxu3 %v80_v23  ;;  %v61_v36 = vld [vmem:[%s3501_s1 + $0xc0] sm:$0xff]  ;;  %v62_v37 = vld [vmem:[%s3501_s1 + $0xc8] sm:$0xff]  ;;  %v63_v38 = vld [vmem:[%s3501_s1 + $0xd0] sm:$0xff] }
   0xe   :  { %117 = vmatpush.msra.mxu0 %v73_v24  ;;  %158 = vmatpush.msra.mxu1 %v74_v25  ;;  %v64_v39 = vld [vmem:[%s3501_s1 + $0xd8] sm:$0xff]  ;;  %v57_v40 = vld [vmem:[%s3501_s1 + $0xa0] sm:$0xff]  ;;  %v58_v41 = vld [vmem:[%s3501_s1 + $0xa8] sm:$0xff] }
   0xf   :  { %199 = vmatpush.msra.mxu2 %v75_v26  ;;  %240 = vmatpush.msra.mxu3 %v76_v27  ;;  %v59_v42 = vld [vmem:[%s3501_s1 + $0xb0] sm:$0xff]  ;;  %v60_v43 = vld [vmem:[%s3501_s1 + $0xb8] sm:$0xff]  ;;  %v53_v44 = vld [vmem:[%s3501_s1 + $0x80] sm:$0xff] }
  0x10   :  { %118 = vmatpush.msra.mxu0 %v69_v28  ;;  %159 = vmatpush.msra.mxu1 %v70_v29  ;;  %v54_v45 = vld [vmem:[%s3501_s1 + $0x88] sm:$0xff]  ;;  %v55_v46 = vld [vmem:[%s3501_s1 + $0x90] sm:$0xff]  ;;  %v56_v47 = vld [vmem:[%s3501_s1 + $0x98] sm:$0xff] }
  0x11   :  { %200 = vmatpush.msra.mxu2 %v71_v30  ;;  %241 = vmatpush.msra.mxu3 %v72_v31  ;;  %v49_v48 = vld [vmem:[%s3501_s1 + $0x60] sm:$0xff]  ;;  %v50_v49 = vld [vmem:[%s3501_s1 + $0x68] sm:$0xff]  ;;  %v51_v50 = vld [vmem:[%s3501_s1 + $0x70] sm:$0xff] }
  0x12   :  { %119 = vmatpush.msra.mxu0 %v65_v32  ;;  %160 = vmatpush.msra.mxu1 %v66_v33  ;;  %v52_v51 = vld [vmem:[%s3501_s1 + $0x78] sm:$0xff]  ;;  %v45_v52 = vld [vmem:[%s3501_s1 + $0x40] sm:$0xff]  ;;  %v46_v53 = vld [vmem:[%s3501_s1 + $0x48] sm:$0xff] }
  0x13   :  { %201 = vmatpush.msra.mxu2 %v67_v34  ;;  %242 = vmatpush.msra.mxu3 %v68_v35  ;;  %v47_v54 = vld [vmem:[%s3501_s1 + $0x50] sm:$0xff]  ;;  %v48_v55 = vld [vmem:[%s3501_s1 + $0x58] sm:$0xff]  ;;  %v41_v56 = vld [vmem:[%s3501_s1 + $0x20] sm:$0xff] }
  0x14   :  { %120 = vmatpush.msra.mxu0 %v61_v36  ;;  %161 = vmatpush.msra.mxu1 %v62_v37  ;;  %v42_v57 = vld [vmem:[%s3501_s1 + $0x28] sm:$0xff]  ;;  %v43_v58 = vld [vmem:[%s3501_s1 + $0x30] sm:$0xff]  ;;  %v44_v59 = vld [vmem:[%s3501_s1 + $0x38] sm:$0xff] }
  0x15   :  { %202 = vmatpush.msra.mxu2 %v63_v38  ;;  %243 = vmatpush.msra.mxu3 %v64_v39  ;;  %v37_v60 = vld [vmem:[%s3501_s1] sm:$0xff]  ;;  %v38_v61 = vld [vmem:[%s3501_s1 + $0x8] sm:$0xff]  ;;  %v39_v62 = vld [vmem:[%s3501_s1 + $0x10] sm:$0xff] }
  0x16   :  { %121 = vmatpush.msra.mxu0 %v57_v40  ;;  %162 = vmatpush.msra.mxu1 %v58_v41  ;;  %v40_v63 = vld [vmem:[%s3501_s1 + $0x18] sm:$0xff]  ;;  %v29_v0 = vld [vmem:[%s3502_s0] sm:$0xff]  ;;  %v2151_v2 = vld [vmem:[%s3503_s2 + $0x1e8] sm:$0xff] }
  0x17   :  { %203 = vmatpush.msra.mxu2 %v59_v42  ;;  %244 = vmatpush.msra.mxu3 %v60_v43  ;;  %v2146_v1 = vld [vmem:[%s3503_s2 + $0x1e0] sm:$0xff]  ;;  %v2156_v3 = vld [vmem:[%s3503_s2 + $0x1f8] sm:$0xff]  ;;  %v2161_v4 = vld [vmem:[%s3503_s2 + $0x1f0] sm:$0xff] }
  0x18   :  { %122 = vmatpush.msra.mxu0 %v53_v44  ;;  %163 = vmatpush.msra.mxu1 %v54_v45  ;;  %v2166_v5 = vld [vmem:[%s3503_s2 + $0x1c0] sm:$0xff]  ;;  %v2171_v6 = vld [vmem:[%s3503_s2 + $0x1c8] sm:$0xff]  ;;  %v2178_v7 = vld [vmem:[%s3503_s2 + $0x1d8] sm:$0xff] }
  0x19   :  { %204 = vmatpush.msra.mxu2 %v55_v46  ;;  %245 = vmatpush.msra.mxu3 %v56_v47  ;;  %v2183_v8 = vld [vmem:[%s3503_s2 + $0x1d0] sm:$0xff]  ;;  %v2189_v9 = vld [vmem:[%s3503_s2 + $0x1a0] sm:$0xff]  ;;  %v2194_v10 = vld [vmem:[%s3503_s2 + $0x1a8] sm:$0xff] }
  0x1a   :  { %123 = vmatpush.msra.mxu0 %v49_v48  ;;  %164 = vmatpush.msra.mxu1 %v50_v49  ;;  %v2202_v11 = vld [vmem:[%s3503_s2 + $0x1b8] sm:$0xff]  ;;  %v2207_v12 = vld [vmem:[%s3503_s2 + $0x1b0] sm:$0xff]  ;;  %v30_v13 = vld [vmem:[%s3502_s0 + $0x8] sm:$0xff] }
  0x1b   :  { %205 = vmatpush.msra.mxu2 %v51_v50  ;;  %246 = vmatpush.msra.mxu3 %v52_v51  ;;  %v2219_v14 = vld [vmem:[%s3503_s2 + $0x180] sm:$0xff]  ;;  %v2224_v15 = vld [vmem:[%s3503_s2 + $0x188] sm:$0xff]  ;;  %v2231_v16 = vld [vmem:[%s3503_s2 + $0x198] sm:$0xff] }
  0x1c   :  { %124 = vmatpush.msra.mxu0 %v45_v52  ;;  %165 = vmatpush.msra.mxu1 %v46_v53  ;;  %v2236_v17 = vld [vmem:[%s3503_s2 + $0x190] sm:$0xff]  ;;  %v2241_v18 = vld [vmem:[%s3503_s2 + $0x160] sm:$0xff]  ;;  %v2246_v19 = vld [vmem:[%s3503_s2 + $0x168] sm:$0xff] }
  0x1d   :  { %206 = vmatpush.msra.mxu2 %v47_v54  ;;  %247 = vmatpush.msra.mxu3 %v48_v55  ;;  %v2253_v20 = vld [vmem:[%s3503_s2 + $0x178] sm:$0xff]  ;;  %v2258_v21 = vld [vmem:[%s3503_s2 + $0x170] sm:$0xff]  ;;  %v2264_v22 = vld [vmem:[%s3503_s2 + $0x140] sm:$0xff] }
  0x1e   :  { %125 = vmatpush.msra.mxu0 %v41_v56  ;;  %166 = vmatpush.msra.mxu1 %v42_v57  ;;  %v2269_v23 = vld [vmem:[%s3503_s2 + $0x148] sm:$0xff]  ;;  %v2277_v24 = vld [vmem:[%s3503_s2 + $0x158] sm:$0xff]  ;;  %v2282_v25 = vld [vmem:[%s3503_s2 + $0x150] sm:$0xff] }
  0x1f   :  { %207 = vmatpush.msra.mxu2 %v43_v58  ;;  %248 = vmatpush.msra.mxu3 %v44_v59  ;;  %v31_v26 = vld [vmem:[%s3502_s0 + $0x10] sm:$0xff]  ;;  %v2294_v27 = vld [vmem:[%s3503_s2 + $0x120] sm:$0xff]  ;;  %v2299_v28 = vld [vmem:[%s3503_s2 + $0x128] sm:$0xff] }
  0x20   :  { %126 = vmatpush.msra.mxu0 %v37_v60  ;;  %167 = vmatpush.msra.mxu1 %v38_v61  ;;  %v2306_v29 = vld [vmem:[%s3503_s2 + $0x138] sm:$0xff]  ;;  %v2311_v30 = vld [vmem:[%s3503_s2 + $0x130] sm:$0xff]  ;;  %v2316_v31 = vld [vmem:[%s3503_s2 + $0x100] sm:$0xff] }
  0x21   :  { %208 = vmatpush.msra.mxu2 %v39_v62  ;;  %249 = vmatpush.msra.mxu3 %v40_v63  ;;  %v2321_v32 = vld [vmem:[%s3503_s2 + $0x108] sm:$0xff]  ;;  %v2328_v33 = vld [vmem:[%s3503_s2 + $0x118] sm:$0xff]  ;;  %v2333_v34 = vld [vmem:[%s3503_s2 + $0x110] sm:$0xff] }
  0x22   :  { %127 = vmatmul.f32.vlgmr.msra.gmra.mxu0 %v29_v0  ;;  %168 = vmatmul.f32.vlgmr.msra.gmra.mxu1 %v29_v0  ;;  %v2339_v35 = vld [vmem:[%s3503_s2 + $0xe0] sm:$0xff]  ;;  %v2344_v36 = vld [vmem:[%s3503_s2 + $0xe8] sm:$0xff]  ;;  %v2352_v37 = vld [vmem:[%s3503_s2 + $0xf8] sm:$0xff] }
  0x23   :  { %209 = vmatmul.f32.vlgmr.msra.gmra.mxu2 %v29_v0  ;;  %250 = vmatmul.f32.vlgmr.msra.gmra.mxu3 %v29_v0  ;;  %v2357_v38 = vld [vmem:[%s3503_s2 + $0xf0] sm:$0xff]  ;;  %v32_v39 = vld [vmem:[%s3502_s0 + $0x18] sm:$0xff]  ;;  %v2369_v40 = vld [vmem:[%s3503_s2 + $0xc0] sm:$0xff] }
  0x24   :  { %377 = vmatpush.msrb.mxu0 %v2146_v1  ;;  %397 = vmatpush.msrb.mxu1 %v2151_v2  ;;  %v2374_v41 = vld [vmem:[%s3503_s2 + $0xc8] sm:$0xff]  ;;  %v2381_v42 = vld [vmem:[%s3503_s2 + $0xd8] sm:$0xff]  ;;  %v2386_v43 = vld [vmem:[%s3503_s2 + $0xd0] sm:$0xff] }
  0x25   :  { %437 = vmatpush.msrb.mxu3 %v2156_v3  ;;  %417 = vmatpush.msrb.mxu2 %v2161_v4  ;;  %3595 = vst [vmem:[#allocation5_spill] sm:$0xff] %v2381_v42  ;;  %v2391_v44 = vld [vmem:[%s3503_s2 + $0xa0] sm:$0xff]  ;;  %v2396_v45 = vld [vmem:[%s3503_s2 + $0xa8] sm:$0xff]  ;;  %v2403_v46 = vld [vmem:[%s3503_s2 + $0xb8] sm:$0xff] }
  0x26   :  { %378 = vmatpush.msrb.mxu0 %v2166_v5  ;;  %398 = vmatpush.msrb.mxu1 %v2171_v6  ;;  %3596 = vst [vmem:[#allocation6_spill] sm:$0xff] %v2386_v43  ;;  %v2408_v47 = vld [vmem:[%s3503_s2 + $0xb0] sm:$0xff]  ;;  %v2414_v48 = vld [vmem:[%s3503_s2 + $0x80] sm:$0xff]  ;;  %v2419_v49 = vld [vmem:[%s3503_s2 + $0x88] sm:$0xff] }
  0x27   :  { %438 = vmatpush.msrb.mxu3 %v2178_v7  ;;  %418 = vmatpush.msrb.mxu2 %v2183_v8  ;;  %3597 = vst [vmem:[#allocation7_spill] sm:$0xff] %v2391_v44  ;;  %v2427_v50 = vld [vmem:[%s3503_s2 + $0x98] sm:$0xff]  ;;  %v2432_v51 = vld [vmem:[%s3503_s2 + $0x90] sm:$0xff]  ;;  %v33_v52 = vld [vmem:[%s3502_s0 + $0x20] sm:$0xff] }
  0x28   :  { %379 = vmatpush.msrb.mxu0 %v2189_v9  ;;  %399 = vmatpush.msrb.mxu1 %v2194_v10  ;;  %3598 = vst [vmem:[#allocation8_spill] sm:$0xff] %v2396_v45  ;;  %v2444_v53 = vld [vmem:[%s3503_s2 + $0x60] sm:$0xff]  ;;  %v2449_v54 = vld [vmem:[%s3503_s2 + $0x68] sm:$0xff]  ;;  %v2456_v55 = vld [vmem:[%s3503_s2 + $0x78] sm:$0xff] }
  0x29   :  { %439 = vmatpush.msrb.mxu3 %v2202_v11  ;;  %419 = vmatpush.msrb.mxu2 %v2207_v12  ;;  %3599 = vst [vmem:[#allocation9_spill] sm:$0xff] %v2403_v46  ;;  %v2461_v56 = vld [vmem:[%s3503_s2 + $0x70] sm:$0xff]  ;;  %v2466_v57 = vld [vmem:[%s3503_s2 + $0x40] sm:$0xff]  ;;  %v2471_v58 = vld [vmem:[%s3503_s2 + $0x48] sm:$0xff] }
  0x2a   :  { %130 = vmatmul.f32.gmra.mxu0 %v30_v13  ;;  %171 = vmatmul.f32.gmra.mxu1 %v30_v13  ;;  %3600 = vst [vmem:[#allocation10_spill] sm:$0xff] %v2408_v47  ;;  %v2478_v59 = vld [vmem:[%s3503_s2 + $0x58] sm:$0xff]  ;;  %v2483_v60 = vld [vmem:[%s3503_s2 + $0x50] sm:$0xff]  ;;  %v2489_v61 = vld [vmem:[%s3503_s2 + $0x20] sm:$0xff] }
  0x2b   :  { %212 = vmatmul.f32.gmra.mxu2 %v30_v13  ;;  %253 = vmatmul.f32.gmra.mxu3 %v30_v13  ;;  %3601 = vst [vmem:[#allocation11_spill] sm:$0xff] %v2414_v48  ;;  %v2494_v62 = vld [vmem:[%s3503_s2 + $0x28] sm:$0xff]  ;;  %v2502_v63 = vld [vmem:[%s3503_s2 + $0x30] sm:$0xff]  ;;  %v2507_v0 = vld [vmem:[%s3503_s2 + $0x38] sm:$0xff] }
  0x2c   :  { %380 = vmatpush.msrb.mxu0 %v2219_v14  ;;  %400 = vmatpush.msrb.mxu1 %v2224_v15  ;;  %3602 = vst [vmem:[#allocation12_spill] sm:$0xff] %v2419_v49  ;;  %v34_v13 = vld [vmem:[%s3502_s0 + $0x28] sm:$0xff] }
  0x2d   :  { %440 = vmatpush.msrb.mxu3 %v2231_v16  ;;  %420 = vmatpush.msrb.mxu2 %v2236_v17  ;;  %3603 = vst [vmem:[#allocation13_spill] sm:$0xff] %v2427_v50 }
  0x2e   :  { %381 = vmatpush.msrb.mxu0 %v2241_v18  ;;  %401 = vmatpush.msrb.mxu1 %v2246_v19  ;;  %3604 = vst [vmem:[#allocation14_spill] sm:$0xff] %v2432_v51 }
  0x2f   :  { %441 = vmatpush.msrb.mxu3 %v2253_v20  ;;  %421 = vmatpush.msrb.mxu2 %v2258_v21  ;;  %3605 = vst [vmem:[#allocation15_spill] sm:$0xff] %v2444_v53 }
  0x30   :  { %382 = vmatpush.msrb.mxu0 %v2264_v22  ;;  %402 = vmatpush.msrb.mxu1 %v2269_v23  ;;  %3606 = vst [vmem:[#allocation16_spill] sm:$0xff] %v2449_v54 }
  0x31   :  { %442 = vmatpush.msrb.mxu3 %v2277_v24  ;;  %422 = vmatpush.msrb.mxu2 %v2282_v25  ;;  %3607 = vst [vmem:[#allocation17_spill] sm:$0xff] %v2456_v55 }
  0x32   :  { %133 = vmatmul.f32.gmra.mxu0 %v31_v26  ;;  %174 = vmatmul.f32.gmra.mxu1 %v31_v26  ;;  %3608 = vst [vmem:[#allocation18_spill] sm:$0xff] %v2461_v56 }
  0x33   :  { %215 = vmatmul.f32.gmra.mxu2 %v31_v26  ;;  %256 = vmatmul.f32.gmra.mxu3 %v31_v26  ;;  %3609 = vst [vmem:[#allocation19_spill] sm:$0xff] %v2466_v57  ;;  %v2519_v26 = vld [vmem:[%s3503_s2] sm:$0xff] }
  0x34   :  { %383 = vmatpush.msrb.mxu0 %v2294_v27  ;;  %403 = vmatpush.msrb.mxu1 %v2299_v28  ;;  %3610 = vst [vmem:[#allocation20_spill] sm:$0xff] %v2471_v58 }
  0x35   :  { %443 = vmatpush.msrb.mxu3 %v2306_v29  ;;  %423 = vmatpush.msrb.mxu2 %v2311_v30  ;;  %3611 = vst [vmem:[#allocation21_spill] sm:$0xff] %v2478_v59 }
  0x36   :  { %384 = vmatpush.msrb.mxu0 %v2316_v31  ;;  %404 = vmatpush.msrb.mxu1 %v2321_v32  ;;  %3612 = vst [vmem:[#allocation22_spill] sm:$0xff] %v2483_v60 }
  0x37   :  { %444 = vmatpush.msrb.mxu3 %v2328_v33  ;;  %424 = vmatpush.msrb.mxu2 %v2333_v34  ;;  %3613 = vst [vmem:[#allocation23_spill] sm:$0xff] %v2489_v61 }
  0x38   :  { %385 = vmatpush.msrb.mxu0 %v2339_v35  ;;  %405 = vmatpush.msrb.mxu1 %v2344_v36  ;;  %3614 = vst [vmem:[#allocation24_spill] sm:$0xff] %v2494_v62 }
  0x39   :  { %445 = vmatpush.msrb.mxu3 %v2352_v37  ;;  %425 = vmatpush.msrb.mxu2 %v2357_v38  ;;  %3615 = vst [vmem:[#allocation25_spill] sm:$0xff] %v2502_v63 }
  0x3a   :  { %136 = vmatmul.f32.gmra.mxu0 %v32_v39  ;;  %177 = vmatmul.f32.gmra.mxu1 %v32_v39  ;;  %3616 = vst [vmem:[#allocation26_spill] sm:$0xff] %v2507_v0 }
  0x3b   :  { %218 = vmatmul.f32.gmra.mxu2 %v32_v39  ;;  %259 = vmatmul.f32.gmra.mxu3 %v32_v39  ;;  %3617 = vst [vmem:[#allocation27_spill] sm:$0xff] %v2519_v26  ;;  %v2524_v39 = vld [vmem:[%s3503_s2 + $0x8] sm:$0xff] }
  0x3c   :  { %386 = vmatpush.msrb.mxu0 %v2369_v40  ;;  %406 = vmatpush.msrb.mxu1 %v2374_v41  ;;  %3618 = vst [vmem:[#allocation28_spill] sm:$0xff] %v2524_v39 }
  0x3d   :  { %446 = vmatpush.msrb.mxu3 %v2381_v42  ;;  %426 = vmatpush.msrb.mxu2 %v2386_v43 }
  0x3e   :  { %387 = vmatpush.msrb.mxu0 %v2391_v44  ;;  %407 = vmatpush.msrb.mxu1 %v2396_v45 }
  0x3f   :  { %447 = vmatpush.msrb.mxu3 %v2403_v46  ;;  %427 = vmatpush.msrb.mxu2 %v2408_v47 }
  0x40   :  { %388 = vmatpush.msrb.mxu0 %v2414_v48  ;;  %408 = vmatpush.msrb.mxu1 %v2419_v49 }
  0x41   :  { %448 = vmatpush.msrb.mxu3 %v2427_v50  ;;  %428 = vmatpush.msrb.mxu2 %v2432_v51 }
  0x42   :  { %139 = vmatmul.f32.gmra.mxu0 %v33_v52  ;;  %180 = vmatmul.f32.gmra.mxu1 %v33_v52 }
  0x43   :  { %221 = vmatmul.f32.gmra.mxu2 %v33_v52  ;;  %262 = vmatmul.f32.gmra.mxu3 %v33_v52  ;;  %v2531_v52 = vld [vmem:[%s3503_s2 + $0x10] sm:$0xff] }
  0x44   :  { %389 = vmatpush.msrb.mxu0 %v2444_v53  ;;  %409 = vmatpush.msrb.mxu1 %v2449_v54  ;;  %3619 = vst [vmem:[#allocation29_spill] sm:$0xff] %v2531_v52 }
  0x45   :  { %449 = vmatpush.msrb.mxu3 %v2456_v55  ;;  %429 = vmatpush.msrb.mxu2 %v2461_v56 }
  0x46   :  { %390 = vmatpush.msrb.mxu0 %v2466_v57  ;;  %410 = vmatpush.msrb.mxu1 %v2471_v58 }
  0x47   :  { %450 = vmatpush.msrb.mxu3 %v2478_v59  ;;  %430 = vmatpush.msrb.mxu2 %v2483_v60 }
  0x48   :  { %391 = vmatpush.msrb.mxu0 %v2489_v61  ;;  %411 = vmatpush.msrb.mxu1 %v2494_v62  ;;  %v2536_v62 = vld [vmem:[%s3503_s2 + $0x18] sm:$0xff] }
  0x49   :  { %431 = vmatpush.msrb.mxu2 %v2502_v63  ;;  %451 = vmatpush.msrb.mxu3 %v2507_v0  ;;  %3620 = vst [vmem:[#allocation30_spill] sm:$0xff] %v2536_v62  ;;  %v35_v0 = vld [vmem:[%s3502_s0 + $0x30] sm:$0xff] }
  0x4a   :  { %142 = vmatmul.f32.gmra.mxu0 %v34_v13  ;;  %183 = vmatmul.f32.gmra.mxu1 %v34_v13 }
  0x4b   :  { %224 = vmatmul.f32.gmra.mxu2 %v34_v13  ;;  %265 = vmatmul.f32.gmra.mxu3 %v34_v13  ;;  %v36_v13 = vld [vmem:[%s3502_s0 + $0x38] sm:$0xff] }
  0x4c   :  { %392 = vmatpush.msrb.mxu0 %v2519_v26  ;;  %412 = vmatpush.msrb.mxu1 %v2524_v39 }
  0x4d   :  { %432 = vmatpush.msrb.mxu2 %v2531_v52  ;;  %452 = vmatpush.msrb.mxu3 %v2536_v62 }
  0x4e   :  { %536 = vmatpush.msra.mxu0 %v2146_v1  ;;  %556 = vmatpush.msra.mxu1 %v2151_v2 }
  0x4f   :  { %576 = vmatpush.msra.mxu2 %v2161_v4  ;;  %596 = vmatpush.msra.mxu3 %v2156_v3 }
  0x50   :  { %537 = vmatpush.msra.mxu0 %v2166_v5  ;;  %557 = vmatpush.msra.mxu1 %v2171_v6 }
  0x51   :  { %577 = vmatpush.msra.mxu2 %v2183_v8  ;;  %597 = vmatpush.msra.mxu3 %v2178_v7 }
  0x52   :  { %145 = vmatmul.f32.gmra.mxu0 %v35_v0  ;;  %186 = vmatmul.f32.gmra.mxu1 %v35_v0 }
  0x53   :  { %227 = vmatmul.f32.gmra.mxu2 %v35_v0  ;;  %268 = vmatmul.f32.gmra.mxu3 %v35_v0  ;;  %v1912_v0 = vmov 0.0  }
  0x54   :  { %538 = vmatpush.msra.mxu0 %v2189_v9  ;;  %558 = vmatpush.msra.mxu1 %v2194_v10 }
  0x55   :  { %578 = vmatpush.msra.mxu2 %v2207_v12  ;;  %598 = vmatpush.msra.mxu3 %v2202_v11 }
  0x56   :  { %539 = vmatpush.msra.mxu0 %v2219_v14  ;;  %559 = vmatpush.msra.mxu1 %v2224_v15 }
  0x57   :  { %579 = vmatpush.msra.mxu2 %v2236_v17  ;;  %599 = vmatpush.msra.mxu3 %v2231_v16 }
  0x58   :  { %540 = vmatpush.msra.mxu0 %v2241_v18  ;;  %560 = vmatpush.msra.mxu1 %v2246_v19 }
  0x59   :  { %580 = vmatpush.msra.mxu2 %v2258_v21  ;;  %600 = vmatpush.msra.mxu3 %v2253_v20 }
  0x5a   :  { %148 = vmatmul.f32.gmra.mxu0 %v36_v13  ;;  %189 = vmatmul.f32.gmra.mxu1 %v36_v13 }
  0x5b   :  { %230 = vmatmul.f32.gmra.mxu2 %v36_v13  ;;  %271 = vmatmul.f32.gmra.mxu3 %v36_v13  ;;  %v3621_v13 = vld [vmem:[#allocation24_spill] sm:$0xff] }
  0x5c   :  { %541 = vmatpush.msra.mxu0 %v2264_v22  ;;  %561 = vmatpush.msra.mxu1 %v2269_v23 }
  0x5d   :  { %581 = vmatpush.msra.mxu2 %v2282_v25  ;;  %601 = vmatpush.msra.mxu3 %v2277_v24 }
  0x5e   :  { %542 = vmatpush.msra.mxu0 %v2294_v27  ;;  %562 = vmatpush.msra.mxu1 %v2299_v28 }
  0x5f   :  { %582 = vmatpush.msra.mxu2 %v2311_v30  ;;  %602 = vmatpush.msra.mxu3 %v2306_v29 }
  0x60   :  { %543 = vmatpush.msra.mxu0 %v2316_v31  ;;  %563 = vmatpush.msra.mxu1 %v2321_v32 }
  0x61   :  { %583 = vmatpush.msra.mxu2 %v2333_v34  ;;  %603 = vmatpush.msra.mxu3 %v2328_v33 }
  0x62   :  { %393 = vmatmul.f32.vlgmr.msrb.gmra.mxu0 %v1912_v0  ;;  %413 = vmatmul.f32.vlgmr.msrb.gmra.mxu1 %v1912_v0 }
  0x63   :  { %433 = vmatmul.f32.vlgmr.msrb.gmra.mxu2 %v1912_v0  ;;  %453 = vmatmul.f32.vlgmr.msrb.gmra.mxu3 %v1912_v0  ;;  %v3622_v0 = vld [vmem:[#allocation26_spill] sm:$0xff] }
  0x64   :  { %544 = vmatpush.msra.mxu0 %v2339_v35  ;;  %564 = vmatpush.msra.mxu1 %v2344_v36 }
  0x65   :  { %584 = vmatpush.msra.mxu2 %v2357_v38  ;;  %604 = vmatpush.msra.mxu3 %v2352_v37 }
  0x66   :  { %545 = vmatpush.msra.mxu0 %v2369_v40  ;;  %565 = vmatpush.msra.mxu1 %v2374_v41 }
  0x67   :  { %585 = vmatpush.msra.mxu2 %v2386_v43  ;;  %605 = vmatpush.msra.mxu3 %v2381_v42 }
  0x68   :  { %546 = vmatpush.msra.mxu0 %v2391_v44  ;;  %566 = vmatpush.msra.mxu1 %v2396_v45 }
  0x69   :  { %586 = vmatpush.msra.mxu2 %v2408_v47  ;;  %606 = vmatpush.msra.mxu3 %v2403_v46 }
  0x6a   :  { %547 = vmatpush.msra.mxu0 %v2414_v48  ;;  %567 = vmatpush.msra.mxu1 %v2419_v49 }
  0x6b   :  { %587 = vmatpush.msra.mxu2 %v2432_v51  ;;  %607 = vmatpush.msra.mxu3 %v2427_v50 }
  0x6c   :  { %548 = vmatpush.msra.mxu0 %v2444_v53  ;;  %568 = vmatpush.msra.mxu1 %v2449_v54 }
  0x6d   :  { %588 = vmatpush.msra.mxu2 %v2461_v56  ;;  %608 = vmatpush.msra.mxu3 %v2456_v55 }
  0x6e   :  { %549 = vmatpush.msra.mxu0 %v2466_v57  ;;  %569 = vmatpush.msra.mxu1 %v2471_v58 }
  0x6f   :  { %589 = vmatpush.msra.mxu2 %v2483_v60  ;;  %609 = vmatpush.msra.mxu3 %v2478_v59 }
  0x70   :  { %550 = vmatpush.msra.mxu0 %v2489_v61  ;;  %570 = vmatpush.msra.mxu1 %v3621_v13 }
  0x71   :  { %590 = vmatpush.msra.mxu2 %v2502_v63  ;;  %610 = vmatpush.msra.mxu3 %v3622_v0 }
  0x72   :  { %551 = vmatpush.msra.mxu0 %v2519_v26  ;;  %571 = vmatpush.msra.mxu1 %v2524_v39 }
  0x73   :  { %591 = vmatpush.msra.mxu2 %v2531_v52  ;;  %611 = vmatpush.msra.mxu3 %v2536_v62 }
  0x74   :  { %695 = vmatpush.msrb.mxu0 %v2146_v1  ;;  %715 = vmatpush.msrb.mxu1 %v2151_v2 }
  0x75   :  { %735 = vmatpush.msrb.mxu2 %v2161_v4  ;;  %755 = vmatpush.msrb.mxu3 %v2156_v3 }
  0x76   :  { %696 = vmatpush.msrb.mxu0 %v2166_v5  ;;  %716 = vmatpush.msrb.mxu1 %v2171_v6 }
  0x77   :  { %736 = vmatpush.msrb.mxu2 %v2183_v8  ;;  %756 = vmatpush.msrb.mxu3 %v2178_v7 }
  0x78   :  { %697 = vmatpush.msrb.mxu0 %v2189_v9  ;;  %717 = vmatpush.msrb.mxu1 %v2194_v10 }
  0x79   :  { %737 = vmatpush.msrb.mxu2 %v2207_v12  ;;  %757 = vmatpush.msrb.mxu3 %v2202_v11 }
  0x7a   :  { %698 = vmatpush.msrb.mxu0 %v2219_v14  ;;  %718 = vmatpush.msrb.mxu1 %v2224_v15 }
  0x7b   :  { %738 = vmatpush.msrb.mxu2 %v2236_v17  ;;  %758 = vmatpush.msrb.mxu3 %v2231_v16 }
  0x7c   :  { %699 = vmatpush.msrb.mxu0 %v2241_v18  ;;  %719 = vmatpush.msrb.mxu1 %v2246_v19 }
  0x7d   :  { %739 = vmatpush.msrb.mxu2 %v2258_v21  ;;  %759 = vmatpush.msrb.mxu3 %v2253_v20 }
  0x7e   :  { %700 = vmatpush.msrb.mxu0 %v2264_v22  ;;  %720 = vmatpush.msrb.mxu1 %v2269_v23 }
  0x7f   :  { %740 = vmatpush.msrb.mxu2 %v2282_v25  ;;  %760 = vmatpush.msrb.mxu3 %v2277_v24 }
  0x80   :  { %701 = vmatpush.msrb.mxu0 %v2294_v27  ;;  %721 = vmatpush.msrb.mxu1 %v2299_v28 }
  0x81   :  { %741 = vmatpush.msrb.mxu2 %v2311_v30  ;;  %761 = vmatpush.msrb.mxu3 %v2306_v29 }
  0x82   :  { %702 = vmatpush.msrb.mxu0 %v2316_v31  ;;  %722 = vmatpush.msrb.mxu1 %v2321_v32 }
  0x83   :  { %742 = vmatpush.msrb.mxu2 %v2333_v34  ;;  %762 = vmatpush.msrb.mxu3 %v2328_v33 }
  0x84   :  { %703 = vmatpush.msrb.mxu0 %v2339_v35  ;;  %723 = vmatpush.msrb.mxu1 %v2344_v36 }
  0x85   :  { %743 = vmatpush.msrb.mxu2 %v2357_v38  ;;  %763 = vmatpush.msrb.mxu3 %v2352_v37 }
  0x86   :  { %704 = vmatpush.msrb.mxu0 %v2369_v40  ;;  %724 = vmatpush.msrb.mxu1 %v2374_v41 }
  0x87   :  { %744 = vmatpush.msrb.mxu2 %v2386_v43  ;;  %764 = vmatpush.msrb.mxu3 %v2381_v42 }
  0x88   :  { %705 = vmatpush.msrb.mxu0 %v2391_v44  ;;  %725 = vmatpush.msrb.mxu1 %v2396_v45 }
  0x89   :  { %745 = vmatpush.msrb.mxu2 %v2408_v47  ;;  %765 = vmatpush.msrb.mxu3 %v2403_v46 }
  0x8a   :  { %706 = vmatpush.msrb.mxu0 %v2414_v48  ;;  %726 = vmatpush.msrb.mxu1 %v2419_v49 }
  0x8b   :  { %746 = vmatpush.msrb.mxu2 %v2432_v51  ;;  %766 = vmatpush.msrb.mxu3 %v2427_v50 }
  0x8c   :  { %707 = vmatpush.msrb.mxu0 %v2444_v53  ;;  %727 = vmatpush.msrb.mxu1 %v2449_v54 }
  0x8d   :  { %747 = vmatpush.msrb.mxu2 %v2461_v56  ;;  %767 = vmatpush.msrb.mxu3 %v2456_v55 }
  0x8e   :  { %708 = vmatpush.msrb.mxu0 %v2466_v57  ;;  %728 = vmatpush.msrb.mxu1 %v2471_v58 }
  0x8f   :  { %748 = vmatpush.msrb.mxu2 %v2483_v60  ;;  %768 = vmatpush.msrb.mxu3 %v2478_v59 }
  0x90   :  { %709 = vmatpush.msrb.mxu0 %v2489_v61  ;;  %729 = vmatpush.msrb.mxu1 %v3621_v13  ;;  %v101_v61 = vld [vmem:[%s3504_s3] sm:$0xf] }
  0x91   :  { %749 = vmatpush.msrb.mxu2 %v2502_v63  ;;  %769 = vmatpush.msrb.mxu3 %v3622_v0  ;;  %v103_v59 = vperm.slane %v101_v61, 0  ;;  %v104_v13 = vperm.slane %v101_v61, 1 }
  0x92   :  { %710 = vmatpush.msrb.mxu0 %v2519_v26  ;;  %730 = vmatpush.msrb.mxu1 %v2524_v39 }
  0x93   :  { %750 = vmatpush.msrb.mxu2 %v2531_v52  ;;  %770 = vmatpush.msrb.mxu3 %v2536_v62  ;;  %v2687_v52 = vperm.slane %v101_v61, 2  ;;  %v106_v62 = vperm.slane %v101_v61, 3 }
  0x9f   :  { %v128_v58 = vpop.f32.mrf.mxu0  ;;  %v169_v60 = vpop.f32.mrf.mxu1 }
  0xa6   :  { %v2679_v57 = vpop.f32.mrf.mxu2  ;;  %v2681_v63 = vpop.f32.mrf.mxu3 }
  0xa7   :  { %v131_v0 = vpop.f32.mrf.mxu0  ;;  %v172_v26 = vpop.f32.mrf.mxu1 }
  0xa8   :  { %v2683_v55 = vadd.f32 %v131_v0, %v103_v59  ;;  %v2685_v39 = vadd.f32 %v172_v26, %v104_v13 }
  0xaa   :  { %3623 = vst [vmem:[#allocation31_spill] sm:$0xff] %v2683_v55 }
  0xab   :  { %3624 = vst [vmem:[#allocation32_spill] sm:$0xff] %v2685_v39 }
  0xae   :  { %v213_v56 = vpop.f32.mrf.mxu2  ;;  %v254_v54 = vpop.f32.mrf.mxu3 }
  0xaf   :  { %v2690_v53 = vadd.f32 %v213_v56, %v2687_v52  ;;  %v2692_v50 = vadd.f32 %v254_v54, %v106_v62  ;;  %v134_v51 = vpop.f32.mrf.mxu0  ;;  %v175_v49 = vpop.f32.mrf.mxu1 }
  0xb0   :  { %v2694_v48 = vadd.f32 %v134_v51, %v103_v59  ;;  %v2696_v46 = vadd.f32 %v175_v49, %v104_v13 }
  0xb1   :  { %3625 = vst [vmem:[#allocation33_spill] sm:$0xff] %v2690_v53 }
  0xb2   :  { %3626 = vst [vmem:[#allocation34_spill] sm:$0xff] %v2692_v50 }
  0xb3   :  { %3627 = vst [vmem:[#allocation35_spill] sm:$0xff] %v2694_v48 }
  0xb4   :  { %3628 = vst [vmem:[#allocation36_spill] sm:$0xff] %v2696_v46 }
  0xb6   :  { %v216_v0 = vpop.f32.mrf.mxu2  ;;  %v257_v55 = vpop.f32.mrf.mxu3 }
  0xb7   :  { %v2699_v26 = vadd.f32 %v216_v0, %v2687_v52  ;;  %v2701_v39 = vadd.f32 %v257_v55, %v106_v62  ;;  %v137_v61 = vpop.f32.mrf.mxu0  ;;  %v178_v47 = vpop.f32.mrf.mxu1 }
  0xb8   :  { %v2703_v45 = vadd.f32 %v137_v61, %v103_v59  ;;  %v2705_v56 = vadd.f32 %v178_v47, %v104_v13 }
  0xb9   :  { %3629 = vst [vmem:[#allocation37_spill] sm:$0xff] %v2699_v26 }
  0xba   :  { %3630 = vst [vmem:[#allocation38_spill] sm:$0xff] %v2701_v39 }
  0xbb   :  { %3631 = vst [vmem:[#allocation39_spill] sm:$0xff] %v2703_v45 }
  0xbc   :  { %3632 = vst [vmem:[#allocation40_spill] sm:$0xff] %v2705_v56 }
  0xbe   :  { %v219_v54 = vpop.f32.mrf.mxu2  ;;  %v260_v53 = vpop.f32.mrf.mxu3 }
  0xbf   :  { %v2708_v51 = vadd.f32 %v219_v54, %v2687_v52  ;;  %v2710_v49 = vadd.f32 %v260_v53, %v106_v62  ;;  %v140_v46 = vpop.f32.mrf.mxu0  ;;  %v181_v48 = vpop.f32.mrf.mxu1 }
  0xc0   :  { %v2712_v50 = vadd.f32 %v140_v46, %v103_v59  ;;  %v2714_v0 = vadd.f32 %v181_v48, %v104_v13 }
  0xc1   :  { %3633 = vst [vmem:[#allocation41_spill] sm:$0xff] %v2708_v51 }
  0xc2   :  { %3634 = vst [vmem:[#allocation42_spill] sm:$0xff] %v2710_v49 }
  0xc3   :  { %3635 = vst [vmem:[#allocation43_spill] sm:$0xff] %v2712_v50 }
  0xc4   :  { %3636 = vst [vmem:[#allocation44_spill] sm:$0xff] %v2714_v0 }
  0xc6   :  { %v222_v55 = vpop.f32.mrf.mxu2  ;;  %v263_v26 = vpop.f32.mrf.mxu3 }
  0xc7   :  { %v2717_v61 = vadd.f32 %v222_v55, %v2687_v52  ;;  %v2719_v47 = vadd.f32 %v263_v26, %v106_v62  ;;  %v143_v56 = vpop.f32.mrf.mxu0  ;;  %v184_v45 = vpop.f32.mrf.mxu1 }
  0xc8   :  { %v2721_v39 = vadd.f32 %v143_v56, %v103_v59  ;;  %v2723_v54 = vadd.f32 %v184_v45, %v104_v13 }
  0xc9   :  { %3637 = vst [vmem:[#allocation45_spill] sm:$0xff] %v2717_v61 }
  0xca   :  { %3638 = vst [vmem:[#allocation46_spill] sm:$0xff] %v2719_v47 }
  0xcb   :  { %3639 = vst [vmem:[#allocation47_spill] sm:$0xff] %v2721_v39 }
  0xcc   :  { %3640 = vst [vmem:[#allocation48_spill] sm:$0xff] %v2723_v54 }
  0xce   :  { %v225_v53 = vpop.f32.mrf.mxu2  ;;  %v266_v51 = vpop.f32.mrf.mxu3 }
  0xcf   :  { %v2726_v46 = vadd.f32 %v225_v53, %v2687_v52  ;;  %v2728_v48 = vadd.f32 %v266_v51, %v106_v62  ;;  %v146_v0 = vpop.f32.mrf.mxu0  ;;  %v187_v50 = vpop.f32.mrf.mxu1  ;;  %v129_v51 = vadd.f32 %v128_v58, %v103_v59 }
  0xd0   :  { %v2730_v49 = vadd.f32 %v146_v0, %v103_v59  ;;  %v2732_v55 = vadd.f32 %v187_v50, %v104_v13 }
  0xd1   :  { %3641 = vst [vmem:[#allocation49_spill] sm:$0xff] %v2726_v46  ;;  %v170_v46 = vadd.f32 %v169_v60, %v104_v13 }
  0xd2   :  { %3642 = vst [vmem:[#allocation50_spill] sm:$0xff] %v2728_v48 }
  0xd3   :  { %3643 = vst [vmem:[#allocation51_spill] sm:$0xff] %v2730_v49 }
  0xd4   :  { %3644 = vst [vmem:[#allocation52_spill] sm:$0xff] %v2732_v55 }
  0xd6   :  { %v228_v26 = vpop.f32.mrf.mxu2  ;;  %v269_v61 = vpop.f32.mrf.mxu3 }
  0xd7   :  { %v2735_v56 = vadd.f32 %v228_v26, %v2687_v52  ;;  %v2737_v45 = vadd.f32 %v269_v61, %v106_v62  ;;  %v149_v54 = vpop.f32.mrf.mxu0  ;;  %v190_v39 = vpop.f32.mrf.mxu1 }
  0xd8   :  { %v2739_v47 = vadd.f32 %v149_v54, %v103_v59  ;;  %v2741_v53 = vadd.f32 %v190_v39, %v104_v13  ;;  %v252_v54 = vadd.f32 %v2681_v63, %v106_v62 }
  0xd9   :  { %3645 = vst [vmem:[#allocation53_spill] sm:$0xff] %v2735_v56 }
  0xda   :  { %3646 = vst [vmem:[#allocation54_spill] sm:$0xff] %v2737_v45 }
  0xdb   :  { %3647 = vst [vmem:[#allocation55_spill] sm:$0xff] %v2739_v47 }
  0xdc   :  { %3648 = vst [vmem:[#allocation56_spill] sm:$0xff] %v2741_v53 }
  0xde   :  { %v231_v48 = vpop.f32.mrf.mxu2  ;;  %v272_v0 = vpop.f32.mrf.mxu3 }
  0xdf   :  { %v2744_v50 = vadd.f32 %v231_v48, %v2687_v52  ;;  %v2746_v55 = vadd.f32 %v272_v0, %v106_v62  ;;  %v394_v49 = vpop.f32.mrf.mxu0  ;;  %v414_v26 = vpop.f32.mrf.mxu1 }
  0xe0   :  { %v457_v56 = vadd.f32 %v394_v49, %v129_v51  ;;  %v458_v61 = vadd.f32 %v414_v26, %v170_v46  ;;  %v211_v49 = vadd.f32 %v2679_v57, %v2687_v52 }
  0xe1   :  { %3649 = vst [vmem:[#allocation57_spill] sm:$0xff] %v2744_v50 }
  0xe2   :  { %3650 = vst [vmem:[#allocation58_spill] sm:$0xff] %v2746_v55  ;;  %v1694_v45 = vmul.f32 -1.442695, %v457_v56  ;;  %v1695_v44 = vmul.f32 -1.442695, %v458_v61 }
  0xe4   :  { %1720 = vpow2.f32 %v1694_v45 }
  0xe5   :  { %1722 = vpow2.f32 %v1695_v44 }
  0xe6   :  { %v454_v39 = vpop.f32.mrf.mxu3  ;;  %v434_v0 = vpop.f32.mrf.mxu2 }
  0xe7   :  { %v460_v58 = vadd.f32 %v454_v39, %v252_v54  ;;  %v459_v45 = vadd.f32 %v434_v0, %v211_v49 }
  0xe9   :  { %v1696_v59 = vmul.f32 -1.442695, %v460_v58 }
  0xea   :  { %v1721_v60 = vpop.eup %1720 }
  0xeb   :  { %v1723_v13 = vpop.eup %1722  ;;  %v464_v53 = vadd.f32 1.0, %v1721_v60  ;;  %1724 = vpow2.f32 %v1696_v59 }
  0xec   :  { %v483_v48 = vadd.f32 1.0, %v1723_v13 }
  0xed   :  { %1726 = vrcp.f32 %v464_v53  ;;  %v476_v61 = vand.u32 2147483648, %v464_v53  ;;  %v474_v58 = vand.u32 2147483647, %v464_v53  ;;  %vm470_vm2 = vweird.f32 %v464_v53 }
  0xee   :  { %1728 = vrcp.f32 %v483_v48  ;;  %v495_v54 = vand.u32 2147483648, %v483_v48  ;;  %v493_v60 = vand.u32 2147483647, %v483_v48  ;;  %vm489_vm3 = vweird.f32 %v483_v48 }
  0xef   :  { %v477_v52 = vor.u32 1.1754944e-38, %v476_v61  ;;  %vm475_vm5 = vcmp.eq.f32.partialorder %v474_v58, 8.507059e+37 }
  0xf0   :  { %v496_v49 = vor.u32 1.1754944e-38, %v495_v54  ;;  %vm494_vm7 = vcmp.eq.f32.partialorder %v493_v60, 8.507059e+37 }
  0xf1   :  { %v1725_v50 = vpop.eup %1724 }
  0xf2   :  { %v503_v46 = vadd.f32 1.0, %v1725_v50 }
  0xf3   :  { %v1727_v56 = vpop.eup %1726 }
  0xf4   :  { %v1729_v62 = vpop.eup %1728  ;;  %v466_v44 = vmul.f32 %v1727_v56, %v464_v53  ;;  %1730 = vrcp.f32 %v503_v46  ;;  %vm471_vm0 = vweird.f32 %v1727_v56  ;;  %vm509_vm9 = vweird.f32 %v503_v46 }
  0xf5   :  { %v485_v63 = vmul.f32 %v1729_v62, %v483_v48  ;;  %1732 = vtanh.f32 %v459_v45  ;;  %vm490_vm1 = vweird.f32 %v1729_v62  ;;  %vm472_vm4 = vmor %vm470_vm2, %vm471_vm0  ;;  %v515_v48 = vand.u32 2147483648, %v503_v46 }
  0xf6   :  { %v467_v51 = vsub.f32 1.0, %v466_v44  ;;  %vm491_vm6 = vmor %vm489_vm3, %vm490_vm1 }
  0xf7   :  { %v486_v26 = vsub.f32 1.0, %v485_v63  ;;  %v516_v54 = vor.u32 1.1754944e-38, %v515_v48 }
  0xf8   :  { %v468_v39 = vmul.f32 %v1727_v56, %v467_v51 }
  0xf9   :  { %v487_v59 = vmul.f32 %v1729_v62, %v486_v26 }
  0xfa   :  { %v1731_v13 = vpop.eup %1730  ;;  %v469_v57 = vadd.f32 %v1727_v56, %v468_v39 }
  0xfb   :  { %v488_v50 = vadd.f32 %v1729_v62, %v487_v59  ;;  %v505_v0 = vmul.f32 %v1731_v13, %v503_v46  ;;  %v1733_v45 = vpop.eup %1732  ;;  %vm510_vm8 = vweird.f32 %v1731_v13 }
  0xfc   :  { %v473_v44 = vsel %vm472_vm4, %v1727_v56, %v469_v57  ;;  %v513_v56 = vand.u32 2147483647, %v503_v46  ;;  %vm511_vm10 = vmor %vm509_vm9, %vm510_vm8 }
  0xfd   :  { %v478_v63 = vsel %vm475_vm5, %v477_v52, %v473_v44  ;;  %v492_v51 = vsel %vm491_vm6, %v1729_v62, %v488_v50  ;;  %v506_v55 = vsub.f32 1.0, %v505_v0  ;;  %v3680_v52 = vld [vmem:[#allocation33_spill] sm:$0xff] }
  0xfe   :  { %v497_v26 = vsel %vm494_vm7, %v496_v49, %v492_v51  ;;  %v520_v47 = vmul.f32 %v1733_v45, %v478_v63  ;;  %vm514_vm11 = vcmp.eq.f32.partialorder %v513_v56, 8.507059e+37 }
  0xff   :  { %v519_v42 = vmul.f32 0.0, %v497_v26  ;;  %v507_v43 = vmul.f32 %v1731_v13, %v506_v55 }
 0x101   :  { %v2751_v39 = vadd.f32 %v520_v47, %v519_v42  ;;  %v508_v53 = vadd.f32 %v1731_v13, %v507_v43 }
 0x103   :  { %1734 = vtanh.f32 %v2751_v39  ;;  %v512_v61 = vsel %vm511_vm10, %v1731_v13, %v508_v53 }
 0x104   :  { %v517_v58 = vsel %vm514_vm11, %v516_v54, %v512_v61 }
 0x109   :  { %v1735_v62 = vpop.eup %1734 }
 0x10a   :  { %v523_v59 = vmul.f32 %v1735_v62, %v517_v58 }
 0x10c   :  { %552 = vmatmul.f32.vlgmr.msra.gmra.mxu0 %v523_v59  ;;  %572 = vmatmul.f32.vlgmr.msra.gmra.mxu1 %v523_v59 }
 0x10d   :  { %592 = vmatmul.f32.vlgmr.msra.gmra.mxu2 %v523_v59  ;;  %612 = vmatmul.f32.vlgmr.msra.gmra.mxu3 %v523_v59 }
 0x10e   :  { %854 = vmatpush.msra.mxu0 %v2146_v1  ;;  %874 = vmatpush.msra.mxu1 %v2151_v2  ;;  %v3651_v1 = vld [vmem:[#allocation6_spill] sm:$0xff]  ;;  %v3652_v2 = vld [vmem:[#allocation5_spill] sm:$0xff] }
 0x10f   :  { %894 = vmatpush.msra.mxu2 %v2161_v4  ;;  %914 = vmatpush.msra.mxu3 %v2156_v3  ;;  %v3653_v3 = vld [vmem:[#allocation7_spill] sm:$0xff]  ;;  %v3654_v4 = vld [vmem:[#allocation8_spill] sm:$0xff] }
 0x110   :  { %855 = vmatpush.msra.mxu0 %v2166_v5  ;;  %875 = vmatpush.msra.mxu1 %v2171_v6  ;;  %v3655_v5 = vld [vmem:[#allocation10_spill] sm:$0xff]  ;;  %v3656_v6 = vld [vmem:[#allocation9_spill] sm:$0xff] }
 0x111   :  { %895 = vmatpush.msra.mxu2 %v2183_v8  ;;  %915 = vmatpush.msra.mxu3 %v2178_v7  ;;  %v3657_v7 = vld [vmem:[#allocation11_spill] sm:$0xff]  ;;  %v3658_v8 = vld [vmem:[#allocation12_spill] sm:$0xff] }
 0x112   :  { %856 = vmatpush.msra.mxu0 %v2189_v9  ;;  %876 = vmatpush.msra.mxu1 %v2194_v10  ;;  %v3659_v9 = vld [vmem:[#allocation14_spill] sm:$0xff]  ;;  %v3660_v10 = vld [vmem:[#allocation13_spill] sm:$0xff] }
 0x113   :  { %896 = vmatpush.msra.mxu2 %v2207_v12  ;;  %916 = vmatpush.msra.mxu3 %v2202_v11  ;;  %v3661_v11 = vld [vmem:[#allocation15_spill] sm:$0xff]  ;;  %v3662_v12 = vld [vmem:[#allocation16_spill] sm:$0xff] }
 0x114   :  { %857 = vmatpush.msra.mxu0 %v2219_v14  ;;  %877 = vmatpush.msra.mxu1 %v2224_v15  ;;  %v3663_v14 = vld [vmem:[#allocation18_spill] sm:$0xff]  ;;  %v3664_v15 = vld [vmem:[#allocation17_spill] sm:$0xff] }
 0x115   :  { %897 = vmatpush.msra.mxu2 %v2236_v17  ;;  %917 = vmatpush.msra.mxu3 %v2231_v16  ;;  %v3665_v16 = vld [vmem:[#allocation19_spill] sm:$0xff]  ;;  %v3666_v17 = vld [vmem:[#allocation20_spill] sm:$0xff] }
 0x116   :  { %858 = vmatpush.msra.mxu0 %v2241_v18  ;;  %878 = vmatpush.msra.mxu1 %v2246_v19  ;;  %v3667_v18 = vld [vmem:[#allocation22_spill] sm:$0xff]  ;;  %v3668_v19 = vld [vmem:[#allocation21_spill] sm:$0xff] }
 0x117   :  { %898 = vmatpush.msra.mxu2 %v2258_v21  ;;  %918 = vmatpush.msra.mxu3 %v2253_v20  ;;  %v3669_v20 = vld [vmem:[#allocation23_spill] sm:$0xff]  ;;  %v3670_v21 = vld [vmem:[#allocation24_spill] sm:$0xff] }
 0x118   :  { %859 = vmatpush.msra.mxu0 %v2264_v22  ;;  %879 = vmatpush.msra.mxu1 %v2269_v23  ;;  %v3671_v22 = vld [vmem:[#allocation25_spill] sm:$0xff]  ;;  %v3672_v23 = vld [vmem:[#allocation26_spill] sm:$0xff] }
 0x119   :  { %899 = vmatpush.msra.mxu2 %v2282_v25  ;;  %919 = vmatpush.msra.mxu3 %v2277_v24  ;;  %v3673_v24 = vld [vmem:[#allocation27_spill] sm:$0xff]  ;;  %v3674_v25 = vld [vmem:[#allocation28_spill] sm:$0xff] }
 0x11a   :  { %860 = vmatpush.msra.mxu0 %v2294_v27  ;;  %880 = vmatpush.msra.mxu1 %v2299_v28  ;;  %v3675_v27 = vld [vmem:[#allocation29_spill] sm:$0xff]  ;;  %v3676_v28 = vld [vmem:[#allocation30_spill] sm:$0xff] }
 0x11b   :  { %900 = vmatpush.msra.mxu2 %v2311_v30  ;;  %920 = vmatpush.msra.mxu3 %v2306_v29 }
 0x11c   :  { %861 = vmatpush.msra.mxu0 %v2316_v31  ;;  %881 = vmatpush.msra.mxu1 %v2321_v32  ;;  %v3677_v31 = vld [vmem:[#allocation31_spill] sm:$0xff] }
 0x11d   :  { %901 = vmatpush.msra.mxu2 %v2333_v34  ;;  %921 = vmatpush.msra.mxu3 %v2328_v33  ;;  %v3678_v33 = vld [vmem:[#allocation32_spill] sm:$0xff] }
 0x11e   :  { %862 = vmatpush.msra.mxu0 %v2339_v35  ;;  %882 = vmatpush.msra.mxu1 %v2344_v36 }
 0x11f   :  { %902 = vmatpush.msra.mxu2 %v2357_v38  ;;  %922 = vmatpush.msra.mxu3 %v2352_v37  ;;  %v3679_v38 = vld [vmem:[#allocation34_spill] sm:$0xff] }
 0x120   :  { %863 = vmatpush.msra.mxu0 %v2369_v40  ;;  %883 = vmatpush.msra.mxu1 %v2374_v41 }
 0x121   :  { %903 = vmatpush.msra.mxu2 %v3651_v1  ;;  %923 = vmatpush.msra.mxu3 %v3652_v2 }
 0x122   :  { %864 = vmatpush.msra.mxu0 %v3653_v3  ;;  %884 = vmatpush.msra.mxu1 %v3654_v4 }
 0x123   :  { %904 = vmatpush.msra.mxu2 %v3655_v5  ;;  %924 = vmatpush.msra.mxu3 %v3656_v6 }
 0x124   :  { %865 = vmatpush.msra.mxu0 %v3657_v7  ;;  %885 = vmatpush.msra.mxu1 %v3658_v8 }
 0x125   :  { %905 = vmatpush.msra.mxu2 %v3659_v9  ;;  %925 = vmatpush.msra.mxu3 %v3660_v10 }
 0x126   :  { %866 = vmatpush.msra.mxu0 %v3661_v11  ;;  %886 = vmatpush.msra.mxu1 %v3662_v12 }
 0x127   :  { %906 = vmatpush.msra.mxu2 %v3663_v14  ;;  %926 = vmatpush.msra.mxu3 %v3664_v15 }
 0x128   :  { %867 = vmatpush.msra.mxu0 %v3665_v16  ;;  %887 = vmatpush.msra.mxu1 %v3666_v17 }
 0x129   :  { %907 = vmatpush.msra.mxu2 %v3667_v18  ;;  %927 = vmatpush.msra.mxu3 %v3668_v19 }
 0x12a   :  { %868 = vmatpush.msra.mxu0 %v3669_v20  ;;  %888 = vmatpush.msra.mxu1 %v3670_v21 }
 0x12b   :  { %908 = vmatpush.msra.mxu2 %v3671_v22  ;;  %928 = vmatpush.msra.mxu3 %v3672_v23 }
 0x12c   :  { %869 = vmatpush.msra.mxu0 %v3673_v24  ;;  %889 = vmatpush.msra.mxu1 %v3674_v25 }
 0x12d   :  { %909 = vmatpush.msra.mxu2 %v3675_v27  ;;  %929 = vmatpush.msra.mxu3 %v3676_v28 }
 0x189   :  { %v553_v29 = vpop.f32.mrf.mxu0  ;;  %v573_v30 = vpop.f32.mrf.mxu1 }
 0x18a   :  { %v616_v32 = vadd.f32 %v553_v29, %v3677_v31  ;;  %v617_v34 = vadd.f32 %v573_v30, %v3678_v33  ;;  %v2835_v29 = vld [vmem:[%s3503_s2 + $0x1e8] sm:$0xff]  ;;  %v2841_v30 = vld [vmem:[%s3503_s2 + $0x1f0] sm:$0xff]  ;;  %v2847_v31 = vld [vmem:[%s3503_s2 + $0x1f8] sm:$0xff] }
 0x18b   :  { %v2859_v33 = vld [vmem:[%s3503_s2 + $0x1c8] sm:$0xff] }
 0x18c   :  { %v1697_v35 = vmul.f32 -1.442695, %v616_v32  ;;  %v1698_v36 = vmul.f32 -1.442695, %v617_v34  ;;  %v2853_v32 = vld [vmem:[%s3503_s2 + $0x1c0] sm:$0xff]  ;;  %v2865_v34 = vld [vmem:[%s3503_s2 + $0x1d0] sm:$0xff] }
 0x18e   :  { %1736 = vpow2.f32 %v1697_v35  ;;  %v2871_v35 = vld [vmem:[%s3503_s2 + $0x1d8] sm:$0xff] }
 0x18f   :  { %1738 = vpow2.f32 %v1698_v36  ;;  %v2877_v36 = vld [vmem:[%s3503_s2 + $0x1a0] sm:$0xff] }
 0x190   :  { %v613_v37 = vpop.f32.mrf.mxu3  ;;  %v593_v46 = vpop.f32.mrf.mxu2 }
 0x191   :  { %v619_v40 = vadd.f32 %v613_v37, %v3679_v38  ;;  %v618_v50 = vadd.f32 %v593_v46, %v3680_v52  ;;  %v2883_v37 = vld [vmem:[%s3503_s2 + $0x1a8] sm:$0xff]  ;;  %v2889_v38 = vld [vmem:[%s3503_s2 + $0x1b0] sm:$0xff] }
 0x192   :  { %v2931_v46 = vld [vmem:[%s3503_s2 + $0x168] sm:$0xff] }
 0x193   :  { %v1699_v41 = vmul.f32 -1.442695, %v619_v40  ;;  %v2895_v40 = vld [vmem:[%s3503_s2 + $0x1b8] sm:$0xff]  ;;  %v2955_v52 = vld [vmem:[%s3503_s2 + $0x148] sm:$0xff] }
 0x194   :  { %v1737_v42 = vpop.eup %1736 }
 0x195   :  { %v1739_v43 = vpop.eup %1738  ;;  %v623_v47 = vadd.f32 1.0, %v1737_v42  ;;  %1740 = vpow2.f32 %v1699_v41  ;;  %v2901_v41 = vld [vmem:[%s3503_s2 + $0x180] sm:$0xff]  ;;  %v2907_v42 = vld [vmem:[%s3503_s2 + $0x188] sm:$0xff] }
 0x196   :  { %v642_v55 = vadd.f32 1.0, %v1739_v43  ;;  %v2913_v43 = vld [vmem:[%s3503_s2 + $0x190] sm:$0xff] }
 0x197   :  { %1742 = vrcp.f32 %v623_v47  ;;  %v635_v51 = vand.u32 2147483648, %v623_v47  ;;  %v633_v48 = vand.u32 2147483647, %v623_v47  ;;  %vm629_vm14 = vweird.f32 %v623_v47 }
 0x198   :  { %1744 = vrcp.f32 %v642_v55  ;;  %v654_v26 = vand.u32 2147483648, %v642_v55  ;;  %v652_v61 = vand.u32 2147483647, %v642_v55  ;;  %vm648_vm15 = vweird.f32 %v642_v55 }
 0x199   :  { %v636_v58 = vor.u32 1.1754944e-38, %v635_v51  ;;  %vm634_vm2 = vcmp.eq.f32.partialorder %v633_v48, 8.507059e+37  ;;  %v2997_v51 = vld [vmem:[%s3503_s2 + $0x100] sm:$0xff]  ;;  %v3015_v48 = vld [vmem:[%s3503_s2 + $0x118] sm:$0xff] }
 0x19a   :  { %v655_v2 = vor.u32 1.1754944e-38, %v654_v26  ;;  %vm653_vm3 = vcmp.eq.f32.partialorder %v652_v61, 8.507059e+37  ;;  %v3003_v26 = vld [vmem:[%s3503_s2 + $0x108] sm:$0xff] }
 0x19b   :  { %v1741_v60 = vpop.eup %1740  ;;  %v3027_v61 = vld [vmem:[%s3503_s2 + $0xe8] sm:$0xff] }
 0x19c   :  { %v662_v13 = vadd.f32 1.0, %v1741_v60  ;;  %v2937_v60 = vld [vmem:[%s3503_s2 + $0x170] sm:$0xff] }
 0x19d   :  { %v1743_v57 = vpop.eup %1742 }
 0x19e   :  { %v1745_v0 = vpop.eup %1744  ;;  %v625_v49 = vmul.f32 %v1743_v57, %v623_v47  ;;  %1746 = vrcp.f32 %v662_v13  ;;  %vm630_vm12 = vweird.f32 %v1743_v57  ;;  %v674_v15 = vand.u32 2147483648, %v662_v13  ;;  %v2919_v47 = vld [vmem:[%s3503_s2 + $0x198] sm:$0xff] }
 0x19f   :  { %v644_v44 = vmul.f32 %v1745_v0, %v642_v55  ;;  %1748 = vtanh.f32 %v618_v50  ;;  %vm649_vm13 = vweird.f32 %v1745_v0  ;;  %vm631_vm0 = vmor %vm629_vm14, %vm630_vm12  ;;  %vm668_vm5 = vweird.f32 %v662_v13  ;;  %v2925_v55 = vld [vmem:[%s3503_s2 + $0x160] sm:$0xff]  ;;  %v2961_v50 = vld [vmem:[%s3503_s2 + $0x150] sm:$0xff] }
 0x1a0   :  { %v626_v45 = vsub.f32 1.0, %v625_v49  ;;  %vm650_vm1 = vmor %vm648_vm15, %vm649_vm13  ;;  %v672_v16 = vand.u32 2147483647, %v662_v13  ;;  %v675_v18 = vor.u32 1.1754944e-38, %v674_v15  ;;  %v2973_v49 = vld [vmem:[%s3503_s2 + $0x120] sm:$0xff]  ;;  %v3129_v15 = vld [vmem:[%s3503_s2 + $0x70] sm:$0xff] }
 0x1a1   :  { %v645_v63 = vsub.f32 1.0, %v644_v44  ;;  %v2979_v44 = vld [vmem:[%s3503_s2 + $0x128] sm:$0xff]  ;;  %3693 = vst [vmem:[#allocation18_spill] sm:$0xff] %v3129_v15 }
 0x1a2   :  { %v627_v53 = vmul.f32 %v1743_v57, %v626_v45  ;;  %vm673_vm7 = vcmp.eq.f32.partialorder %v672_v16, 8.507059e+37  ;;  %v2985_v45 = vld [vmem:[%s3503_s2 + $0x130] sm:$0xff]  ;;  %v3135_v16 = vld [vmem:[%s3503_s2 + $0x78] sm:$0xff] }
 0x1a3   :  { %v646_v56 = vmul.f32 %v1745_v0, %v645_v63  ;;  %v2991_v63 = vld [vmem:[%s3503_s2 + $0x138] sm:$0xff]  ;;  %3694 = vst [vmem:[#allocation17_spill] sm:$0xff] %v3135_v16 }
 0x1a4   :  { %v1747_v54 = vpop.eup %1746  ;;  %v628_v62 = vadd.f32 %v1743_v57, %v627_v53  ;;  %v3009_v53 = vld [vmem:[%s3503_s2 + $0x110] sm:$0xff] }
 0x1a5   :  { %v647_v59 = vadd.f32 %v1745_v0, %v646_v56  ;;  %v664_v1 = vmul.f32 %v1747_v54, %v662_v13  ;;  %v1749_v4 = vpop.eup %1748  ;;  %vm669_vm4 = vweird.f32 %v1747_v54  ;;  %v2943_v13 = vld [vmem:[%s3503_s2 + $0x178] sm:$0xff]  ;;  %v3021_v56 = vld [vmem:[%s3503_s2 + $0xe0] sm:$0xff] }
 0x1a6   :  { %v632_v3 = vsel %vm631_vm0, %v1743_v57, %v628_v62  ;;  %vm670_vm6 = vmor %vm668_vm5, %vm669_vm4  ;;  %v2949_v57 = vld [vmem:[%s3503_s2 + $0x140] sm:$0xff]  ;;  %v3039_v62 = vld [vmem:[%s3503_s2 + $0xf8] sm:$0xff] }
 0x1a7   :  { %v637_v5 = vsel %vm634_vm2, %v636_v58, %v632_v3  ;;  %v651_v6 = vsel %vm650_vm1, %v1745_v0, %v647_v59  ;;  %v665_v7 = vsub.f32 1.0, %v664_v1  ;;  %v2967_v0 = vld [vmem:[%s3503_s2 + $0x158] sm:$0xff]  ;;  %v3045_v58 = vld [vmem:[%s3503_s2 + $0xc0] sm:$0xff]  ;;  %v3051_v59 = vld [vmem:[%s3503_s2 + $0xc8] sm:$0xff] }
 0x1a8   :  { %v656_v8 = vsel %vm653_vm3, %v655_v2, %v651_v6  ;;  %v679_v9 = vmul.f32 %v1749_v4, %v637_v5  ;;  %v3057_v1 = vld [vmem:[%s3503_s2 + $0xd0] sm:$0xff]  ;;  %v3063_v2 = vld [vmem:[%s3503_s2 + $0xd8] sm:$0xff]  ;;  %v3069_v3 = vld [vmem:[%s3503_s2 + $0xa0] sm:$0xff] }
 0x1a9   :  { %v678_v10 = vmul.f32 %v656_v8, %v2751_v39  ;;  %v666_v11 = vmul.f32 %v1747_v54, %v665_v7  ;;  %v2829_v39 = vld [vmem:[%s3503_s2 + $0x1e0] sm:$0xff]  ;;  %3681 = vst [vmem:[#allocation6_spill] sm:$0xff] %v3057_v1  ;;  %v3075_v4 = vld [vmem:[%s3503_s2 + $0xa8] sm:$0xff]  ;;  %v3081_v5 = vld [vmem:[%s3503_s2 + $0xb0] sm:$0xff] }
 0x1aa   :  { %3682 = vst [vmem:[#allocation5_spill] sm:$0xff] %v3063_v2  ;;  %v3087_v6 = vld [vmem:[%s3503_s2 + $0xb8] sm:$0xff]  ;;  %v3093_v7 = vld [vmem:[%s3503_s2 + $0x80] sm:$0xff]  ;;  %v3099_v8 = vld [vmem:[%s3503_s2 + $0x88] sm:$0xff] }
 0x1ab   :  { %v2823_v12 = vadd.f32 %v679_v9, %v678_v10  ;;  %v667_v14 = vadd.f32 %v1747_v54, %v666_v11  ;;  %3683 = vst [vmem:[#allocation7_spill] sm:$0xff] %v3069_v3  ;;  %v3105_v9 = vld [vmem:[%s3503_s2 + $0x90] sm:$0xff]  ;;  %v3111_v10 = vld [vmem:[%s3503_s2 + $0x98] sm:$0xff]  ;;  %v3117_v11 = vld [vmem:[%s3503_s2 + $0x60] sm:$0xff] }
 0x1ac   :  { %3684 = vst [vmem:[#allocation8_spill] sm:$0xff] %v3075_v4 }
 0x1ad   :  { %1750 = vtanh.f32 %v2823_v12  ;;  %v671_v17 = vsel %vm670_vm6, %v1747_v54, %v667_v14  ;;  %v3033_v54 = vld [vmem:[%s3503_s2 + $0xf0] sm:$0xff]  ;;  %3685 = vst [vmem:[#allocation10_spill] sm:$0xff] %v3081_v5  ;;  %v3123_v14 = vld [vmem:[%s3503_s2 + $0x68] sm:$0xff] }
 0x1ae   :  { %v676_v20 = vsel %vm673_vm7, %v675_v18, %v671_v17  ;;  %3686 = vst [vmem:[#allocation9_spill] sm:$0xff] %v3087_v6  ;;  %v3141_v17 = vld [vmem:[%s3503_s2 + $0x40] sm:$0xff]  ;;  %v3147_v18 = vld [vmem:[%s3503_s2 + $0x48] sm:$0xff] }
 0x1af   :  { %3687 = vst [vmem:[#allocation11_spill] sm:$0xff] %v3093_v7 }
 0x1b0   :  { %3688 = vst [vmem:[#allocation12_spill] sm:$0xff] %v3099_v8 }
 0x1b1   :  { %3689 = vst [vmem:[#allocation14_spill] sm:$0xff] %v3105_v9 }
 0x1b2   :  { %3690 = vst [vmem:[#allocation13_spill] sm:$0xff] %v3111_v10 }
 0x1b3   :  { %v1751_v19 = vpop.eup %1750  ;;  %3691 = vst [vmem:[#allocation15_spill] sm:$0xff] %v3117_v11 }
 0x1b4   :  { %v682_v21 = vmul.f32 %v1751_v19, %v676_v20  ;;  %3692 = vst [vmem:[#allocation16_spill] sm:$0xff] %v3123_v14  ;;  %v3153_v19 = vld [vmem:[%s3503_s2 + $0x50] sm:$0xff]  ;;  %v3159_v20 = vld [vmem:[%s3503_s2 + $0x58] sm:$0xff] }
 0x1b5   :  { %3695 = vst [vmem:[#allocation19_spill] sm:$0xff] %v3141_v17 }
 0x1b6   :  { %711 = vmatmul.f32.vlgmr.msrb.gmra.mxu0 %v682_v21  ;;  %731 = vmatmul.f32.vlgmr.msrb.gmra.mxu1 %v682_v21  ;;  %3696 = vst [vmem:[#allocation20_spill] sm:$0xff] %v3147_v18 }
 0x1b7   :  { %751 = vmatmul.f32.vlgmr.msrb.gmra.mxu2 %v682_v21  ;;  %771 = vmatmul.f32.vlgmr.msrb.gmra.mxu3 %v682_v21  ;;  %3697 = vst [vmem:[#allocation22_spill] sm:$0xff] %v3153_v19  ;;  %v3165_v21 = vld [vmem:[%s3503_s2 + $0x20] sm:$0xff] }
 0x1b8   :  { %1013 = vmatpush.msrb.mxu0 %v2829_v39  ;;  %1033 = vmatpush.msrb.mxu1 %v2835_v29  ;;  %3698 = vst [vmem:[#allocation21_spill] sm:$0xff] %v3159_v20 }
 0x1b9   :  { %1053 = vmatpush.msrb.mxu2 %v2841_v30  ;;  %1073 = vmatpush.msrb.mxu3 %v2847_v31  ;;  %3699 = vst [vmem:[#allocation23_spill] sm:$0xff] %v3165_v21 }
 0x1ba   :  { %1014 = vmatpush.msrb.mxu0 %v2853_v32  ;;  %1034 = vmatpush.msrb.mxu1 %v2859_v33 }
 0x1bb   :  { %1054 = vmatpush.msrb.mxu2 %v2865_v34  ;;  %1074 = vmatpush.msrb.mxu3 %v2871_v35 }
 0x1bc   :  { %1015 = vmatpush.msrb.mxu0 %v2877_v36  ;;  %1035 = vmatpush.msrb.mxu1 %v2883_v37 }
 0x1bd   :  { %1055 = vmatpush.msrb.mxu2 %v2889_v38  ;;  %1075 = vmatpush.msrb.mxu3 %v2895_v40 }
 0x1be   :  { %1016 = vmatpush.msrb.mxu0 %v2901_v41  ;;  %1036 = vmatpush.msrb.mxu1 %v2907_v42 }
 0x1bf   :  { %1056 = vmatpush.msrb.mxu2 %v2913_v43  ;;  %1076 = vmatpush.msrb.mxu3 %v2919_v47 }
 0x1c0   :  { %1017 = vmatpush.msrb.mxu0 %v2925_v55  ;;  %1037 = vmatpush.msrb.mxu1 %v2931_v46 }
 0x1c1   :  { %1057 = vmatpush.msrb.mxu2 %v2937_v60  ;;  %1077 = vmatpush.msrb.mxu3 %v2943_v13 }
 0x1c2   :  { %1018 = vmatpush.msrb.mxu0 %v2949_v57  ;;  %1038 = vmatpush.msrb.mxu1 %v2955_v52 }
 0x1c3   :  { %1058 = vmatpush.msrb.mxu2 %v2961_v50  ;;  %1078 = vmatpush.msrb.mxu3 %v2967_v0 }
 0x1c4   :  { %1019 = vmatpush.msrb.mxu0 %v2973_v49  ;;  %1039 = vmatpush.msrb.mxu1 %v2979_v44 }
 0x1c5   :  { %1059 = vmatpush.msrb.mxu2 %v2985_v45  ;;  %1079 = vmatpush.msrb.mxu3 %v2991_v63 }
 0x1c6   :  { %1020 = vmatpush.msrb.mxu0 %v2997_v51  ;;  %1040 = vmatpush.msrb.mxu1 %v3003_v26 }
 0x1c7   :  { %1060 = vmatpush.msrb.mxu2 %v3009_v53  ;;  %1080 = vmatpush.msrb.mxu3 %v3015_v48 }
 0x1c8   :  { %1021 = vmatpush.msrb.mxu0 %v3021_v56  ;;  %1041 = vmatpush.msrb.mxu1 %v3027_v61 }
 0x1c9   :  { %1061 = vmatpush.msrb.mxu2 %v3033_v54  ;;  %1081 = vmatpush.msrb.mxu3 %v3039_v62 }
 0x1ca   :  { %1022 = vmatpush.msrb.mxu0 %v3045_v58  ;;  %1042 = vmatpush.msrb.mxu1 %v3051_v59 }
 0x1cb   :  { %1062 = vmatpush.msrb.mxu2 %v3057_v1  ;;  %1082 = vmatpush.msrb.mxu3 %v3063_v2 }
 0x1cc   :  { %1023 = vmatpush.msrb.mxu0 %v3069_v3  ;;  %1043 = vmatpush.msrb.mxu1 %v3075_v4 }
 0x1cd   :  { %1063 = vmatpush.msrb.mxu2 %v3081_v5  ;;  %1083 = vmatpush.msrb.mxu3 %v3087_v6 }
 0x1ce   :  { %1024 = vmatpush.msrb.mxu0 %v3093_v7  ;;  %1044 = vmatpush.msrb.mxu1 %v3099_v8 }
 0x1cf   :  { %1064 = vmatpush.msrb.mxu2 %v3105_v9  ;;  %1084 = vmatpush.msrb.mxu3 %v3111_v10 }
 0x1d0   :  { %1025 = vmatpush.msrb.mxu0 %v3117_v11  ;;  %1045 = vmatpush.msrb.mxu1 %v3123_v14 }
 0x1d1   :  { %1065 = vmatpush.msrb.mxu2 %v3129_v15  ;;  %1085 = vmatpush.msrb.mxu3 %v3135_v16  ;;  %v3702_v16 = vld [vmem:[#allocation36_spill] sm:$0xff] }
 0x1d2   :  { %1026 = vmatpush.msrb.mxu0 %v3141_v17  ;;  %1046 = vmatpush.msrb.mxu1 %v3147_v18  ;;  %v3171_v18 = vld [vmem:[%s3503_s2 + $0x28] sm:$0xff] }
 0x1d3   :  { %1066 = vmatpush.msrb.mxu2 %v3153_v19  ;;  %1086 = vmatpush.msrb.mxu3 %v3159_v20  ;;  %3700 = vst [vmem:[#allocation24_spill] sm:$0xff] %v3171_v18  ;;  %v3701_v19 = vld [vmem:[#allocation35_spill] sm:$0xff] }
 0x1d4   :  { %1027 = vmatpush.msrb.mxu0 %v3165_v21  ;;  %1047 = vmatpush.msrb.mxu1 %v3171_v18 }
 0x1d5   :  { %1067 = vmatpush.msrb.mxu2 %v3671_v22  ;;  %1087 = vmatpush.msrb.mxu3 %v3672_v23  ;;  %v3703_v23 = vld [vmem:[#allocation38_spill] sm:$0xff] }
 0x1d6   :  { %1028 = vmatpush.msrb.mxu0 %v3673_v24  ;;  %1048 = vmatpush.msrb.mxu1 %v3674_v25 }
 0x1d7   :  { %1068 = vmatpush.msrb.mxu2 %v3675_v27  ;;  %1088 = vmatpush.msrb.mxu3 %v3676_v28 }
 0x233   :  { %v712_v21 = vpop.f32.mrf.mxu0  ;;  %v732_v20 = vpop.f32.mrf.mxu1 }
 0x234   :  { %v775_v17 = vadd.f32 %v712_v21, %v3701_v19  ;;  %v776_v15 = vadd.f32 %v732_v20, %v3702_v16  ;;  %v3704_v16 = vld [vmem:[#allocation37_spill] sm:$0xff] }
 0x236   :  { %v1700_v14 = vmul.f32 -1.442695, %v775_v17  ;;  %v1701_v18 = vmul.f32 -1.442695, %v776_v15 }
 0x238   :  { %1752 = vpow2.f32 %v1700_v14 }
 0x239   :  { %1754 = vpow2.f32 %v1701_v18 }
 0x23a   :  { %v772_v22 = vpop.f32.mrf.mxu3  ;;  %v752_v28 = vpop.f32.mrf.mxu2 }
 0x23b   :  { %v778_v11 = vadd.f32 %v772_v22, %v3703_v23  ;;  %v777_v17 = vadd.f32 %v752_v28, %v3704_v16 }
 0x23d   :  { %v1702_v24 = vmul.f32 -1.442695, %v778_v11 }
 0x23e   :  { %v1753_v10 = vpop.eup %1752 }
 0x23f   :  { %v1755_v25 = vpop.eup %1754  ;;  %v782_v9 = vadd.f32 1.0, %v1753_v10  ;;  %1756 = vpow2.f32 %v1702_v24 }
 0x240   :  { %v801_v27 = vadd.f32 1.0, %v1755_v25 }
 0x241   :  { %1758 = vrcp.f32 %v782_v9  ;;  %v794_v11 = vand.u32 2147483648, %v782_v9  ;;  %v792_v24 = vand.u32 2147483647, %v782_v9  ;;  %vm788_vm10 = vweird.f32 %v782_v9 }
 0x242   :  { %1760 = vrcp.f32 %v801_v27  ;;  %v813_v23 = vand.u32 2147483648, %v801_v27  ;;  %v811_v7 = vand.u32 2147483647, %v801_v27  ;;  %vm807_vm11 = vweird.f32 %v801_v27 }
 0x243   :  { %v795_v28 = vor.u32 1.1754944e-38, %v794_v11  ;;  %vm793_vm14 = vcmp.eq.f32.partialorder %v792_v24, 8.507059e+37 }
 0x244   :  { %vm812_vm15 = vcmp.eq.f32.partialorder %v811_v7, 8.507059e+37 }
 0x245   :  { %v1757_v8 = vpop.eup %1756 }
 0x246   :  { %v821_v19 = vadd.f32 1.0, %v1757_v8 }
 0x247   :  { %v1759_v21 = vpop.eup %1758 }
 0x248   :  { %v1761_v15 = vpop.eup %1760  ;;  %v784_v14 = vmul.f32 %v1759_v21, %v782_v9  ;;  %1762 = vrcp.f32 %v821_v19  ;;  %vm789_vm8 = vweird.f32 %v1759_v21  ;;  %v833_v11 = vand.u32 2147483648, %v821_v19 }
 0x249   :  { %v803_v18 = vmul.f32 %v1761_v15, %v801_v27  ;;  %1764 = vtanh.f32 %v777_v17  ;;  %vm808_vm9 = vweird.f32 %v1761_v15  ;;  %vm790_vm12 = vmor %vm788_vm10, %vm789_vm8  ;;  %vm827_vm1 = vweird.f32 %v821_v19 }
 0x24a   :  { %v785_v20 = vsub.f32 1.0, %v784_v14  ;;  %vm809_vm13 = vmor %vm807_vm11, %vm808_vm9  ;;  %v814_v14 = vor.u32 1.1754944e-38, %v813_v23  ;;  %v834_v24 = vor.u32 1.1754944e-38, %v833_v11  ;;  %v3723_v11 = vld [vmem:[#allocation23_spill] sm:$0xff] }
 0x24b   :  { %v804_v22 = vsub.f32 1.0, %v803_v18 }
 0x24c   :  { %v786_v10 = vmul.f32 %v1759_v21, %v785_v20 }
 0x24d   :  { %v805_v25 = vmul.f32 %v1761_v15, %v804_v22 }
 0x24e   :  { %v1763_v6 = vpop.eup %1762  ;;  %v787_v8 = vadd.f32 %v1759_v21, %v786_v10 }
 0x24f   :  { %v806_v16 = vadd.f32 %v1761_v15, %v805_v25  ;;  %v823_v5 = vmul.f32 %v1763_v6, %v821_v19  ;;  %v1765_v17 = vpop.eup %1764  ;;  %vm828_vm0 = vweird.f32 %v1763_v6  ;;  %v3712_v25 = vld [vmem:[#allocation12_spill] sm:$0xff] }
 0x250   :  { %v791_v18 = vsel %vm790_vm12, %v1759_v21, %v787_v8  ;;  %v831_v21 = vand.u32 2147483647, %v821_v19  ;;  %vm829_vm2 = vmor %vm827_vm1, %vm828_vm0  ;;  %v3711_v19 = vld [vmem:[#allocation11_spill] sm:$0xff]  ;;  %v3713_v8 = vld [vmem:[#allocation14_spill] sm:$0xff] }
 0x251   :  { %v796_v4 = vsel %vm793_vm14, %v795_v28, %v791_v18  ;;  %v810_v20 = vsel %vm809_vm13, %v1761_v15, %v806_v16  ;;  %v824_v3 = vsub.f32 1.0, %v823_v5  ;;  %v3714_v28 = vld [vmem:[#allocation13_spill] sm:$0xff]  ;;  %v3715_v16 = vld [vmem:[#allocation15_spill] sm:$0xff]  ;;  %v3717_v18 = vld [vmem:[#allocation18_spill] sm:$0xff] }
 0x252   :  { %v815_v22 = vsel %vm812_vm15, %v814_v14, %v810_v20  ;;  %v838_v2 = vmul.f32 %v1765_v17, %v796_v4  ;;  %vm832_vm3 = vcmp.eq.f32.partialorder %v831_v21, 8.507059e+37  ;;  %v3709_v4 = vld [vmem:[#allocation10_spill] sm:$0xff]  ;;  %v3716_v14 = vld [vmem:[#allocation16_spill] sm:$0xff]  ;;  %v3718_v17 = vld [vmem:[#allocation17_spill] sm:$0xff] }
 0x253   :  { %v837_v1 = vmul.f32 %v815_v22, %v2823_v12  ;;  %v825_v10 = vmul.f32 %v1763_v6, %v824_v3  ;;  %v3705_v12 = vld [vmem:[#allocation6_spill] sm:$0xff]  ;;  %v3708_v3 = vld [vmem:[#allocation8_spill] sm:$0xff]  ;;  %v3719_v20 = vld [vmem:[#allocation19_spill] sm:$0xff] }
 0x254   :  { %v3720_v22 = vld [vmem:[#allocation20_spill] sm:$0xff] }
 0x255   :  { %v3185_v9 = vadd.f32 %v838_v2, %v837_v1  ;;  %v826_v27 = vadd.f32 %v1763_v6, %v825_v10  ;;  %v3706_v1 = vld [vmem:[#allocation5_spill] sm:$0xff]  ;;  %v3707_v2 = vld [vmem:[#allocation7_spill] sm:$0xff]  ;;  %v3721_v10 = vld [vmem:[#allocation22_spill] sm:$0xff] }
 0x256   :  { %v3724_v21 = vld [vmem:[#allocation24_spill] sm:$0xff] }
 0x257   :  { %1766 = vtanh.f32 %v3185_v9  ;;  %v830_v23 = vsel %vm829_vm2, %v1763_v6, %v826_v27  ;;  %v3710_v6 = vld [vmem:[#allocation9_spill] sm:$0xff] }
 0x258   :  { %v835_v5 = vsel %vm832_vm3, %v834_v24, %v830_v23  ;;  %v3722_v27 = vld [vmem:[#allocation21_spill] sm:$0xff]  ;;  %v3249_v23 = vld [vmem:[%s3503_s2 + $0x30] sm:$0xff]  ;;  %v3255_v24 = vld [vmem:[%s3503_s2 + $0x38] sm:$0xff] }
 0x259   :  { %3725 = vst [vmem:[#allocation25_spill] sm:$0xff] %v3249_v23 }
 0x25a   :  { %3726 = vst [vmem:[#allocation26_spill] sm:$0xff] %v3255_v24 }
 0x25d   :  { %v1767_v7 = vpop.eup %1766 }
 0x25e   :  { %v841_v15 = vmul.f32 %v1767_v7, %v835_v5  ;;  %v3261_v7 = vld [vmem:[%s3503_s2] sm:$0xff]  ;;  %v3267_v5 = vld [vmem:[%s3503_s2 + $0x8] sm:$0xff] }
 0x25f   :  { %3727 = vst [vmem:[#allocation27_spill] sm:$0xff] %v3261_v7 }
 0x260   :  { %870 = vmatmul.f32.vlgmr.msra.gmra.mxu0 %v841_v15  ;;  %890 = vmatmul.f32.vlgmr.msra.gmra.mxu1 %v841_v15  ;;  %3728 = vst [vmem:[#allocation28_spill] sm:$0xff] %v3267_v5 }
 0x261   :  { %910 = vmatmul.f32.vlgmr.msra.gmra.mxu2 %v841_v15  ;;  %930 = vmatmul.f32.vlgmr.msra.gmra.mxu3 %v841_v15  ;;  %v3273_v15 = vld [vmem:[%s3503_s2 + $0x10] sm:$0xff] }
 0x262   :  { %1172 = vmatpush.msra.mxu0 %v2829_v39  ;;  %1192 = vmatpush.msra.mxu1 %v2835_v29  ;;  %3729 = vst [vmem:[#allocation29_spill] sm:$0xff] %v3273_v15 }
 0x263   :  { %1212 = vmatpush.msra.mxu2 %v2841_v30  ;;  %1232 = vmatpush.msra.mxu3 %v2847_v31 }
 0x264   :  { %1173 = vmatpush.msra.mxu0 %v2853_v32  ;;  %1193 = vmatpush.msra.mxu1 %v2859_v33 }
 0x265   :  { %1213 = vmatpush.msra.mxu2 %v2865_v34  ;;  %1233 = vmatpush.msra.mxu3 %v2871_v35 }
 0x266   :  { %1174 = vmatpush.msra.mxu0 %v2877_v36  ;;  %1194 = vmatpush.msra.mxu1 %v2883_v37 }
 0x267   :  { %1214 = vmatpush.msra.mxu2 %v2889_v38  ;;  %1234 = vmatpush.msra.mxu3 %v2895_v40 }
 0x268   :  { %1175 = vmatpush.msra.mxu0 %v2901_v41  ;;  %1195 = vmatpush.msra.mxu1 %v2907_v42 }
 0x269   :  { %1215 = vmatpush.msra.mxu2 %v2913_v43  ;;  %1235 = vmatpush.msra.mxu3 %v2919_v47 }
 0x26a   :  { %1176 = vmatpush.msra.mxu0 %v2925_v55  ;;  %1196 = vmatpush.msra.mxu1 %v2931_v46 }
 0x26b   :  { %1216 = vmatpush.msra.mxu2 %v2937_v60  ;;  %1236 = vmatpush.msra.mxu3 %v2943_v13 }
 0x26c   :  { %1177 = vmatpush.msra.mxu0 %v2949_v57  ;;  %1197 = vmatpush.msra.mxu1 %v2955_v52 }
 0x26d   :  { %1217 = vmatpush.msra.mxu2 %v2961_v50  ;;  %1237 = vmatpush.msra.mxu3 %v2967_v0 }
 0x26e   :  { %1178 = vmatpush.msra.mxu0 %v2973_v49  ;;  %1198 = vmatpush.msra.mxu1 %v2979_v44 }
 0x26f   :  { %1218 = vmatpush.msra.mxu2 %v2985_v45  ;;  %1238 = vmatpush.msra.mxu3 %v2991_v63 }
 0x270   :  { %1179 = vmatpush.msra.mxu0 %v2997_v51  ;;  %1199 = vmatpush.msra.mxu1 %v3003_v26 }
 0x271   :  { %1219 = vmatpush.msra.mxu2 %v3009_v53  ;;  %1239 = vmatpush.msra.mxu3 %v3015_v48 }
 0x272   :  { %1180 = vmatpush.msra.mxu0 %v3021_v56  ;;  %1200 = vmatpush.msra.mxu1 %v3027_v61 }
 0x273   :  { %1220 = vmatpush.msra.mxu2 %v3033_v54  ;;  %1240 = vmatpush.msra.mxu3 %v3039_v62 }
 0x274   :  { %1181 = vmatpush.msra.mxu0 %v3045_v58  ;;  %1201 = vmatpush.msra.mxu1 %v3051_v59 }
 0x275   :  { %1221 = vmatpush.msra.mxu2 %v3705_v12  ;;  %1241 = vmatpush.msra.mxu3 %v3706_v1 }
 0x276   :  { %1182 = vmatpush.msra.mxu0 %v3707_v2  ;;  %1202 = vmatpush.msra.mxu1 %v3708_v3 }
 0x277   :  { %1222 = vmatpush.msra.mxu2 %v3709_v4  ;;  %1242 = vmatpush.msra.mxu3 %v3710_v6 }
 0x278   :  { %1183 = vmatpush.msra.mxu0 %v3711_v19  ;;  %1203 = vmatpush.msra.mxu1 %v3712_v25 }
 0x279   :  { %1223 = vmatpush.msra.mxu2 %v3713_v8  ;;  %1243 = vmatpush.msra.mxu3 %v3714_v28 }
 0x27a   :  { %1184 = vmatpush.msra.mxu0 %v3715_v16  ;;  %1204 = vmatpush.msra.mxu1 %v3716_v14 }
 0x27b   :  { %1224 = vmatpush.msra.mxu2 %v3717_v18  ;;  %1244 = vmatpush.msra.mxu3 %v3718_v17  ;;  %v3733_v17 = vld [vmem:[#allocation42_spill] sm:$0xff] }
 0x27c   :  { %1185 = vmatpush.msra.mxu0 %v3719_v20  ;;  %1205 = vmatpush.msra.mxu1 %v3720_v22 }
 0x27d   :  { %1225 = vmatpush.msra.mxu2 %v3721_v10  ;;  %1245 = vmatpush.msra.mxu3 %v3722_v27  ;;  %v3732_v27 = vld [vmem:[#allocation40_spill] sm:$0xff] }
 0x27e   :  { %1186 = vmatpush.msra.mxu0 %v3723_v11  ;;  %1206 = vmatpush.msra.mxu1 %v3724_v21  ;;  %v3731_v21 = vld [vmem:[#allocation39_spill] sm:$0xff] }
 0x27f   :  { %1226 = vmatpush.msra.mxu2 %v3249_v23  ;;  %1246 = vmatpush.msra.mxu3 %v3255_v24  ;;  %v3279_v24 = vld [vmem:[%s3503_s2 + $0x18] sm:$0xff] }
 0x280   :  { %1187 = vmatpush.msra.mxu0 %v3261_v7  ;;  %1207 = vmatpush.msra.mxu1 %v3267_v5  ;;  %3730 = vst [vmem:[#allocation30_spill] sm:$0xff] %v3279_v24 }
 0x281   :  { %1227 = vmatpush.msra.mxu2 %v3273_v15  ;;  %1247 = vmatpush.msra.mxu3 %v3279_v24 }
 0x2dd   :  { %v871_v7 = vpop.f32.mrf.mxu0  ;;  %v891_v23 = vpop.f32.mrf.mxu1 }
 0x2de   :  { %v934_v11 = vadd.f32 %v871_v7, %v3731_v21  ;;  %v935_v5 = vadd.f32 %v891_v23, %v3732_v27  ;;  %v3734_v27 = vld [vmem:[#allocation41_spill] sm:$0xff] }
 0x2e0   :  { %v1703_v10 = vmul.f32 -1.442695, %v934_v11  ;;  %v1704_v22 = vmul.f32 -1.442695, %v935_v5 }
 0x2e2   :  { %1768 = vpow2.f32 %v1703_v10 }
 0x2e3   :  { %1770 = vpow2.f32 %v1704_v22 }
 0x2e4   :  { %v931_v20 = vpop.f32.mrf.mxu3  ;;  %v911_v24 = vpop.f32.mrf.mxu2 }
 0x2e5   :  { %v937_v15 = vadd.f32 %v931_v20, %v3733_v17  ;;  %v936_v11 = vadd.f32 %v911_v24, %v3734_v27 }
 0x2e7   :  { %v1705_v18 = vmul.f32 -1.442695, %v937_v15 }
 0x2e8   :  { %v1769_v14 = vpop.eup %1768 }
 0x2e9   :  { %v1771_v16 = vpop.eup %1770  ;;  %v941_v28 = vadd.f32 1.0, %v1769_v14  ;;  %1772 = vpow2.f32 %v1705_v18 }
 0x2ea   :  { %v960_v8 = vadd.f32 1.0, %v1771_v16 }
 0x2eb   :  { %1774 = vrcp.f32 %v941_v28  ;;  %v953_v20 = vand.u32 2147483648, %v941_v28  ;;  %v951_v16 = vand.u32 2147483647, %v941_v28  ;;  %vm947_vm6 = vweird.f32 %v941_v28 }
 0x2ec   :  { %1776 = vrcp.f32 %v960_v8  ;;  %v972_v15 = vand.u32 2147483648, %v960_v8  ;;  %v970_v19 = vand.u32 2147483647, %v960_v8  ;;  %vm966_vm7 = vweird.f32 %v960_v8 }
 0x2ed   :  { %v954_v24 = vor.u32 1.1754944e-38, %v953_v20  ;;  %vm952_vm10 = vcmp.eq.f32.partialorder %v951_v16, 8.507059e+37 }
 0x2ee   :  { %vm971_vm11 = vcmp.eq.f32.partialorder %v970_v19, 8.507059e+37 }
 0x2ef   :  { %v1773_v25 = vpop.eup %1772 }
 0x2f0   :  { %v980_v21 = vadd.f32 1.0, %v1773_v25 }
 0x2f1   :  { %v1775_v7 = vpop.eup %1774 }
 0x2f2   :  { %v1777_v23 = vpop.eup %1776  ;;  %v943_v10 = vmul.f32 %v1775_v7, %v941_v28  ;;  %1778 = vrcp.f32 %v980_v21  ;;  %vm948_vm4 = vweird.f32 %v1775_v7  ;;  %v992_v20 = vand.u32 2147483648, %v980_v21 }
 0x2f3   :  { %v962_v22 = vmul.f32 %v1777_v23, %v960_v8  ;;  %1780 = vtanh.f32 %v936_v11  ;;  %vm967_vm5 = vweird.f32 %v1777_v23  ;;  %vm949_vm8 = vmor %vm947_vm6, %vm948_vm4  ;;  %vm986_vm13 = vweird.f32 %v980_v21 }
 0x2f4   :  { %v944_v5 = vsub.f32 1.0, %v943_v10  ;;  %vm968_vm9 = vmor %vm966_vm7, %vm967_vm5  ;;  %v973_v10 = vor.u32 1.1754944e-38, %v972_v15  ;;  %v993_v16 = vor.u32 1.1754944e-38, %v992_v20  ;;  %v3753_v20 = vld [vmem:[#allocation23_spill] sm:$0xff] }
 0x2f5   :  { %v963_v17 = vsub.f32 1.0, %v962_v22 }
 0x2f6   :  { %v945_v14 = vmul.f32 %v1775_v7, %v944_v5 }
 0x2f7   :  { %v964_v18 = vmul.f32 %v1777_v23, %v963_v17 }
 0x2f8   :  { %v1779_v6 = vpop.eup %1778  ;;  %v946_v25 = vadd.f32 %v1775_v7, %v945_v14 }
 0x2f9   :  { %v965_v27 = vadd.f32 %v1777_v23, %v964_v18  ;;  %v982_v4 = vmul.f32 %v1779_v6, %v980_v21  ;;  %v1781_v11 = vpop.eup %1780  ;;  %vm987_vm12 = vweird.f32 %v1779_v6  ;;  %v3742_v18 = vld [vmem:[#allocation12_spill] sm:$0xff] }
 0x2fa   :  { %v950_v22 = vsel %vm949_vm8, %v1775_v7, %v946_v25  ;;  %v990_v7 = vand.u32 2147483647, %v980_v21  ;;  %vm988_vm14 = vmor %vm986_vm13, %vm987_vm12  ;;  %v3741_v21 = vld [vmem:[#allocation11_spill] sm:$0xff]  ;;  %v3743_v25 = vld [vmem:[#allocation14_spill] sm:$0xff] }
 0x2fb   :  { %v955_v3 = vsel %vm952_vm10, %v954_v24, %v950_v22  ;;  %v969_v5 = vsel %vm968_vm9, %v1777_v23, %v965_v27  ;;  %v983_v2 = vsub.f32 1.0, %v982_v4  ;;  %v3744_v24 = vld [vmem:[#allocation13_spill] sm:$0xff]  ;;  %v3745_v27 = vld [vmem:[#allocation15_spill] sm:$0xff]  ;;  %v3747_v22 = vld [vmem:[#allocation18_spill] sm:$0xff] }
 0x2fc   :  { %v974_v17 = vsel %vm971_vm11, %v973_v10, %v969_v5  ;;  %v997_v1 = vmul.f32 %v1781_v11, %v955_v3  ;;  %vm991_vm15 = vcmp.eq.f32.partialorder %v990_v7, 8.507059e+37  ;;  %v3739_v3 = vld [vmem:[#allocation10_spill] sm:$0xff]  ;;  %v3746_v10 = vld [vmem:[#allocation16_spill] sm:$0xff]  ;;  %v3748_v11 = vld [vmem:[#allocation17_spill] sm:$0xff] }
 0x2fd   :  { %v996_v12 = vmul.f32 %v974_v17, %v3185_v9  ;;  %v984_v14 = vmul.f32 %v1779_v6, %v983_v2  ;;  %v3735_v9 = vld [vmem:[#allocation6_spill] sm:$0xff]  ;;  %v3738_v2 = vld [vmem:[#allocation8_spill] sm:$0xff]  ;;  %v3749_v5 = vld [vmem:[#allocation19_spill] sm:$0xff] }
 0x2fe   :  { %v3750_v17 = vld [vmem:[#allocation20_spill] sm:$0xff] }
 0x2ff   :  { %v3287_v28 = vadd.f32 %v997_v1, %v996_v12  ;;  %v985_v8 = vadd.f32 %v1779_v6, %v984_v14  ;;  %v3736_v12 = vld [vmem:[#allocation5_spill] sm:$0xff]  ;;  %v3737_v1 = vld [vmem:[#allocation7_spill] sm:$0xff]  ;;  %v3751_v14 = vld [vmem:[#allocation22_spill] sm:$0xff] }
 0x300   :  { %v3754_v7 = vld [vmem:[#allocation24_spill] sm:$0xff] }
 0x301   :  { %1782 = vtanh.f32 %v3287_v28  ;;  %v989_v15 = vsel %vm988_vm14, %v1779_v6, %v985_v8  ;;  %v3740_v6 = vld [vmem:[#allocation9_spill] sm:$0xff] }
 0x302   :  { %v994_v4 = vsel %vm991_vm15, %v993_v16, %v989_v15  ;;  %v3752_v8 = vld [vmem:[#allocation21_spill] sm:$0xff]  ;;  %v3756_v16 = vld [vmem:[#allocation26_spill] sm:$0xff] }
 0x303   :  { %v3755_v15 = vld [vmem:[#allocation25_spill] sm:$0xff] }
 0x307   :  { %v1783_v19 = vpop.eup %1782 }
 0x308   :  { %v1000_v23 = vmul.f32 %v1783_v19, %v994_v4  ;;  %v3757_v19 = vld [vmem:[#allocation27_spill] sm:$0xff]  ;;  %v3758_v4 = vld [vmem:[#allocation28_spill] sm:$0xff] }
 0x30a   :  { %1029 = vmatmul.f32.vlgmr.msrb.gmra.mxu0 %v1000_v23  ;;  %1049 = vmatmul.f32.vlgmr.msrb.gmra.mxu1 %v1000_v23 }
 0x30b   :  { %1069 = vmatmul.f32.vlgmr.msrb.gmra.mxu2 %v1000_v23  ;;  %1089 = vmatmul.f32.vlgmr.msrb.gmra.mxu3 %v1000_v23  ;;  %v3759_v23 = vld [vmem:[#allocation29_spill] sm:$0xff] }
 0x30c   :  { %1331 = vmatpush.msrb.mxu0 %v2829_v39  ;;  %1351 = vmatpush.msrb.mxu1 %v2835_v29 }
 0x30d   :  { %1371 = vmatpush.msrb.mxu2 %v2841_v30  ;;  %1391 = vmatpush.msrb.mxu3 %v2847_v31 }
 0x30e   :  { %1332 = vmatpush.msrb.mxu0 %v2853_v32  ;;  %1352 = vmatpush.msrb.mxu1 %v2859_v33 }
 0x30f   :  { %1372 = vmatpush.msrb.mxu2 %v2865_v34  ;;  %1392 = vmatpush.msrb.mxu3 %v2871_v35 }
 0x310   :  { %1333 = vmatpush.msrb.mxu0 %v2877_v36  ;;  %1353 = vmatpush.msrb.mxu1 %v2883_v37 }
 0x311   :  { %1373 = vmatpush.msrb.mxu2 %v2889_v38  ;;  %1393 = vmatpush.msrb.mxu3 %v2895_v40 }
 0x312   :  { %1334 = vmatpush.msrb.mxu0 %v2901_v41  ;;  %1354 = vmatpush.msrb.mxu1 %v2907_v42 }
 0x313   :  { %1374 = vmatpush.msrb.mxu2 %v2913_v43  ;;  %1394 = vmatpush.msrb.mxu3 %v2919_v47 }
 0x314   :  { %1335 = vmatpush.msrb.mxu0 %v2925_v55  ;;  %1355 = vmatpush.msrb.mxu1 %v2931_v46 }
 0x315   :  { %1375 = vmatpush.msrb.mxu2 %v2937_v60  ;;  %1395 = vmatpush.msrb.mxu3 %v2943_v13 }
 0x316   :  { %1336 = vmatpush.msrb.mxu0 %v2949_v57  ;;  %1356 = vmatpush.msrb.mxu1 %v2955_v52 }
 0x317   :  { %1376 = vmatpush.msrb.mxu2 %v2961_v50  ;;  %1396 = vmatpush.msrb.mxu3 %v2967_v0 }
 0x318   :  { %1337 = vmatpush.msrb.mxu0 %v2973_v49  ;;  %1357 = vmatpush.msrb.mxu1 %v2979_v44 }
 0x319   :  { %1377 = vmatpush.msrb.mxu2 %v2985_v45  ;;  %1397 = vmatpush.msrb.mxu3 %v2991_v63 }
 0x31a   :  { %1338 = vmatpush.msrb.mxu0 %v2997_v51  ;;  %1358 = vmatpush.msrb.mxu1 %v3003_v26 }
 0x31b   :  { %1378 = vmatpush.msrb.mxu2 %v3009_v53  ;;  %1398 = vmatpush.msrb.mxu3 %v3015_v48 }
 0x31c   :  { %1339 = vmatpush.msrb.mxu0 %v3021_v56  ;;  %1359 = vmatpush.msrb.mxu1 %v3027_v61 }
 0x31d   :  { %1379 = vmatpush.msrb.mxu2 %v3033_v54  ;;  %1399 = vmatpush.msrb.mxu3 %v3039_v62 }
 0x31e   :  { %1340 = vmatpush.msrb.mxu0 %v3045_v58  ;;  %1360 = vmatpush.msrb.mxu1 %v3051_v59 }
 0x31f   :  { %1380 = vmatpush.msrb.mxu2 %v3735_v9  ;;  %1400 = vmatpush.msrb.mxu3 %v3736_v12 }
 0x320   :  { %1341 = vmatpush.msrb.mxu0 %v3737_v1  ;;  %1361 = vmatpush.msrb.mxu1 %v3738_v2 }
 0x321   :  { %1381 = vmatpush.msrb.mxu2 %v3739_v3  ;;  %1401 = vmatpush.msrb.mxu3 %v3740_v6 }
 0x322   :  { %1342 = vmatpush.msrb.mxu0 %v3741_v21  ;;  %1362 = vmatpush.msrb.mxu1 %v3742_v18 }
 0x323   :  { %1382 = vmatpush.msrb.mxu2 %v3743_v25  ;;  %1402 = vmatpush.msrb.mxu3 %v3744_v24 }
 0x324   :  { %1343 = vmatpush.msrb.mxu0 %v3745_v27  ;;  %1363 = vmatpush.msrb.mxu1 %v3746_v10 }
 0x325   :  { %1383 = vmatpush.msrb.mxu2 %v3747_v22  ;;  %1403 = vmatpush.msrb.mxu3 %v3748_v11  ;;  %v3761_v11 = vld [vmem:[#allocation43_spill] sm:$0xff]  ;;  %v3762_v22 = vld [vmem:[#allocation44_spill] sm:$0xff] }
 0x326   :  { %1344 = vmatpush.msrb.mxu0 %v3749_v5  ;;  %1364 = vmatpush.msrb.mxu1 %v3750_v17  ;;  %v3760_v5 = vld [vmem:[#allocation30_spill] sm:$0xff] }
 0x327   :  { %1384 = vmatpush.msrb.mxu2 %v3751_v14  ;;  %1404 = vmatpush.msrb.mxu3 %v3752_v8 }
 0x328   :  { %1345 = vmatpush.msrb.mxu0 %v3753_v20  ;;  %1365 = vmatpush.msrb.mxu1 %v3754_v7 }
 0x329   :  { %1385 = vmatpush.msrb.mxu2 %v3755_v15  ;;  %1405 = vmatpush.msrb.mxu3 %v3756_v16  ;;  %v3763_v16 = vld [vmem:[#allocation46_spill] sm:$0xff] }
 0x32a   :  { %1346 = vmatpush.msrb.mxu0 %v3757_v19  ;;  %1366 = vmatpush.msrb.mxu1 %v3758_v4 }
 0x32b   :  { %1386 = vmatpush.msrb.mxu2 %v3759_v23  ;;  %1406 = vmatpush.msrb.mxu3 %v3760_v5 }
 0x387   :  { %v1030_v17 = vpop.f32.mrf.mxu0  ;;  %v1050_v14 = vpop.f32.mrf.mxu1 }
 0x388   :  { %v1093_v8 = vadd.f32 %v1030_v17, %v3761_v11  ;;  %v1094_v20 = vadd.f32 %v1050_v14, %v3762_v22  ;;  %v3764_v22 = vld [vmem:[#allocation45_spill] sm:$0xff] }
 0x38a   :  { %v1706_v10 = vmul.f32 -1.442695, %v1093_v8  ;;  %v1707_v7 = vmul.f32 -1.442695, %v1094_v20 }
 0x38c   :  { %1784 = vpow2.f32 %v1706_v10 }
 0x38d   :  { %1786 = vpow2.f32 %v1707_v7 }
 0x38e   :  { %v1090_v15 = vpop.f32.mrf.mxu3  ;;  %v1070_v5 = vpop.f32.mrf.mxu2 }
 0x38f   :  { %v1096_v27 = vadd.f32 %v1090_v15, %v3763_v16  ;;  %v1095_v14 = vadd.f32 %v1070_v5, %v3764_v22 }
 0x391   :  { %v1708_v19 = vmul.f32 -1.442695, %v1096_v27 }
 0x392   :  { %v1785_v24 = vpop.eup %1784 }
 0x393   :  { %v1787_v4 = vpop.eup %1786  ;;  %v1100_v25 = vadd.f32 1.0, %v1785_v24  ;;  %1788 = vpow2.f32 %v1708_v19 }
 0x394   :  { %v1119_v23 = vadd.f32 1.0, %v1787_v4 }
 0x395   :  { %1790 = vrcp.f32 %v1100_v25  ;;  %v1112_v27 = vand.u32 2147483648, %v1100_v25  ;;  %v1110_v19 = vand.u32 2147483647, %v1100_v25  ;;  %vm1106_vm2 = vweird.f32 %v1100_v25 }
 0x396   :  { %1792 = vrcp.f32 %v1119_v23  ;;  %v1131_v16 = vand.u32 2147483648, %v1119_v23  ;;  %v1129_v21 = vand.u32 2147483647, %v1119_v23  ;;  %vm1125_vm3 = vweird.f32 %v1119_v23 }
 0x397   :  { %v1113_v5 = vor.u32 1.1754944e-38, %v1112_v27  ;;  %vm1111_vm6 = vcmp.eq.f32.partialorder %v1110_v19, 8.507059e+37 }
 0x398   :  { %vm1130_vm7 = vcmp.eq.f32.partialorder %v1129_v21, 8.507059e+37 }
 0x399   :  { %v1789_v18 = vpop.eup %1788 }
 0x39a   :  { %v1139_v11 = vadd.f32 1.0, %v1789_v18 }
 0x39b   :  { %v1791_v17 = vpop.eup %1790 }
 0x39c   :  { %v1793_v8 = vpop.eup %1792  ;;  %v1102_v10 = vmul.f32 %v1791_v17, %v1100_v25  ;;  %1794 = vrcp.f32 %v1139_v11  ;;  %vm1107_vm0 = vweird.f32 %v1791_v17  ;;  %v1151_v27 = vand.u32 2147483648, %v1139_v11 }
 0x39d   :  { %v1121_v20 = vmul.f32 %v1793_v8, %v1119_v23  ;;  %1796 = vtanh.f32 %v1095_v14  ;;  %vm1126_vm1 = vweird.f32 %v1793_v8  ;;  %vm1108_vm4 = vmor %vm1106_vm2, %vm1107_vm0  ;;  %vm1145_vm9 = vweird.f32 %v1139_v11 }
 0x39e   :  { %v1103_v7 = vsub.f32 1.0, %v1102_v10  ;;  %vm1127_vm5 = vmor %vm1125_vm3, %vm1126_vm1  ;;  %v1132_v10 = vor.u32 1.1754944e-38, %v1131_v16  ;;  %v1152_v19 = vor.u32 1.1754944e-38, %v1151_v27 }
 0x39f   :  { %v1122_v15 = vsub.f32 1.0, %v1121_v20 }
 0x3a0   :  { %v1104_v24 = vmul.f32 %v1791_v17, %v1103_v7 }
 0x3a1   :  { %v1123_v4 = vmul.f32 %v1793_v8, %v1122_v15 }
 0x3a2   :  { %v1795_v6 = vpop.eup %1794  ;;  %v1105_v18 = vadd.f32 %v1791_v17, %v1104_v24 }
 0x3a3   :  { %v1124_v22 = vadd.f32 %v1793_v8, %v1123_v4  ;;  %v1141_v3 = vmul.f32 %v1795_v6, %v1139_v11  ;;  %v1797_v14 = vpop.eup %1796  ;;  %vm1146_vm8 = vweird.f32 %v1795_v6 }
 0x3a4   :  { %v1109_v20 = vsel %vm1108_vm4, %v1791_v17, %v1105_v18  ;;  %v1149_v17 = vand.u32 2147483647, %v1139_v11  ;;  %vm1147_vm10 = vmor %vm1145_vm9, %vm1146_vm8  ;;  %v3794_v18 = vld [vmem:[#allocation49_spill] sm:$0xff] }
 0x3a5   :  { %v1114_v2 = vsel %vm1111_vm6, %v1113_v5, %v1109_v20  ;;  %v1128_v7 = vsel %vm1127_vm5, %v1793_v8, %v1124_v22  ;;  %v1142_v1 = vsub.f32 1.0, %v1141_v3 }
 0x3a6   :  { %v1133_v15 = vsel %vm1130_vm7, %v1132_v10, %v1128_v7  ;;  %v1156_v12 = vmul.f32 %v1797_v14, %v1114_v2  ;;  %vm1150_vm11 = vcmp.eq.f32.partialorder %v1149_v17, 8.507059e+37 }
 0x3a7   :  { %v1155_v9 = vmul.f32 %v1133_v15, %v3287_v28  ;;  %v1143_v24 = vmul.f32 %v1795_v6, %v1142_v1 }
 0x3a9   :  { %v3359_v25 = vadd.f32 %v1156_v12, %v1155_v9  ;;  %v1144_v23 = vadd.f32 %v1795_v6, %v1143_v24 }
 0x3ab   :  { %1798 = vtanh.f32 %v3359_v25  ;;  %v1148_v16 = vsel %vm1147_vm10, %v1795_v6, %v1144_v23 }
 0x3ac   :  { %v1153_v3 = vsel %vm1150_vm11, %v1152_v19, %v1148_v16 }
 0x3b1   :  { %v1799_v21 = vpop.eup %1798 }
 0x3b2   :  { %v1159_v8 = vmul.f32 %v1799_v21, %v1153_v3 }
 0x3b4   :  { %1188 = vmatmul.f32.vlgmr.msra.gmra.mxu0 %v1159_v8  ;;  %1208 = vmatmul.f32.vlgmr.msra.gmra.mxu1 %v1159_v8 }
 0x3b5   :  { %1228 = vmatmul.f32.vlgmr.msra.gmra.mxu2 %v1159_v8  ;;  %1248 = vmatmul.f32.vlgmr.msra.gmra.mxu3 %v1159_v8 }
 0x3b6   :  { %1490 = vmatpush.msra.mxu0 %v2829_v39  ;;  %1510 = vmatpush.msra.mxu1 %v2835_v29  ;;  %v3765_v39 = vld [vmem:[#allocation6_spill] sm:$0xff]  ;;  %v3766_v29 = vld [vmem:[#allocation5_spill] sm:$0xff] }
 0x3b7   :  { %1530 = vmatpush.msra.mxu2 %v2841_v30  ;;  %1550 = vmatpush.msra.mxu3 %v2847_v31  ;;  %v3767_v30 = vld [vmem:[#allocation7_spill] sm:$0xff]  ;;  %v3768_v31 = vld [vmem:[#allocation8_spill] sm:$0xff] }
 0x3b8   :  { %1491 = vmatpush.msra.mxu0 %v2853_v32  ;;  %1511 = vmatpush.msra.mxu1 %v2859_v33  ;;  %v3769_v32 = vld [vmem:[#allocation10_spill] sm:$0xff]  ;;  %v3770_v33 = vld [vmem:[#allocation9_spill] sm:$0xff] }
 0x3b9   :  { %1531 = vmatpush.msra.mxu2 %v2865_v34  ;;  %1551 = vmatpush.msra.mxu3 %v2871_v35  ;;  %v3771_v34 = vld [vmem:[#allocation11_spill] sm:$0xff]  ;;  %v3772_v35 = vld [vmem:[#allocation12_spill] sm:$0xff] }
 0x3ba   :  { %1492 = vmatpush.msra.mxu0 %v2877_v36  ;;  %1512 = vmatpush.msra.mxu1 %v2883_v37  ;;  %v3773_v36 = vld [vmem:[#allocation14_spill] sm:$0xff]  ;;  %v3774_v37 = vld [vmem:[#allocation13_spill] sm:$0xff] }
 0x3bb   :  { %1532 = vmatpush.msra.mxu2 %v2889_v38  ;;  %1552 = vmatpush.msra.mxu3 %v2895_v40  ;;  %v3775_v38 = vld [vmem:[#allocation15_spill] sm:$0xff]  ;;  %v3776_v40 = vld [vmem:[#allocation16_spill] sm:$0xff] }
 0x3bc   :  { %1493 = vmatpush.msra.mxu0 %v2901_v41  ;;  %1513 = vmatpush.msra.mxu1 %v2907_v42  ;;  %v3777_v41 = vld [vmem:[#allocation18_spill] sm:$0xff]  ;;  %v3778_v42 = vld [vmem:[#allocation17_spill] sm:$0xff] }
 0x3bd   :  { %1533 = vmatpush.msra.mxu2 %v2913_v43  ;;  %1553 = vmatpush.msra.mxu3 %v2919_v47  ;;  %v3779_v43 = vld [vmem:[#allocation19_spill] sm:$0xff]  ;;  %v3780_v47 = vld [vmem:[#allocation20_spill] sm:$0xff] }
 0x3be   :  { %1494 = vmatpush.msra.mxu0 %v2925_v55  ;;  %1514 = vmatpush.msra.mxu1 %v2931_v46  ;;  %v3781_v55 = vld [vmem:[#allocation22_spill] sm:$0xff]  ;;  %v3782_v46 = vld [vmem:[#allocation21_spill] sm:$0xff] }
 0x3bf   :  { %1534 = vmatpush.msra.mxu2 %v2937_v60  ;;  %1554 = vmatpush.msra.mxu3 %v2943_v13  ;;  %v3783_v60 = vld [vmem:[#allocation23_spill] sm:$0xff]  ;;  %v3784_v13 = vld [vmem:[#allocation24_spill] sm:$0xff] }
 0x3c0   :  { %1495 = vmatpush.msra.mxu0 %v2949_v57  ;;  %1515 = vmatpush.msra.mxu1 %v2955_v52  ;;  %v3785_v57 = vld [vmem:[#allocation25_spill] sm:$0xff]  ;;  %v3786_v52 = vld [vmem:[#allocation26_spill] sm:$0xff] }
 0x3c1   :  { %1535 = vmatpush.msra.mxu2 %v2961_v50  ;;  %1555 = vmatpush.msra.mxu3 %v2967_v0  ;;  %v3787_v50 = vld [vmem:[#allocation27_spill] sm:$0xff]  ;;  %v3788_v0 = vld [vmem:[#allocation28_spill] sm:$0xff] }
 0x3c2   :  { %1496 = vmatpush.msra.mxu0 %v2973_v49  ;;  %1516 = vmatpush.msra.mxu1 %v2979_v44  ;;  %v3789_v49 = vld [vmem:[#allocation29_spill] sm:$0xff]  ;;  %v3790_v44 = vld [vmem:[#allocation30_spill] sm:$0xff] }
 0x3c3   :  { %1536 = vmatpush.msra.mxu2 %v2985_v45  ;;  %1556 = vmatpush.msra.mxu3 %v2991_v63 }
 0x3c4   :  { %1497 = vmatpush.msra.mxu0 %v2997_v51  ;;  %1517 = vmatpush.msra.mxu1 %v3003_v26  ;;  %v3791_v51 = vld [vmem:[#allocation47_spill] sm:$0xff] }
 0x3c5   :  { %1537 = vmatpush.msra.mxu2 %v3009_v53  ;;  %1557 = vmatpush.msra.mxu3 %v3015_v48  ;;  %v3792_v53 = vld [vmem:[#allocation48_spill] sm:$0xff] }
 0x3c6   :  { %1498 = vmatpush.msra.mxu0 %v3021_v56  ;;  %1518 = vmatpush.msra.mxu1 %v3027_v61 }
 0x3c7   :  { %1538 = vmatpush.msra.mxu2 %v3033_v54  ;;  %1558 = vmatpush.msra.mxu3 %v3039_v62  ;;  %v3793_v62 = vld [vmem:[#allocation50_spill] sm:$0xff] }
 0x3c8   :  { %1499 = vmatpush.msra.mxu0 %v3045_v58  ;;  %1519 = vmatpush.msra.mxu1 %v3051_v59 }
 0x3c9   :  { %1539 = vmatpush.msra.mxu2 %v3765_v39  ;;  %1559 = vmatpush.msra.mxu3 %v3766_v29 }
 0x3ca   :  { %1500 = vmatpush.msra.mxu0 %v3767_v30  ;;  %1520 = vmatpush.msra.mxu1 %v3768_v31 }
 0x3cb   :  { %1540 = vmatpush.msra.mxu2 %v3769_v32  ;;  %1560 = vmatpush.msra.mxu3 %v3770_v33 }
 0x3cc   :  { %1501 = vmatpush.msra.mxu0 %v3771_v34  ;;  %1521 = vmatpush.msra.mxu1 %v3772_v35 }
 0x3cd   :  { %1541 = vmatpush.msra.mxu2 %v3773_v36  ;;  %1561 = vmatpush.msra.mxu3 %v3774_v37 }
 0x3ce   :  { %1502 = vmatpush.msra.mxu0 %v3775_v38  ;;  %1522 = vmatpush.msra.mxu1 %v3776_v40 }
 0x3cf   :  { %1542 = vmatpush.msra.mxu2 %v3777_v41  ;;  %1562 = vmatpush.msra.mxu3 %v3778_v42 }
 0x3d0   :  { %1503 = vmatpush.msra.mxu0 %v3779_v43  ;;  %1523 = vmatpush.msra.mxu1 %v3780_v47 }
 0x3d1   :  { %1543 = vmatpush.msra.mxu2 %v3781_v55  ;;  %1563 = vmatpush.msra.mxu3 %v3782_v46 }
 0x3d2   :  { %1504 = vmatpush.msra.mxu0 %v3783_v60  ;;  %1524 = vmatpush.msra.mxu1 %v3784_v13 }
 0x3d3   :  { %1544 = vmatpush.msra.mxu2 %v3785_v57  ;;  %1564 = vmatpush.msra.mxu3 %v3786_v52  ;;  %v3795_v52 = vld [vmem:[#allocation51_spill] sm:$0xff] }
 0x3d4   :  { %1505 = vmatpush.msra.mxu0 %v3787_v50  ;;  %1525 = vmatpush.msra.mxu1 %v3788_v0  ;;  %v3796_v0 = vld [vmem:[#allocation52_spill] sm:$0xff] }
 0x3d5   :  { %1545 = vmatpush.msra.mxu2 %v3789_v49  ;;  %1565 = vmatpush.msra.mxu3 %v3790_v44 }
 0x431   :  { %v1189_v45 = vpop.f32.mrf.mxu0  ;;  %v1209_v63 = vpop.f32.mrf.mxu1 }
 0x432   :  { %v1252_v26 = vadd.f32 %v1189_v45, %v3791_v51  ;;  %v1253_v48 = vadd.f32 %v1209_v63, %v3792_v53  ;;  %v3797_v51 = vld [vmem:[#allocation54_spill] sm:$0xff] }
 0x434   :  { %v1709_v56 = vmul.f32 -1.442695, %v1252_v26  ;;  %v1710_v61 = vmul.f32 -1.442695, %v1253_v48 }
 0x436   :  { %1800 = vpow2.f32 %v1709_v56 }
 0x437   :  { %1802 = vpow2.f32 %v1710_v61 }
 0x438   :  { %v1249_v54 = vpop.f32.mrf.mxu3  ;;  %v1229_v2 = vpop.f32.mrf.mxu2 }
 0x439   :  { %v1255_v58 = vadd.f32 %v1249_v54, %v3793_v62  ;;  %v1254_v5 = vadd.f32 %v1229_v2, %v3794_v18 }
 0x43b   :  { %v1711_v59 = vmul.f32 -1.442695, %v1255_v58 }
 0x43c   :  { %v1801_v28 = vpop.eup %1800 }
 0x43d   :  { %v1803_v9 = vpop.eup %1802  ;;  %v1259_v12 = vadd.f32 1.0, %v1801_v28  ;;  %1804 = vpow2.f32 %v1711_v59 }
 0x43e   :  { %v1278_v1 = vadd.f32 1.0, %v1803_v9  ;;  %v3798_v9 = vld [vmem:[#allocation53_spill] sm:$0xff] }
 0x43f   :  { %1806 = vrcp.f32 %v1259_v12  ;;  %v1271_v15 = vand.u32 2147483648, %v1259_v12  ;;  %v1269_v27 = vand.u32 2147483647, %v1259_v12  ;;  %vm1265_vm14 = vweird.f32 %v1259_v12 }
 0x440   :  { %1808 = vrcp.f32 %v1278_v1  ;;  %v1290_v24 = vand.u32 2147483648, %v1278_v1  ;;  %v1288_v16 = vand.u32 2147483647, %v1278_v1  ;;  %vm1284_vm15 = vweird.f32 %v1278_v1 }
 0x441   :  { %v1272_v3 = vor.u32 1.1754944e-38, %v1271_v15  ;;  %vm1270_vm2 = vcmp.eq.f32.partialorder %v1269_v27, 8.507059e+37 }
 0x442   :  { %v1291_v29 = vor.u32 1.1754944e-38, %v1290_v24  ;;  %vm1289_vm3 = vcmp.eq.f32.partialorder %v1288_v16, 8.507059e+37 }
 0x443   :  { %v1805_v6 = vpop.eup %1804 }
 0x444   :  { %v1298_v11 = vadd.f32 1.0, %v1805_v6 }
 0x445   :  { %v1807_v4 = vpop.eup %1806 }
 0x446   :  { %v1809_v22 = vpop.eup %1808  ;;  %v1261_v10 = vmul.f32 %v1807_v4, %v1259_v12  ;;  %1810 = vrcp.f32 %v1298_v11  ;;  %vm1266_vm12 = vweird.f32 %v1807_v4  ;;  %v1310_v42 = vand.u32 2147483648, %v1298_v11 }
 0x447   :  { %v1280_v20 = vmul.f32 %v1809_v22, %v1278_v1  ;;  %1812 = vtanh.f32 %v1254_v5  ;;  %vm1285_vm13 = vweird.f32 %v1809_v22  ;;  %vm1267_vm0 = vmor %vm1265_vm14, %vm1266_vm12  ;;  %vm1304_vm5 = vweird.f32 %v1298_v11 }
 0x448   :  { %v1262_v14 = vsub.f32 1.0, %v1261_v10  ;;  %vm1286_vm1 = vmor %vm1284_vm15, %vm1285_vm13  ;;  %v1308_v43 = vand.u32 2147483647, %v1298_v11  ;;  %v1311_v55 = vor.u32 1.1754944e-38, %v1310_v42 }
 0x449   :  { %v1281_v7 = vsub.f32 1.0, %v1280_v20 }
 0x44a   :  { %v1263_v23 = vmul.f32 %v1807_v4, %v1262_v14  ;;  %vm1309_vm7 = vcmp.eq.f32.partialorder %v1308_v43, 8.507059e+37  ;;  %v1663_v43 = vld [vmem:[%s3506_s4 + $0x70] sm:$0xff] }
 0x44b   :  { %v1282_v17 = vmul.f32 %v1809_v22, %v1281_v7 }
 0x44c   :  { %v1811_v19 = vpop.eup %1810  ;;  %v1264_v21 = vadd.f32 %v1807_v4, %v1263_v23 }
 0x44d   :  { %v1283_v8 = vadd.f32 %v1809_v22, %v1282_v17  ;;  %v1300_v39 = vmul.f32 %v1811_v19, %v1298_v11  ;;  %v1813_v31 = vpop.eup %1812  ;;  %vm1305_vm4 = vweird.f32 %v1811_v19 }
 0x44e   :  { %v1268_v30 = vsel %vm1267_vm0, %v1807_v4, %v1264_v21  ;;  %vm1306_vm6 = vmor %vm1304_vm5, %vm1305_vm4 }
 0x44f   :  { %v1273_v32 = vsel %vm1270_vm2, %v1272_v3, %v1268_v30  ;;  %v1287_v33 = vsel %vm1286_vm1, %v1809_v22, %v1283_v8  ;;  %v1301_v34 = vsub.f32 1.0, %v1300_v39 }
 0x450   :  { %v1292_v35 = vsel %vm1289_vm3, %v1291_v29, %v1287_v33  ;;  %v1315_v36 = vmul.f32 %v1813_v31, %v1273_v32 }
 0x451   :  { %v1314_v37 = vmul.f32 %v1292_v35, %v3359_v25  ;;  %v1302_v38 = vmul.f32 %v1811_v19, %v1301_v34 }
 0x453   :  { %v3431_v40 = vadd.f32 %v1315_v36, %v1314_v37  ;;  %v1303_v41 = vadd.f32 %v1811_v19, %v1302_v38 }
 0x455   :  { %1814 = vtanh.f32 %v3431_v40  ;;  %v1307_v47 = vsel %vm1306_vm6, %v1811_v19, %v1303_v41 }
 0x456   :  { %v1312_v60 = vsel %vm1309_vm7, %v1311_v55, %v1307_v47  ;;  %v1662_v47 = vld [vmem:[%s3506_s4 + $0x68] sm:$0xff]  ;;  %v1661_v55 = vld [vmem:[%s3506_s4 + $0x60] sm:$0xff] }
 0x45b   :  { %v1815_v46 = vpop.eup %1814 }
 0x45c   :  { %v1318_v13 = vmul.f32 %v1815_v46, %v1312_v60  ;;  %v1660_v46 = vld [vmem:[%s3506_s4 + $0x58] sm:$0xff]  ;;  %v1659_v60 = vld [vmem:[%s3506_s4 + $0x50] sm:$0xff] }
 0x45e   :  { %1347 = vmatmul.f32.vlgmr.msrb.gmra.mxu0 %v1318_v13  ;;  %1367 = vmatmul.f32.vlgmr.msrb.gmra.mxu1 %v1318_v13 }
 0x45f   :  { %1387 = vmatmul.f32.vlgmr.msrb.gmra.mxu2 %v1318_v13  ;;  %1407 = vmatmul.f32.vlgmr.msrb.gmra.mxu3 %v1318_v13  ;;  %v1658_v13 = vld [vmem:[%s3506_s4 + $0x48] sm:$0xff] }
 0x4db   :  { %v1348_v25 = vpop.f32.mrf.mxu0  ;;  %v1368_v57 = vpop.f32.mrf.mxu1 }
 0x4dc   :  { %v1411_v50 = vadd.f32 %v1348_v25, %v3795_v52  ;;  %v1412_v49 = vadd.f32 %v1368_v57, %v3796_v0  ;;  %v1657_v25 = vld [vmem:[%s3506_s4 + $0x40] sm:$0xff]  ;;  %v1656_v57 = vld [vmem:[%s3506_s4 + $0x38] sm:$0xff]  ;;  %v1655_v52 = vld [vmem:[%s3506_s4 + $0x30] sm:$0xff] }
 0x4de   :  { %v1712_v44 = vmul.f32 -1.442695, %v1411_v50  ;;  %v1713_v45 = vmul.f32 -1.442695, %v1412_v49  ;;  %v3799_v49 = vld [vmem:[#allocation55_spill] sm:$0xff] }
 0x4e0   :  { %1816 = vpow2.f32 %v1712_v44 }
 0x4e1   :  { %1818 = vpow2.f32 %v1713_v45  ;;  %v3800_v45 = vld [vmem:[#allocation56_spill] sm:$0xff] }
 0x4e2   :  { %v1408_v63 = vpop.f32.mrf.mxu3  ;;  %v1388_v62 = vpop.f32.mrf.mxu2 }
 0x4e3   :  { %v1414_v26 = vadd.f32 %v1408_v63, %v3797_v51  ;;  %v1413_v12 = vadd.f32 %v1388_v62, %v3798_v9  ;;  %v1654_v51 = vld [vmem:[%s3506_s4 + $0x28] sm:$0xff] }
 0x4e4   :  { %v1650_v62 = vld [vmem:[%s3506_s4 + $0x8] sm:$0xff] }
 0x4e5   :  { %v1714_v53 = vmul.f32 -1.442695, %v1414_v26 }
 0x4e6   :  { %v1817_v48 = vpop.eup %1816 }
 0x4e7   :  { %v1819_v56 = vpop.eup %1818  ;;  %v1418_v61 = vadd.f32 1.0, %v1817_v48  ;;  %1820 = vpow2.f32 %v1714_v53  ;;  %v1653_v48 = vld [vmem:[%s3506_s4 + $0x20] sm:$0xff] }
 0x4e8   :  { %v1437_v54 = vadd.f32 1.0, %v1819_v56  ;;  %v1652_v56 = vld [vmem:[%s3506_s4 + $0x18] sm:$0xff] }
 0x4e9   :  { %1822 = vrcp.f32 %v1418_v61  ;;  %v1430_v18 = vand.u32 2147483648, %v1418_v61  ;;  %v1428_v10 = vand.u32 2147483647, %v1418_v61  ;;  %vm1424_vm10 = vweird.f32 %v1418_v61 }
 0x4ea   :  { %1824 = vrcp.f32 %v1437_v54  ;;  %v1449_v5 = vand.u32 2147483648, %v1437_v54  ;;  %v1447_v14 = vand.u32 2147483647, %v1437_v54  ;;  %vm1443_vm11 = vweird.f32 %v1437_v54 }
 0x4eb   :  { %v1431_v24 = vor.u32 1.1754944e-38, %v1430_v18  ;;  %vm1429_vm14 = vcmp.eq.f32.partialorder %v1428_v10, 8.507059e+37 }
 0x4ec   :  { %v1450_v17 = vor.u32 1.1754944e-38, %v1449_v5  ;;  %vm1448_vm15 = vcmp.eq.f32.partialorder %v1447_v14, 8.507059e+37 }
 0x4ed   :  { %v1821_v58 = vpop.eup %1820 }
 0x4ee   :  { %v1457_v59 = vadd.f32 1.0, %v1821_v58  ;;  %v3801_v58 = vld [vmem:[#allocation58_spill] sm:$0xff] }
 0x4ef   :  { %v1823_v28 = vpop.eup %1822 }
 0x4f0   :  { %v1825_v1 = vpop.eup %1824  ;;  %v1420_v2 = vmul.f32 %v1823_v28, %v1418_v61  ;;  %1826 = vrcp.f32 %v1457_v59  ;;  %vm1425_vm8 = vweird.f32 %v1823_v28  ;;  %v1469_v34 = vand.u32 2147483648, %v1457_v59  ;;  %v1651_v61 = vld [vmem:[%s3506_s4 + $0x10] sm:$0xff] }
 0x4f1   :  { %v1439_v6 = vmul.f32 %v1825_v1, %v1437_v54  ;;  %1828 = vtanh.f32 %v1413_v12  ;;  %vm1444_vm9 = vweird.f32 %v1825_v1  ;;  %vm1426_vm12 = vmor %vm1424_vm10, %vm1425_vm8  ;;  %vm1463_vm1 = vweird.f32 %v1457_v59 }
 0x4f2   :  { %v1421_v11 = vsub.f32 1.0, %v1420_v2  ;;  %vm1445_vm13 = vmor %vm1443_vm11, %vm1444_vm9  ;;  %v1467_v35 = vand.u32 2147483647, %v1457_v59  ;;  %v1470_v37 = vor.u32 1.1754944e-38, %v1469_v34 }
 0x4f3   :  { %v1440_v4 = vsub.f32 1.0, %v1439_v6 }
 0x4f4   :  { %v1422_v22 = vmul.f32 %v1823_v28, %v1421_v11  ;;  %vm1468_vm3 = vcmp.eq.f32.partialorder %v1467_v35, 8.507059e+37 }
 0x4f5   :  { %v1441_v20 = vmul.f32 %v1825_v1, %v1440_v4 }
 0x4f6   :  { %v1827_v7 = vpop.eup %1826  ;;  %v1423_v15 = vadd.f32 %v1823_v28, %v1422_v22  ;;  %v3802_v22 = vld [vmem:[#allocation57_spill] sm:$0xff] }
 0x4f7   :  { %v1442_v23 = vadd.f32 %v1825_v1, %v1441_v20  ;;  %v1459_v27 = vmul.f32 %v1827_v7, %v1457_v59  ;;  %v1829_v19 = vpop.eup %1828  ;;  %vm1464_vm0 = vweird.f32 %v1827_v7 }
 0x4f8   :  { %v1427_v16 = vsel %vm1426_vm12, %v1823_v28, %v1423_v15  ;;  %vm1465_vm2 = vmor %vm1463_vm1, %vm1464_vm0  ;;  %v1649_v28 = vld [vmem:[%s3506_s4] sm:$0xff] }
 0x4f9   :  { %v1432_v21 = vsel %vm1429_vm14, %v1431_v24, %v1427_v16  ;;  %v1446_v3 = vsel %vm1445_vm13, %v1825_v1, %v1442_v23  ;;  %v1460_v8 = vsub.f32 1.0, %v1459_v27 }
 0x4fa   :  { %v1451_v39 = vsel %vm1448_vm15, %v1450_v17, %v1446_v3  ;;  %v1474_v29 = vmul.f32 %v1829_v19, %v1432_v21 }
 0x4fb   :  { %v1473_v30 = vmul.f32 %v1451_v39, %v3431_v40  ;;  %v1461_v31 = vmul.f32 %v1827_v7, %v1460_v8  ;;  %v1664_v40 = vld [vmem:[%s3506_s4 + $0x78] sm:$0xff] }
 0x4fc   :  { %1669 = vmatpush.msrb.mxu0 %v1664_v40 }
 0x4fd   :  { %v3439_v32 = vadd.f32 %v1474_v29, %v1473_v30  ;;  %v1462_v33 = vadd.f32 %v1827_v7, %v1461_v31 }
 0x4fe   :  { %1670 = vmatpush.msrb.mxu0 %v1663_v43 }
 0x4ff   :  { %1830 = vtanh.f32 %v3439_v32  ;;  %v1466_v36 = vsel %vm1465_vm2, %v1827_v7, %v1462_v33 }
 0x500   :  { %v1471_v41 = vsel %vm1468_vm3, %v1470_v37, %v1466_v36  ;;  %1671 = vmatpush.msrb.mxu0 %v1662_v47 }
 0x502   :  { %1672 = vmatpush.msrb.mxu0 %v1661_v55 }
 0x504   :  { %1673 = vmatpush.msrb.mxu0 %v1660_v46 }
 0x505   :  { %v1831_v38 = vpop.eup %1830 }
 0x506   :  { %v1477_v42 = vmul.f32 %v1831_v38, %v1471_v41  ;;  %1674 = vmatpush.msrb.mxu0 %v1659_v60 }
 0x508   :  { %1506 = vmatmul.f32.vlgmr.msra.gmra.mxu0 %v1477_v42  ;;  %1526 = vmatmul.f32.vlgmr.msra.gmra.mxu1 %v1477_v42 }
 0x509   :  { %1546 = vmatmul.f32.vlgmr.msra.gmra.mxu2 %v1477_v42  ;;  %1566 = vmatmul.f32.vlgmr.msra.gmra.mxu3 %v1477_v42 }
 0x50a   :  { %1675 = vmatpush.msrb.mxu0 %v1658_v13 }
 0x50c   :  { %1676 = vmatpush.msrb.mxu0 %v1657_v25 }
 0x50e   :  { %1677 = vmatpush.msrb.mxu0 %v1656_v57 }
 0x510   :  { %1678 = vmatpush.msrb.mxu0 %v1655_v52 }
 0x512   :  { %1679 = vmatpush.msrb.mxu0 %v1654_v51 }
 0x514   :  { %1680 = vmatpush.msrb.mxu0 %v1653_v48 }
 0x516   :  { %1681 = vmatpush.msrb.mxu0 %v1652_v56 }
 0x518   :  { %1682 = vmatpush.msrb.mxu0 %v1651_v61 }
 0x51a   :  { %1683 = vmatpush.msrb.mxu0 %v1650_v62 }
 0x51c   :  { %1684 = vmatpush.msrb.mxu0 %v1649_v28 }
 0x585   :  { %v1507_v50 = vpop.f32.mrf.mxu0  ;;  %v1527_v0 = vpop.f32.mrf.mxu1 }
 0x586   :  { %v1570_v44 = vadd.f32 %v1507_v50, %v3799_v49  ;;  %v1571_v63 = vadd.f32 %v1527_v0, %v3800_v45 }
 0x588   :  { %v1715_v26 = vmul.f32 -1.442695, %v1570_v44  ;;  %v1716_v53 = vmul.f32 -1.442695, %v1571_v63 }
 0x58a   :  { %1832 = vpow2.f32 %v1715_v26 }
 0x58b   :  { %1834 = vpow2.f32 %v1716_v53 }
 0x58c   :  { %v1567_v54 = vpop.f32.mrf.mxu3  ;;  %v1547_v11 = vpop.f32.mrf.mxu2 }
 0x58d   :  { %v1573_v59 = vadd.f32 %v1567_v54, %v3801_v58  ;;  %v1572_v10 = vadd.f32 %v1547_v11, %v3802_v22 }
 0x58f   :  { %v1717_v9 = vmul.f32 -1.442695, %v1573_v59 }
 0x590   :  { %v1833_v12 = vpop.eup %1832 }
 0x591   :  { %v1835_v1 = vpop.eup %1834  ;;  %v1577_v2 = vadd.f32 1.0, %v1833_v12  ;;  %1836 = vpow2.f32 %v1717_v9 }
 0x592   :  { %v1596_v6 = vadd.f32 1.0, %v1835_v1 }
 0x593   :  { %1838 = vrcp.f32 %v1577_v2  ;;  %v1589_v23 = vand.u32 2147483648, %v1577_v2  ;;  %v1587_v16 = vand.u32 2147483647, %v1577_v2  ;;  %vm1583_vm6 = vweird.f32 %v1577_v2 }
 0x594   :  { %1840 = vrcp.f32 %v1596_v6  ;;  %v1608_v27 = vand.u32 2147483648, %v1596_v6  ;;  %v1606_v21 = vand.u32 2147483647, %v1596_v6  ;;  %vm1602_vm7 = vweird.f32 %v1596_v6 }
 0x595   :  { %v1590_v39 = vor.u32 1.1754944e-38, %v1589_v23  ;;  %vm1588_vm10 = vcmp.eq.f32.partialorder %v1587_v16, 8.507059e+37 }
 0x596   :  { %v1609_v31 = vor.u32 1.1754944e-38, %v1608_v27  ;;  %vm1607_vm11 = vcmp.eq.f32.partialorder %v1606_v21, 8.507059e+37 }
 0x597   :  { %v1837_v4 = vpop.eup %1836 }
 0x598   :  { %v1616_v18 = vadd.f32 1.0, %v1837_v4 }
 0x599   :  { %v1839_v5 = vpop.eup %1838 }
 0x59a   :  { %v1841_v20 = vpop.eup %1840  ;;  %v1579_v14 = vmul.f32 %v1839_v5, %v1577_v2  ;;  %1842 = vrcp.f32 %v1616_v18  ;;  %vm1584_vm4 = vweird.f32 %v1839_v5  ;;  %v1628_v55 = vand.u32 2147483648, %v1616_v18 }
 0x59b   :  { %v1598_v7 = vmul.f32 %v1841_v20, %v1596_v6  ;;  %1844 = vtanh.f32 %v1572_v10  ;;  %vm1603_vm5 = vweird.f32 %v1841_v20  ;;  %vm1585_vm8 = vmor %vm1583_vm6, %vm1584_vm4  ;;  %vm1622_vm13 = vweird.f32 %v1616_v18 }
 0x59c   :  { %v1580_v15 = vsub.f32 1.0, %v1579_v14  ;;  %vm1604_vm9 = vmor %vm1602_vm7, %vm1603_vm5  ;;  %v1626_v46 = vand.u32 2147483647, %v1616_v18  ;;  %v1629_v13 = vor.u32 1.1754944e-38, %v1628_v55 }
 0x59d   :  { %v1599_v24 = vsub.f32 1.0, %v1598_v7 }
 0x59e   :  { %v1581_v17 = vmul.f32 %v1839_v5, %v1580_v15  ;;  %vm1627_vm15 = vcmp.eq.f32.partialorder %v1626_v46, 8.507059e+37 }
 0x59f   :  { %v1600_v19 = vmul.f32 %v1841_v20, %v1599_v24 }
 0x5a0   :  { %v1843_v3 = vpop.eup %1842  ;;  %v1582_v8 = vadd.f32 %v1839_v5, %v1581_v17 }
 0x5a1   :  { %v1601_v29 = vadd.f32 %v1841_v20, %v1600_v19  ;;  %v1618_v30 = vmul.f32 %v1843_v3, %v1616_v18  ;;  %v1845_v34 = vpop.eup %1844  ;;  %vm1623_vm12 = vweird.f32 %v1843_v3 }
 0x5a2   :  { %v1586_v33 = vsel %vm1585_vm8, %v1839_v5, %v1582_v8  ;;  %vm1624_vm14 = vmor %vm1622_vm13, %vm1623_vm12 }
 0x5a3   :  { %v1591_v35 = vsel %vm1588_vm10, %v1590_v39, %v1586_v33  ;;  %v1605_v36 = vsel %vm1604_vm9, %v1841_v20, %v1601_v29  ;;  %v1619_v37 = vsub.f32 1.0, %v1618_v30 }
 0x5a4   :  { %v1610_v38 = vsel %vm1607_vm11, %v1609_v31, %v1605_v36  ;;  %v1633_v41 = vmul.f32 %v1845_v34, %v1591_v35 }
 0x5a5   :  { %v1632_v42 = vmul.f32 %v1610_v38, %v3439_v32  ;;  %v1620_v40 = vmul.f32 %v1843_v3, %v1619_v37  ;;  %v1719_v32 = vld [vmem:[%s3505_s5] ss:$0 sm:$0xff] }
 0x5a7   :  { %v1634_v43 = vadd.f32 %v1633_v41, %v1632_v42  ;;  %v1621_v47 = vadd.f32 %v1843_v3, %v1620_v40 }
 0x5a9   :  { %1846 = vtanh.f32 %v1634_v43  ;;  %v1625_v60 = vsel %vm1624_vm14, %v1843_v3, %v1621_v47 }
 0x5aa   :  { %v1630_v57 = vsel %vm1627_vm15, %v1629_v13, %v1625_v60 }
 0x5af   :  { %v1847_v25 = vpop.eup %1846 }
 0x5b0   :  { %v1636_v52 = vmul.f32 %v1847_v25, %v1630_v57 }
 0x5b2   :  { %1685 = vmatmul.f32.vlgmr.msrb.gmra.mxu0 %v1636_v52 }
 0x62f   :  { %v1686_v50 = vpop.f32.mrf.mxu0 }
 0x630   :  { %v1687_v0 = vadd.f32 %v1719_v32, %v1686_v50 }
 0x632   :  { %1689 = vst [vmem:[%s3507_s6] sm:$0xff] %v1687_v0 }

</bundles_post_ra>
